<compile_context>
chip_gen: v5e
topology: v5e:2x2
jax: 0.10.0
libtpu: 0.0.40
codegen_flags: <defaults>
</compile_context>

<pallas_src>
import functools
import math

import jax
import jax.numpy as jnp
from jax.experimental import pallas as pl
from jax.experimental.pallas import tpu as pltpu

BN_EPS = 1e-5
BN_SCALE = 1.0 / math.sqrt(1.0 + BN_EPS)


def _round_up(x, m):
    return ((x + m - 1) // m) * m


# ----------------------------------------------------------------------------
# Pallas kernel 1: tiled GEMM  (Cout x K) @ (K x spatial), fused scale+bias+ReLU
# ----------------------------------------------------------------------------
def _matmul_bn_relu_kernel(w_ref, x_ref, s_ref, b_ref, o_ref, *, relu):
    k = pl.program_id(1)

    @pl.when(k == 0)
    def _():
        o_ref[...] = jnp.zeros_like(o_ref)

    # bf16 x bf16 -> f32 accumulation directly in the revisited output block.
    o_ref[...] += jnp.dot(w_ref[...], x_ref[...],
                          preferred_element_type=jnp.float32)

    @pl.when(k == pl.num_programs(1) - 1)
    def _():
        y = o_ref[...] * s_ref[...] + b_ref[...]
        if relu:
            y = jnp.maximum(y, 0.0)
        o_ref[...] = y


def matmul_scale_bias(wmat, x, scale, bias, relu):
    """y = relu?((wmat @ x) * scale[:,None] + bias[:,None]).

    wmat : [M, K]  (M = Cout, small)      -> streamed MXU LHS
    x    : [K, N]  (N = batch * spatial)  -> lane-dense RHS / output columns
    scale, bias : [M]  (folded BatchNorm affine, applied in f32 epilogue)
    """
    M, K = wmat.shape
    _, N = x.shape
    Mp = _round_up(max(M, 8), 8)
    TK = min(256, _round_up(K, 128))
    Kp = _round_up(K, TK)
    TN = min(1024, _round_up(N, 128))
    Np = _round_up(N, TN)

    wp = jnp.zeros((Mp, Kp), jnp.bfloat16).at[:M, :K].set(
        wmat.astype(jnp.bfloat16))
    xp = jnp.pad(x.astype(jnp.bfloat16), ((0, Kp - K), (0, Np - N)))
    sp = jnp.zeros((Mp, 1), jnp.float32).at[:M, 0].set(scale.astype(jnp.float32))
    bp = jnp.zeros((Mp, 1), jnp.float32).at[:M, 0].set(bias.astype(jnp.float32))

    out = pl.pallas_call(
        functools.partial(_matmul_bn_relu_kernel, relu=relu),
        out_shape=jax.ShapeDtypeStruct((Mp, Np), jnp.float32),
        grid_spec=pltpu.PrefetchScalarGridSpec(
            num_scalar_prefetch=0,
            grid=(Np // TN, Kp // TK),
            in_specs=[
                pl.BlockSpec((Mp, TK), lambda n, k: (0, k)),
                pl.BlockSpec((TK, TN), lambda n, k: (k, n)),
                pl.BlockSpec((Mp, 1), lambda n, k: (0, 0)),
                pl.BlockSpec((Mp, 1), lambda n, k: (0, 0)),
            ],
            out_specs=pl.BlockSpec((Mp, TN), lambda n, k: (0, n)),
        ),
        compiler_params=pltpu.CompilerParams(
            dimension_semantics=("parallel", "arbitrary")),
    )(wp, xp, sp, bp)
    return out[:M, :N]


# ----------------------------------------------------------------------------
# Convolutions as im2col + Pallas GEMM (channels-first GEMM orientation)
# ----------------------------------------------------------------------------
def conv3d(x, w, stride=1, pad=1, dil=1, scale=None, bias=None, relu=False):
    """x:[B,Cin,D,H,W], w:[Cout,Cin,k,k,k] -> [B,Cout,Do,Ho,Wo]."""
    B, Cin, D, H, W = x.shape
    Cout, _, k, _, _ = w.shape
    xp = jnp.pad(x, ((0, 0), (0, 0), (pad, pad), (pad, pad), (pad, pad)))
    Do = (D + 2 * pad - dil * (k - 1) - 1) // stride + 1
    Ho = (H + 2 * pad - dil * (k - 1) - 1) // stride + 1
    Wo = (W + 2 * pad - dil * (k - 1) - 1) // stride + 1
    # TODO(synk): im2col still materializes a k^3-expanded activation copy in
    # HBM; a halo-tiled direct-conv Pallas kernel would avoid this traffic.
    cols = []
    for kd in range(k):
        for kh in range(k):
            for kw in range(k):
                cols.append(xp[:, :,
                               kd * dil: kd * dil + (Do - 1) * stride + 1: stride,
                               kh * dil: kh * dil + (Ho - 1) * stride + 1: stride,
                               kw * dil: kw * dil + (Wo - 1) * stride + 1: stride])
    patches = jnp.stack(cols, axis=2)                       # [B,Cin,T,Do,Ho,Wo]
    X = patches.transpose(1, 2, 0, 3, 4, 5).reshape(Cin * k**3, B * Do * Ho * Wo)
    Wm = w.reshape(Cout, Cin * k**3)
    if scale is None:
        scale = jnp.ones((Cout,), jnp.float32)
    if bias is None:
        bias = jnp.zeros((Cout,), jnp.float32)
    Y = matmul_scale_bias(Wm, X, scale, bias, relu)          # [Cout, B*spatial]
    return Y.reshape(Cout, B, Do, Ho, Wo).transpose(1, 0, 2, 3, 4)


def conv2d(x, w, stride=1, pad=1, dil=1, scale=None, bias=None, relu=False):
    """x:[B,Cin,H,W], w:[Cout,Cin,k,k] -> [B,Cout,Ho,Wo]."""
    B, Cin, H, W = x.shape
    Cout, _, k, _ = w.shape
    xp = jnp.pad(x, ((0, 0), (0, 0), (pad, pad), (pad, pad)))
    Ho = (H + 2 * pad - dil * (k - 1) - 1) // stride + 1
    Wo = (W + 2 * pad - dil * (k - 1) - 1) // stride + 1
    cols = []
    for kh in range(k):
        for kw in range(k):
            cols.append(xp[:, :,
                           kh * dil: kh * dil + (Ho - 1) * stride + 1: stride,
                           kw * dil: kw * dil + (Wo - 1) * stride + 1: stride])
    patches = jnp.stack(cols, axis=2)                        # [B,Cin,T,Ho,Wo]
    X = patches.transpose(1, 2, 0, 3, 4).reshape(Cin * k * k, B * Ho * Wo)
    Wm = w.reshape(Cout, Cin * k * k)
    if scale is None:
        scale = jnp.ones((Cout,), jnp.float32)
    if bias is None:
        bias = jnp.zeros((Cout,), jnp.float32)
    Y = matmul_scale_bias(Wm, X, scale, bias, relu)
    return Y.reshape(Cout, B, Ho, Wo).transpose(1, 0, 2, 3)


def convbn3d_relu(x, w, stride=1, pad=1, dil=1):
    cout = w.shape[0]
    return conv3d(x, w, stride, pad, dil,
                  scale=jnp.full((cout,), BN_SCALE, jnp.float32),
                  bias=jnp.zeros((cout,), jnp.float32), relu=True)


def convbn2d_relu(x, w, stride=1, pad=1, dil=1):
    cout = w.shape[0]
    return conv2d(x, w, stride, pad, dil,
                  scale=jnp.full((cout,), BN_SCALE, jnp.float32),
                  bias=jnp.zeros((cout,), jnp.float32), relu=True)


# ----------------------------------------------------------------------------
# ConvTranspose3d (k=3, stride=2, pad=1, output_padding=1) + BN, phase-decomposed
# ----------------------------------------------------------------------------
# per-dim output parity -> list of (kernel tap index, input offset)
_PHASE_TAPS = {0: ((1, 0),), 1: ((2, 0), (0, 1))}


def conv_transpose3d_bn(x, w, scale, bias):
    """Sub-pixel (phase) formulation of ConvTranspose3d(bias=False) + BatchNorm.

    Each of the 8 output parity phases is a small dense conv of the input
    (no zero-insertion), so ~1/8 of the GEMM MACs / im2col bytes of the naive
    transposed-conv-as-conv lowering.  w:[Cin,Cout,3,3,3].
    """
    B, Cin, D, H, W = x.shape
    Cout = w.shape[1]
    xp = jnp.pad(x, ((0, 0), (0, 0), (0, 1), (0, 1), (0, 1)))
    phase_outs = []
    for pd in (0, 1):
        for ph in (0, 1):
            for pw in (0, 1):
                cols, wrows = [], []
                for kd, od in _PHASE_TAPS[pd]:
                    for kh, oh in _PHASE_TAPS[ph]:
                        for kw, ow in _PHASE_TAPS[pw]:
                            cols.append(xp[:, :, od:od + D, oh:oh + H, ow:ow + W])
                            wrows.append(w[:, :, kd, kh, kw])   # [Cin, Cout]
                T = len(cols)
                patches = jnp.stack(cols, axis=2)               # [B,Cin,T,D,H,W]
                X = patches.transpose(1, 2, 0, 3, 4, 5).reshape(
                    Cin * T, B * D * H * W)
                Wm = jnp.stack(wrows, axis=0).transpose(2, 1, 0).reshape(
                    Cout, Cin * T)
                Y = matmul_scale_bias(Wm, X, scale, bias, relu=False)
                phase_outs.append(
                    Y.reshape(Cout, B, D, H, W).transpose(1, 0, 2, 3, 4))
    ph_arr = jnp.stack(phase_outs, axis=0).reshape(2, 2, 2, B, Cout, D, H, W)
    out = ph_arr.transpose(3, 4, 5, 0, 6, 1, 7, 2)  # [B,Cout,D,2,H,2,W,2]
    return out.reshape(B, Cout, 2 * D, 2 * H, 2 * W)


# ----------------------------------------------------------------------------
# Pallas kernel 2: group-wise correlation (mean of products over channels/group)
# ----------------------------------------------------------------------------
def _gwc_kernel(ref_ref, tgt_ref, o_ref, *, cg):
    acc = ref_ref[:, 0, :] * tgt_ref[0, :, 0, :]
    for c in range(1, cg):
        acc += ref_ref[:, c, :] * tgt_ref[0, :, c, :]
    o_ref[0] = acc * (1.0 / cg)


def build_gwc_volume(ref, tgt, maxdisp, num_groups):
    """ref,tgt:[B,C,H,W] -> [B,G,maxdisp,H,W]."""
    B, C, H, W = ref.shape
    Cg = C // num_groups
    BG = B * num_groups
    HW = H * W
    TS = min(512, _round_up(HW, 128))
    HWp = _round_up(HW, TS)

    ref_r = jnp.pad(ref.reshape(BG, Cg, HW).astype(jnp.float32),
                    ((0, 0), (0, 0), (0, HWp - HW)))
    # TODO(synk): the per-disparity shifted copies of tgt are still built in
    # HBM (same access pattern as the PyTorch reference volume build); doing
    # the shift inside the kernel would save ~2x HBM traffic on this volume.
    shifted = []
    for d in range(maxdisp):
        if d == 0:
            shifted.append(tgt)
        else:
            shifted.append(jnp.pad(tgt[:, :, :, :W - d],
                                   ((0, 0), (0, 0), (0, 0), (d, 0))))
    tgt_s = jnp.stack(shifted, axis=0).reshape(maxdisp, BG, Cg, HW)
    tgt_s = jnp.pad(tgt_s.astype(jnp.float32),
                    ((0, 0), (0, 0), (0, 0), (0, HWp - HW)))

    out = pl.pallas_call(
        functools.partial(_gwc_kernel, cg=Cg),
        out_shape=jax.ShapeDtypeStruct((maxdisp, BG, HWp), jnp.float32),
        grid_spec=pltpu.PrefetchScalarGridSpec(
            num_scalar_prefetch=0,
            grid=(maxdisp, HWp // TS),
            in_specs=[
                pl.BlockSpec((BG, Cg, TS), lambda d, s: (0, 0, s)),
                pl.BlockSpec((1, BG, Cg, TS), lambda d, s: (d, 0, 0, s)),
            ],
            out_specs=pl.BlockSpec((1, BG, TS), lambda d, s: (d, 0, s)),
        ),
        compiler_params=pltpu.CompilerParams(
            dimension_semantics=("parallel", "parallel")),
    )(ref_r, tgt_s)
    out = out[:, :, :HW].reshape(maxdisp, B, num_groups, H, W)
    return out.transpose(1, 2, 0, 3, 4)


def build_concat_volume(ref, tgt, maxdisp):
    """ref,tgt:[B,C,H,W] -> [B,2C,maxdisp,H,W] (data movement glue)."""
    B, C, H, W = ref.shape
    vols = []
    for d in range(maxdisp):
        if d == 0:
            r, t = ref, tgt
        else:
            r = jnp.concatenate(
                [jnp.zeros_like(ref[:, :, :, :d]), ref[:, :, :, d:]], axis=3)
            t = jnp.pad(tgt[:, :, :, :W - d], ((0, 0), (0, 0), (0, 0), (d, 0)))
        vols.append(jnp.concatenate([r, t], axis=1))
    return jnp.stack(vols, axis=2)


# ----------------------------------------------------------------------------
# Pallas kernel 3: softmax over disparity + disparity regression (lane-dense out)
# ----------------------------------------------------------------------------
def _disp_regress_kernel(c_ref, d_ref, o_ref):
    c = c_ref[0]                                        # [D, TH, W]
    m = jnp.max(c, axis=0, keepdims=True)
    e = jnp.exp(c - m)
    denom = jnp.sum(e, axis=0)                          # [TH, W]
    num = jnp.sum(e * d_ref[...], axis=0)               # [TH, W]
    o_ref[0] = num * pl.reciprocal(denom, approx=True)


def disparity_regression(cost):
    """cost:[B,D,H,W] -> pred:[B,H,W]  (softmax over D, expectation of disp)."""
    B, D, H, W = cost.shape
    TH = 8 if H % 8 == 0 else H
    disp_vals = jnp.arange(D, dtype=jnp.float32).reshape(D, 1, 1)
    out = pl.pallas_call(
        _disp_regress_kernel,
        out_shape=jax.ShapeDtypeStruct((B, H, W), jnp.float32),
        grid_spec=pltpu.PrefetchScalarGridSpec(
            num_scalar_prefetch=0,
            grid=(B, H // TH),
            in_specs=[
                pl.BlockSpec((1, D, TH, W), lambda b, h: (b, 0, h, 0)),
                pl.BlockSpec((D, 1, 1), lambda b, h: (0, 0, 0)),
            ],
            out_specs=pl.BlockSpec((1, TH, W), lambda b, h: (b, h, 0)),
        ),
        compiler_params=pltpu.CompilerParams(
            dimension_semantics=("parallel", "parallel")),
    )(cost.astype(jnp.float32), disp_vals)
    return out


# ----------------------------------------------------------------------------
# Network modules
# ----------------------------------------------------------------------------
def feature_extraction_fwd(p, img):
    # surrogate feature extractor: 1/4 resolution concat + gwc features
    x = convbn2d_relu(img, p["c1"], stride=2, pad=1)
    x = convbn2d_relu(x, p["c2"], stride=2, pad=1)
    gwc = convbn2d_relu(x, p["gwc"], stride=1, pad=1)
    cat = conv2d(x, p["cat"], stride=1, pad=1, relu=False)   # no bn / no relu
    return cat, gwc


def dilated_sub_fwd(p, x, last):
    out_1 = convbn3d_relu(x, p["conv0"], stride=2, pad=1)
    c1 = convbn3d_relu(out_1, p["conv2_1"], stride=1, pad=1)
    c2 = convbn3d_relu(out_1, p["conv2_2"], stride=1, pad=2, dil=2)
    c3 = convbn3d_relu(out_1, p["conv2_3"], stride=1, pad=4, dil=4)
    out_2 = convbn3d_relu(jnp.concatenate([c1, c2, c3], axis=1),
                          p["conv3_cat"], stride=1, pad=1)
    out_1 = convbn3d_relu(out_1, p["conv1"], stride=1, pad=1) + last
    cout = p["deconv"].shape[1]
    out_2 = conv_transpose3d_bn(out_2, p["deconv"],
                                scale=jnp.full((cout,), BN_SCALE, jnp.float32),
                                bias=jnp.zeros((cout,), jnp.float32))
    out_3 = convbn3d_relu(out_2, p["pred_conv"], stride=1, pad=1)
    return out_1, out_2, out_3


def classif_fwd(p, x):
    y = convbn3d_relu(x, p["w0"], stride=1, pad=1)
    return conv3d(y, p["w1"], stride=1, pad=1, relu=False)   # Conv3d, no bias


def psmnet_forward(params, left, right, seg=None, *, maxdisp, num_groups,
                   concat_channels, training=False):
    del seg, concat_channels  # self.seg = False path
    refimg_fea, refimg_fea_gwc = feature_extraction_fwd(params["fe"], left)
    targetimg_fea, targetimg_fea_gwc = feature_extraction_fwd(params["fe"], right)

    d4 = maxdisp // 4
    gwc_volume = build_gwc_volume(refimg_fea_gwc, targetimg_fea_gwc, d4, num_groups)
    concat_volume = build_concat_volume(refimg_fea, targetimg_fea, d4)
    volume = jnp.concatenate([gwc_volume, concat_volume], axis=1)

    x = convbn3d_relu(volume, params["w37"], stride=1, pad=1)
    layer38_out = convbn3d_relu(x, params["w38"], stride=1, pad=1)

    B, C, D, H, W = layer38_out.shape
    zeros = jnp.zeros((B, C, D // 2, H // 2, W // 2), jnp.float32)

    layer40_out, layer45_out, cost1 = dilated_sub_fwd(params["ds1"], layer38_out, zeros)
    cost1 = cost1 + layer38_out
    layer48_out, layer53_out, cost2 = dilated_sub_fwd(params["ds2"], layer45_out, layer40_out)
    cost2 = cost2 + layer38_out
    _, _, cost3 = dilated_sub_fwd(params["ds3"], layer53_out, layer48_out)
    cost3 = cost3 + layer38_out

    cost1 = classif_fwd(params["cls1"], cost1)
    cost2 = classif_fwd(params["cls2"], cost2) + cost1
    cost3 = classif_fwd(params["cls3"], cost3) + cost2

    Hin, Win = left.shape[2], left.shape[3]

    def regress(cost):
        # TODO(synk): trilinear upsample is still materialized in HBM; fusing
        # the interpolation taps into the regression kernel would remove one
        # full write+read of the full-resolution cost volume.
        up = jax.image.resize(cost, (cost.shape[0], 1, maxdisp, Hin, Win),
                              method="trilinear")
        return disparity_regression(jnp.squeeze(up, axis=1))

    if training:
        return regress(cost1), regress(cost2), regress(cost3)
    return regress(cost3)


# ----------------------------------------------------------------------------
# Deterministic parameter init (matches PyTorch __init__ shapes / init scheme)
# ----------------------------------------------------------------------------
def init_params(key, num_groups, concat_channels, cpg):
    keys = iter(jax.random.split(key, 64))

    def c3(cout, cin, k=3):
        std = math.sqrt(2.0 / (k * k * k * cout))
        return std * jax.random.normal(next(keys), (cout, cin, k, k, k), jnp.float32)

    def c2(cout, cin, k=3):
        std = math.sqrt(2.0 / (k * k * cout))
        return std * jax.random.normal(next(keys), (cout, cin, k, k), jnp.float32)

    def ct3(cin, cout, k=3):
        # ConvTranspose3d is not reinitialized by PSMNet's init loop; use a
        # small deterministic normal init here.
        return 0.02 * jax.random.normal(next(keys), (cin, cout, k, k, k), jnp.float32)

    gwc_ch = num_groups * cpg
    fe = dict(c1=c2(16, 3), c2=c2(32, 16), gwc=c2(gwc_ch, 32),
              cat=c2(concat_channels, 32))

    def ds():
        return dict(conv0=c3(32, 32), conv1=c3(32, 32), conv2_1=c3(32, 32),
                    conv2_2=c3(32, 32), conv2_3=c3(32, 32),
                    conv3_cat=c3(32, 96), deconv=ct3(32, 32),
                    pred_conv=c3(32, 32))

    in_ch = num_groups + 2 * concat_channels
    return dict(
        fe=fe,
        w37=c3(32, in_ch), w38=c3(32, 32),
        ds1=ds(), ds2=ds(), ds3=ds(),
        cls1=dict(w0=c3(32, 32), w1=c3(1, 32)),
        cls2=dict(w0=c3(32, 32), w1=c3(1, 32)),
        cls3=dict(w0=c3(32, 32), w1=c3(1, 32)),
    )


# ----------------------------------------------------------------------------
if __name__ == "__main__":
    key = jax.random.PRNGKey(0)
    k_left, k_right, k_params = jax.random.split(key, 3)

    # small shapes consistent with the module
    B, H, W = 2, 16, 16
    maxdisp = 8            # -> cost volume disparity dim = maxdisp // 4 = 2
    num_groups = 8
    concat_channels = 4
    cpg = 4                # channels per gwc group (gwc feature = 32 channels)

    left = jax.random.normal(k_left, (B, 3, H, W), jnp.float32)
    right = jax.random.normal(k_right, (B, 3, H, W), jnp.float32)
    params = init_params(k_params, num_groups, concat_channels, cpg)

    fwd = jax.jit(functools.partial(
        psmnet_forward, maxdisp=maxdisp, num_groups=num_groups,
        concat_channels=concat_channels, training=False))

    pred3 = fwd(params, left, right)
    jax.block_until_ready(pred3)
    assert pred3.shape == (B, H, W), pred3.shape
    assert bool(jnp.all(jnp.isfinite(pred3)))
    print("KERNEL_OK")
</pallas_src>

<mosaic_0001>
module attributes {stable_mosaic.version = 11 : i64} {
  func.func @_matmul_bn_relu_kernel(%arg0: i32, %arg1: i32, %arg2: memref<16x128xbf16, #tpu.memory_space<vmem>>, %arg3: memref<128x128xbf16, #tpu.memory_space<vmem>>, %arg4: memref<16x1xf32, #tpu.memory_space<vmem>>, %arg5: memref<16x1xf32, #tpu.memory_space<vmem>>, %arg6: memref<16x128xf32, #tpu.memory_space<vmem>>) attributes {dimension_semantics = [#tpu.dimension_semantics<parallel>, #tpu.dimension_semantics<arbitrary>], iteration_bounds = array<i64: 1, 1>, scalar_prefetch = 0 : i64, scratch_operands = 0 : i64, tpu.core_type = #tpu.core_type<tc>, window_params = [{transform_indices = @transform_0, window_bounds = array<i64: 16, 128>}, {transform_indices = @transform_1, window_bounds = array<i64: 128, 128>}, {pipeline_mode = #tpu.pipeline_mode<synchronous>, transform_indices = @transform_2, window_bounds = array<i64: 16, 1>}, {pipeline_mode = #tpu.pipeline_mode<synchronous>, transform_indices = @transform_3, window_bounds = array<i64: 16, 1>}, {transform_indices = @transform_4, window_bounds = array<i64: 16, 128>}]} {
    %c0_i32 = arith.constant 0 : i32
    %0 = arith.cmpi eq, %arg1, %c0_i32 : i32
    %1 = arith.extui %0 : i1 to i32
    %c0_i32_0 = arith.constant 0 : i32
    %2 = arith.cmpi ne, %1, %c0_i32_0 : i32
    scf.if %2 {
      %cst_10 = arith.constant 0.000000e+00 : f32
      %12 = vector.broadcast %cst_10 : f32 to vector<16x128xf32>
      %c0_11 = arith.constant 0 : index
      %c0_12 = arith.constant 0 : index
      %13 = vector.load %arg6[%c0_11, %c0_12] : memref<16x128xf32, #tpu.memory_space<vmem>>, vector<16x128xf32>
      tpu.vector_store %arg6[%c0_11, %c0_12], %12 {strides = array<i32>} : memref<16x128xf32, #tpu.memory_space<vmem>>, vector<16x128xf32>,
    } else {
    }
    %c0 = arith.constant 0 : index
    %c0_1 = arith.constant 0 : index
    %3 = vector.load %arg6[%c0, %c0_1] : memref<16x128xf32, #tpu.memory_space<vmem>>, vector<16x128xf32>
    %c0_2 = arith.constant 0 : index
    %c0_3 = arith.constant 0 : index
    %4 = vector.load %arg2[%c0_2, %c0_3] : memref<16x128xbf16, #tpu.memory_space<vmem>>, vector<16x128xbf16>
    %c0_4 = arith.constant 0 : index
    %c0_5 = arith.constant 0 : index
    %5 = vector.load %arg3[%c0_4, %c0_5] : memref<128x128xbf16, #tpu.memory_space<vmem>>, vector<128x128xbf16>
    %cst = arith.constant dense<0.000000e+00> : vector<16x128xf32>
    %6 = tpu.matmul %4, %5, %cst {dimension_numbers = #tpu.dot_dimension_numbers<[1], [0], [0], [1], [0, 0, 1, 1], [], []>} : vector<16x128xbf16>, vector<128x128xbf16>, vector<16x128xf32> -> vector<16x128xf32>
    %7 = arith.addf %3, %6 : vector<16x128xf32>
    %c0_6 = arith.constant 0 : index
    %c0_7 = arith.constant 0 : index
    %8 = vector.load %arg6[%c0_6, %c0_7] : memref<16x128xf32, #tpu.memory_space<vmem>>, vector<16x128xf32>
    tpu.vector_store %arg6[%c0_6, %c0_7], %7 {strides = array<i32>} : memref<16x128xf32, #tpu.memory_space<vmem>>, vector<16x128xf32>,
    %c0_i32_8 = arith.constant 0 : i32
    %9 = arith.cmpi eq, %arg1, %c0_i32_8 : i32
    %10 = arith.extui %9 : i1 to i32
    %c0_i32_9 = arith.constant 0 : i32
    %11 = arith.cmpi ne, %10, %c0_i32_9 : i32
    scf.if %11 {
      %c0_10 = arith.constant 0 : index
      %c0_11 = arith.constant 0 : index
      %12 = vector.load %arg6[%c0_10, %c0_11] : memref<16x128xf32, #tpu.memory_space<vmem>>, vector<16x128xf32>
      %c0_12 = arith.constant 0 : index
      %c0_13 = arith.constant 0 : index
      %13 = vector.load %arg4[%c0_12, %c0_13] : memref<16x1xf32, #tpu.memory_space<vmem>>, vector<16x1xf32>
      %14 = vector.broadcast %13 : vector<16x1xf32> to vector<16x128xf32>
      %15 = arith.mulf %12, %14 : vector<16x128xf32>
      %c0_14 = arith.constant 0 : index
      %c0_15 = arith.constant 0 : index
      %16 = vector.load %arg5[%c0_14, %c0_15] : memref<16x1xf32, #tpu.memory_space<vmem>>, vector<16x1xf32>
      %17 = vector.broadcast %16 : vector<16x1xf32> to vector<16x128xf32>
      %18 = arith.addf %15, %17 : vector<16x128xf32>
      %cst_16 = arith.constant 0.000000e+00 : f32
      %19 = vector.broadcast %cst_16 : f32 to vector<16x128xf32>
      %20 = arith.maximumf %18, %19 : vector<16x128xf32>
      %c0_17 = arith.constant 0 : index
      %c0_18 = arith.constant 0 : index
      %21 = vector.load %arg6[%c0_17, %c0_18] : memref<16x128xf32, #tpu.memory_space<vmem>>, vector<16x128xf32>
      tpu.vector_store %arg6[%c0_17, %c0_18], %20 {strides = array<i32>} : memref<16x128xf32, #tpu.memory_space<vmem>>, vector<16x128xf32>,
    } else {
    }
    return
  }
  func.func @transform_0(%arg0: i32, %arg1: i32) -> (i32, i32) {
    %c0_i32 = arith.constant 0 : i32
    %c0_i32_0 = arith.constant 0 : i32
    return %c0_i32, %arg1 : i32, i32
  }
  func.func @transform_1(%arg0: i32, %arg1: i32) -> (i32, i32) {
    %c0_i32 = arith.constant 0 : i32
    return %arg1, %arg0 : i32, i32
  }
  func.func @transform_2(%arg0: i32, %arg1: i32) -> (i32, i32) {
    %c0_i32 = arith.constant 0 : i32
    %c0_i32_0 = arith.constant 0 : i32
    %c0_i32_1 = arith.constant 0 : i32
    return %c0_i32, %c0_i32_0 : i32, i32
  }
  func.func @transform_3(%arg0: i32, %arg1: i32) -> (i32, i32) {
    %c0_i32 = arith.constant 0 : i32
    %c0_i32_0 = arith.constant 0 : i32
    %c0_i32_1 = arith.constant 0 : i32
    return %c0_i32, %c0_i32_0 : i32, i32
  }
  func.func @transform_4(%arg0: i32, %arg1: i32) -> (i32, i32) {
    %c0_i32 = arith.constant 0 : i32
    %c0_i32_0 = arith.constant 0 : i32
    return %c0_i32, %arg0 : i32, i32
  }
}

module attributes {stable_mosaic.version = 11 : i64} {
  func.func @_matmul_bn_relu_kernel(%arg0: i32, %arg1: i32, %arg2: memref<32x256xbf16, #tpu.memory_space<vmem>>, %arg3: memref<256x128xbf16, #tpu.memory_space<vmem>>, %arg4: memref<32x1xf32, #tpu.memory_space<vmem>>, %arg5: memref<32x1xf32, #tpu.memory_space<vmem>>, %arg6: memref<32x128xf32, #tpu.memory_space<vmem>>) attributes {dimension_semantics = [#tpu.dimension_semantics<parallel>, #tpu.dimension_semantics<arbitrary>], iteration_bounds = array<i64: 1, 1>, scalar_prefetch = 0 : i64, scratch_operands = 0 : i64, tpu.core_type = #tpu.core_type<tc>, window_params = [{transform_indices = @transform_0, window_bounds = array<i64: 32, 256>}, {transform_indices = @transform_1, window_bounds = array<i64: 256, 128>}, {pipeline_mode = #tpu.pipeline_mode<synchronous>, transform_indices = @transform_2, window_bounds = array<i64: 32, 1>}, {pipeline_mode = #tpu.pipeline_mode<synchronous>, transform_indices = @transform_3, window_bounds = array<i64: 32, 1>}, {transform_indices = @transform_4, window_bounds = array<i64: 32, 128>}]} {
    %c0_i32 = arith.constant 0 : i32
    %0 = arith.cmpi eq, %arg1, %c0_i32 : i32
    %1 = arith.extui %0 : i1 to i32
    %c0_i32_0 = arith.constant 0 : i32
    %2 = arith.cmpi ne, %1, %c0_i32_0 : i32
    scf.if %2 {
      %cst_10 = arith.constant 0.000000e+00 : f32
      %12 = vector.broadcast %cst_10 : f32 to vector<32x128xf32>
      %c0_11 = arith.constant 0 : index
      %c0_12 = arith.constant 0 : index
      %13 = vector.load %arg6[%c0_11, %c0_12] : memref<32x128xf32, #tpu.memory_space<vmem>>, vector<32x128xf32>
      tpu.vector_store %arg6[%c0_11, %c0_12], %12 {strides = array<i32>} : memref<32x128xf32, #tpu.memory_space<vmem>>, vector<32x128xf32>,
    } else {
    }
    %c0 = arith.constant 0 : index
    %c0_1 = arith.constant 0 : index
    %3 = vector.load %arg6[%c0, %c0_1] : memref<32x128xf32, #tpu.memory_space<vmem>>, vector<32x128xf32>
    %c0_2 = arith.constant 0 : index
    %c0_3 = arith.constant 0 : index
    %4 = vector.load %arg2[%c0_2, %c0_3] : memref<32x256xbf16, #tpu.memory_space<vmem>>, vector<32x256xbf16>
    %c0_4 = arith.constant 0 : index
    %c0_5 = arith.constant 0 : index
    %5 = vector.load %arg3[%c0_4, %c0_5] : memref<256x128xbf16, #tpu.memory_space<vmem>>, vector<256x128xbf16>
    %cst = arith.constant dense<0.000000e+00> : vector<32x128xf32>
    %6 = tpu.matmul %4, %5, %cst {dimension_numbers = #tpu.dot_dimension_numbers<[1], [0], [0], [1], [0, 0, 1, 1], [], []>} : vector<32x256xbf16>, vector<256x128xbf16>, vector<32x128xf32> -> vector<32x128xf32>
    %7 = arith.addf %3, %6 : vector<32x128xf32>
    %c0_6 = arith.constant 0 : index
    %c0_7 = arith.constant 0 : index
    %8 = vector.load %arg6[%c0_6, %c0_7] : memref<32x128xf32, #tpu.memory_space<vmem>>, vector<32x128xf32>
    tpu.vector_store %arg6[%c0_6, %c0_7], %7 {strides = array<i32>} : memref<32x128xf32, #tpu.memory_space<vmem>>, vector<32x128xf32>,
    %c0_i32_8 = arith.constant 0 : i32
    %9 = arith.cmpi eq, %arg1, %c0_i32_8 : i32
    %10 = arith.extui %9 : i1 to i32
    %c0_i32_9 = arith.constant 0 : i32
    %11 = arith.cmpi ne, %10, %c0_i32_9 : i32
    scf.if %11 {
      %c0_10 = arith.constant 0 : index
      %c0_11 = arith.constant 0 : index
      %12 = vector.load %arg6[%c0_10, %c0_11] : memref<32x128xf32, #tpu.memory_space<vmem>>, vector<32x128xf32>
      %c0_12 = arith.constant 0 : index
      %c0_13 = arith.constant 0 : index
      %13 = vector.load %arg4[%c0_12, %c0_13] : memref<32x1xf32, #tpu.memory_space<vmem>>, vector<32x1xf32>
      %14 = vector.broadcast %13 : vector<32x1xf32> to vector<32x128xf32>
      %15 = arith.mulf %12, %14 : vector<32x128xf32>
      %c0_14 = arith.constant 0 : index
      %c0_15 = arith.constant 0 : index
      %16 = vector.load %arg5[%c0_14, %c0_15] : memref<32x1xf32, #tpu.memory_space<vmem>>, vector<32x1xf32>
      %17 = vector.broadcast %16 : vector<32x1xf32> to vector<32x128xf32>
      %18 = arith.addf %15, %17 : vector<32x128xf32>
      %cst_16 = arith.constant 0.000000e+00 : f32
      %19 = vector.broadcast %cst_16 : f32 to vector<32x128xf32>
      %20 = arith.maximumf %18, %19 : vector<32x128xf32>
      %c0_17 = arith.constant 0 : index
      %c0_18 = arith.constant 0 : index
      %21 = vector.load %arg6[%c0_17, %c0_18] : memref<32x128xf32, #tpu.memory_space<vmem>>, vector<32x128xf32>
      tpu.vector_store %arg6[%c0_17, %c0_18], %20 {strides = array<i32>} : memref<32x128xf32, #tpu.memory_space<vmem>>, vector<32x128xf32>,
    } else {
    }
    return
  }
  func.func @transform_0(%arg0: i32, %arg1: i32) -> (i32, i32) {
    %c0_i32 = arith.constant 0 : i32
    %c0_i32_0 = arith.constant 0 : i32
    return %c0_i32, %arg1 : i32, i32
  }
  func.func @transform_1(%arg0: i32, %arg1: i32) -> (i32, i32) {
    %c0_i32 = arith.constant 0 : i32
    return %arg1, %arg0 : i32, i32
  }
  func.func @transform_2(%arg0: i32, %arg1: i32) -> (i32, i32) {
    %c0_i32 = arith.constant 0 : i32
    %c0_i32_0 = arith.constant 0 : i32
    %c0_i32_1 = arith.constant 0 : i32
    return %c0_i32, %c0_i32_0 : i32, i32
  }
  func.func @transform_3(%arg0: i32, %arg1: i32) -> (i32, i32) {
    %c0_i32 = arith.constant 0 : i32
    %c0_i32_0 = arith.constant 0 : i32
    %c0_i32_1 = arith.constant 0 : i32
    return %c0_i32, %c0_i32_0 : i32, i32
  }
  func.func @transform_4(%arg0: i32, %arg1: i32) -> (i32, i32) {
    %c0_i32 = arith.constant 0 : i32
    %c0_i32_0 = arith.constant 0 : i32
    return %c0_i32, %arg0 : i32, i32
  }
}

module attributes {stable_mosaic.version = 11 : i64} {
  func.func @_matmul_bn_relu_kernel(%arg0: i32, %arg1: i32, %arg2: memref<32x256xbf16, #tpu.memory_space<vmem>>, %arg3: memref<256x128xbf16, #tpu.memory_space<vmem>>, %arg4: memref<32x1xf32, #tpu.memory_space<vmem>>, %arg5: memref<32x1xf32, #tpu.memory_space<vmem>>, %arg6: memref<32x128xf32, #tpu.memory_space<vmem>>) attributes {dimension_semantics = [#tpu.dimension_semantics<parallel>, #tpu.dimension_semantics<arbitrary>], iteration_bounds = array<i64: 1, 2>, scalar_prefetch = 0 : i64, scratch_operands = 0 : i64, tpu.core_type = #tpu.core_type<tc>, window_params = [{transform_indices = @transform_0, window_bounds = array<i64: 32, 256>}, {transform_indices = @transform_1, window_bounds = array<i64: 256, 128>}, {pipeline_mode = #tpu.pipeline_mode<synchronous>, transform_indices = @transform_2, window_bounds = array<i64: 32, 1>}, {pipeline_mode = #tpu.pipeline_mode<synchronous>, transform_indices = @transform_3, window_bounds = array<i64: 32, 1>}, {transform_indices = @transform_4, window_bounds = array<i64: 32, 128>}]} {
    %c0_i32 = arith.constant 0 : i32
    %0 = arith.cmpi eq, %arg1, %c0_i32 : i32
    %1 = arith.extui %0 : i1 to i32
    %c0_i32_0 = arith.constant 0 : i32
    %2 = arith.cmpi ne, %1, %c0_i32_0 : i32
    scf.if %2 {
      %cst_9 = arith.constant 0.000000e+00 : f32
      %12 = vector.broadcast %cst_9 : f32 to vector<32x128xf32>
      %c0_10 = arith.constant 0 : index
      %c0_11 = arith.constant 0 : index
      %13 = vector.load %arg6[%c0_10, %c0_11] : memref<32x128xf32, #tpu.memory_space<vmem>>, vector<32x128xf32>
      tpu.vector_store %arg6[%c0_10, %c0_11], %12 {strides = array<i32>} : memref<32x128xf32, #tpu.memory_space<vmem>>, vector<32x128xf32>,
    } else {
    }
    %c0 = arith.constant 0 : index
    %c0_1 = arith.constant 0 : index
    %3 = vector.load %arg6[%c0, %c0_1] : memref<32x128xf32, #tpu.memory_space<vmem>>, vector<32x128xf32>
    %c0_2 = arith.constant 0 : index
    %c0_3 = arith.constant 0 : index
    %4 = vector.load %arg2[%c0_2, %c0_3] : memref<32x256xbf16, #tpu.memory_space<vmem>>, vector<32x256xbf16>
    %c0_4 = arith.constant 0 : index
    %c0_5 = arith.constant 0 : index
    %5 = vector.load %arg3[%c0_4, %c0_5] : memref<256x128xbf16, #tpu.memory_space<vmem>>, vector<256x128xbf16>
    %cst = arith.constant dense<0.000000e+00> : vector<32x128xf32>
    %6 = tpu.matmul %4, %5, %cst {dimension_numbers = #tpu.dot_dimension_numbers<[1], [0], [0], [1], [0, 0, 1, 1], [], []>} : vector<32x256xbf16>, vector<256x128xbf16>, vector<32x128xf32> -> vector<32x128xf32>
    %7 = arith.addf %3, %6 : vector<32x128xf32>
    %c0_6 = arith.constant 0 : index
    %c0_7 = arith.constant 0 : index
    %8 = vector.load %arg6[%c0_6, %c0_7] : memref<32x128xf32, #tpu.memory_space<vmem>>, vector<32x128xf32>
    tpu.vector_store %arg6[%c0_6, %c0_7], %7 {strides = array<i32>} : memref<32x128xf32, #tpu.memory_space<vmem>>, vector<32x128xf32>,
    %c1_i32 = arith.constant 1 : i32
    %9 = arith.cmpi eq, %arg1, %c1_i32 : i32
    %10 = arith.extui %9 : i1 to i32
    %c0_i32_8 = arith.constant 0 : i32
    %11 = arith.cmpi ne, %10, %c0_i32_8 : i32
    scf.if %11 {
      %c0_9 = arith.constant 0 : index
      %c0_10 = arith.constant 0 : index
      %12 = vector.load %arg6[%c0_9, %c0_10] : memref<32x128xf32, #tpu.memory_space<vmem>>, vector<32x128xf32>
      %c0_11 = arith.constant 0 : index
      %c0_12 = arith.constant 0 : index
      %13 = vector.load %arg4[%c0_11, %c0_12] : memref<32x1xf32, #tpu.memory_space<vmem>>, vector<32x1xf32>
      %14 = vector.broadcast %13 : vector<32x1xf32> to vector<32x128xf32>
      %15 = arith.mulf %12, %14 : vector<32x128xf32>
      %c0_13 = arith.constant 0 : index
      %c0_14 = arith.constant 0 : index
      %16 = vector.load %arg5[%c0_13, %c0_14] : memref<32x1xf32, #tpu.memory_space<vmem>>, vector<32x1xf32>
      %17 = vector.broadcast %16 : vector<32x1xf32> to vector<32x128xf32>
      %18 = arith.addf %15, %17 : vector<32x128xf32>
      %cst_15 = arith.constant 0.000000e+00 : f32
      %19 = vector.broadcast %cst_15 : f32 to vector<32x128xf32>
      %20 = arith.maximumf %18, %19 : vector<32x128xf32>
      %c0_16 = arith.constant 0 : index
      %c0_17 = arith.constant 0 : index
      %21 = vector.load %arg6[%c0_16, %c0_17] : memref<32x128xf32, #tpu.memory_space<vmem>>, vector<32x128xf32>
      tpu.vector_store %arg6[%c0_16, %c0_17], %20 {strides = array<i32>} : memref<32x128xf32, #tpu.memory_space<vmem>>, vector<32x128xf32>,
    } else {
    }
    return
  }
  func.func @transform_0(%arg0: i32, %arg1: i32) -> (i32, i32) {
    %c0_i32 = arith.constant 0 : i32
    %c0_i32_0 = arith.constant 0 : i32
    return %c0_i32, %arg1 : i32, i32
  }
  func.func @transform_1(%arg0: i32, %arg1: i32) -> (i32, i32) {
    %c0_i32 = arith.constant 0 : i32
    return %arg1, %arg0 : i32, i32
  }
  func.func @transform_2(%arg0: i32, %arg1: i32) -> (i32, i32) {
    %c0_i32 = arith.constant 0 : i32
    %c0_i32_0 = arith.constant 0 : i32
    %c0_i32_1 = arith.constant 0 : i32
    return %c0_i32, %c0_i32_0 : i32, i32
  }
  func.func @transform_3(%arg0: i32, %arg1: i32) -> (i32, i32) {
    %c0_i32 = arith.constant 0 : i32
    %c0_i32_0 = arith.constant 0 : i32
    %c0_i32_1 = arith.constant 0 : i32
    return %c0_i32, %c0_i32_0 : i32, i32
  }
  func.func @transform_4(%arg0: i32, %arg1: i32) -> (i32, i32) {
    %c0_i32 = arith.constant 0 : i32
    %c0_i32_0 = arith.constant 0 : i32
    return %c0_i32, %arg0 : i32, i32
  }
}

module attributes {stable_mosaic.version = 11 : i64} {
  func.func @_gwc_kernel(%arg0: i32, %arg1: i32, %arg2: memref<16x4x128xf32, #tpu.memory_space<vmem>>, %arg3: memref<1x16x4x128xf32, #tpu.memory_space<vmem>>, %arg4: memref<1x16x128xf32, #tpu.memory_space<vmem>>) attributes {dimension_semantics = [#tpu.dimension_semantics<parallel>, #tpu.dimension_semantics<parallel>], iteration_bounds = array<i64: 2, 1>, scalar_prefetch = 0 : i64, scratch_operands = 0 : i64, tpu.core_type = #tpu.core_type<tc>, window_params = [{transform_indices = @transform_0, window_bounds = array<i64: 16, 4, 128>}, {transform_indices = @transform_1, window_bounds = array<i64: 1, 16, 4, 128>}, {transform_indices = @transform_2, window_bounds = array<i64: 1, 16, 128>}]} {
    %c0 = arith.constant 0 : index
    %c0_0 = arith.constant 0 : index
    %c0_1 = arith.constant 0 : index
    %0 = vector.load %arg2[%c0, %c0_0, %c0_1] : memref<16x4x128xf32, #tpu.memory_space<vmem>>, vector<16x1x128xf32>
    %1 = vector.shape_cast %0 : vector<16x1x128xf32> to vector<16x128xf32>
    %c0_2 = arith.constant 0 : index
    %c0_3 = arith.constant 0 : index
    %c0_4 = arith.constant 0 : index
    %c0_5 = arith.constant 0 : index
    %2 = vector.load %arg3[%c0_2, %c0_3, %c0_4, %c0_5] : memref<1x16x4x128xf32, #tpu.memory_space<vmem>>, vector<1x16x1x128xf32>
    %3 = vector.shape_cast %2 : vector<1x16x1x128xf32> to vector<16x128xf32>
    %4 = arith.mulf %1, %3 : vector<16x128xf32>
    %c0_6 = arith.constant 0 : index
    %c1 = arith.constant 1 : index
    %c0_7 = arith.constant 0 : index
    %5 = vector.load %arg2[%c0_6, %c1, %c0_7] : memref<16x4x128xf32, #tpu.memory_space<vmem>>, vector<16x1x128xf32>
    %6 = vector.shape_cast %5 : vector<16x1x128xf32> to vector<16x128xf32>
    %c0_8 = arith.constant 0 : index
    %c0_9 = arith.constant 0 : index
    %c1_10 = arith.constant 1 : index
    %c0_11 = arith.constant 0 : index
    %7 = vector.load %arg3[%c0_8, %c0_9, %c1_10, %c0_11] : memref<1x16x4x128xf32, #tpu.memory_space<vmem>>, vector<1x16x1x128xf32>
    %8 = vector.shape_cast %7 : vector<1x16x1x128xf32> to vector<16x128xf32>
    %9 = arith.mulf %6, %8 : vector<16x128xf32>
    %10 = arith.addf %4, %9 : vector<16x128xf32>
    %c0_12 = arith.constant 0 : index
    %c2 = arith.constant 2 : index
    %c0_13 = arith.constant 0 : index
    %11 = vector.load %arg2[%c0_12, %c2, %c0_13] : memref<16x4x128xf32, #tpu.memory_space<vmem>>, vector<16x1x128xf32>
    %12 = vector.shape_cast %11 : vector<16x1x128xf32> to vector<16x128xf32>
    %c0_14 = arith.constant 0 : index
    %c0_15 = arith.constant 0 : index
    %c2_16 = arith.constant 2 : index
    %c0_17 = arith.constant 0 : index
    %13 = vector.load %arg3[%c0_14, %c0_15, %c2_16, %c0_17] : memref<1x16x4x128xf32, #tpu.memory_space<vmem>>, vector<1x16x1x128xf32>
    %14 = vector.shape_cast %13 : vector<1x16x1x128xf32> to vector<16x128xf32>
    %15 = arith.mulf %12, %14 : vector<16x128xf32>
    %16 = arith.addf %10, %15 : vector<16x128xf32>
    %c0_18 = arith.constant 0 : index
    %c3 = arith.constant 3 : index
    %c0_19 = arith.constant 0 : index
    %17 = vector.load %arg2[%c0_18, %c3, %c0_19] : memref<16x4x128xf32, #tpu.memory_space<vmem>>, vector<16x1x128xf32>
    %18 = vector.shape_cast %17 : vector<16x1x128xf32> to vector<16x128xf32>
    %c0_20 = arith.constant 0 : index
    %c0_21 = arith.constant 0 : index
    %c3_22 = arith.constant 3 : index
    %c0_23 = arith.constant 0 : index
    %19 = vector.load %arg3[%c0_20, %c0_21, %c3_22, %c0_23] : memref<1x16x4x128xf32, #tpu.memory_space<vmem>>, vector<1x16x1x128xf32>
    %20 = vector.shape_cast %19 : vector<1x16x1x128xf32> to vector<16x128xf32>
    %21 = arith.mulf %18, %20 : vector<16x128xf32>
    %22 = arith.addf %16, %21 : vector<16x128xf32>
    %cst = arith.constant 2.500000e-01 : f32
    %23 = vector.broadcast %cst : f32 to vector<16x128xf32>
    %24 = arith.mulf %22, %23 : vector<16x128xf32>
    %c0_24 = arith.constant 0 : index
    %c0_25 = arith.constant 0 : index
    %c0_26 = arith.constant 0 : index
    %25 = vector.load %arg4[%c0_24, %c0_25, %c0_26] : memref<1x16x128xf32, #tpu.memory_space<vmem>>, vector<1x16x128xf32>
    %26 = vector.shape_cast %25 : vector<1x16x128xf32> to vector<16x128xf32>
    %27 = vector.shape_cast %24 : vector<16x128xf32> to vector<1x16x128xf32>
    tpu.vector_store %arg4[%c0_24, %c0_25, %c0_26], %27 {strides = array<i32>} : memref<1x16x128xf32, #tpu.memory_space<vmem>>, vector<1x16x128xf32>,
    return
  }
  func.func @transform_0(%arg0: i32, %arg1: i32) -> (i32, i32, i32) {
    %c0_i32 = arith.constant 0 : i32
    %c0_i32_0 = arith.constant 0 : i32
    %c0_i32_1 = arith.constant 0 : i32
    return %c0_i32, %c0_i32_0, %arg1 : i32, i32, i32
  }
  func.func @transform_1(%arg0: i32, %arg1: i32) -> (i32, i32, i32, i32) {
    %c0_i32 = arith.constant 0 : i32
    %c0_i32_0 = arith.constant 0 : i32
    %c0_i32_1 = arith.constant 0 : i32
    return %arg0, %c0_i32, %c0_i32_0, %arg1 : i32, i32, i32, i32
  }
  func.func @transform_2(%arg0: i32, %arg1: i32) -> (i32, i32, i32) {
    %c0_i32 = arith.constant 0 : i32
    %c0_i32_0 = arith.constant 0 : i32
    return %arg0, %c0_i32, %arg1 : i32, i32, i32
  }
}

module attributes {stable_mosaic.version = 11 : i64} {
  func.func @_matmul_bn_relu_kernel(%arg0: i32, %arg1: i32, %arg2: memref<8x256xbf16, #tpu.memory_space<vmem>>, %arg3: memref<256x128xbf16, #tpu.memory_space<vmem>>, %arg4: memref<8x1xf32, #tpu.memory_space<vmem>>, %arg5: memref<8x1xf32, #tpu.memory_space<vmem>>, %arg6: memref<8x128xf32, #tpu.memory_space<vmem>>) attributes {dimension_semantics = [#tpu.dimension_semantics<parallel>, #tpu.dimension_semantics<arbitrary>], iteration_bounds = array<i64: 1, 2>, scalar_prefetch = 0 : i64, scratch_operands = 0 : i64, tpu.core_type = #tpu.core_type<tc>, window_params = [{transform_indices = @transform_0, window_bounds = array<i64: 8, 256>}, {transform_indices = @transform_1, window_bounds = array<i64: 256, 128>}, {pipeline_mode = #tpu.pipeline_mode<synchronous>, transform_indices = @transform_2, window_bounds = array<i64: 8, 1>}, {pipeline_mode = #tpu.pipeline_mode<synchronous>, transform_indices = @transform_3, window_bounds = array<i64: 8, 1>}, {transform_indices = @transform_4, window_bounds = array<i64: 8, 128>}]} {
    %c0_i32 = arith.constant 0 : i32
    %0 = arith.cmpi eq, %arg1, %c0_i32 : i32
    %1 = arith.extui %0 : i1 to i32
    %c0_i32_0 = arith.constant 0 : i32
    %2 = arith.cmpi ne, %1, %c0_i32_0 : i32
    scf.if %2 {
      %cst_9 = arith.constant 0.000000e+00 : f32
      %12 = vector.broadcast %cst_9 : f32 to vector<8x128xf32>
      %c0_10 = arith.constant 0 : index
      %c0_11 = arith.constant 0 : index
      %13 = vector.load %arg6[%c0_10, %c0_11] : memref<8x128xf32, #tpu.memory_space<vmem>>, vector<8x128xf32>
      tpu.vector_store %arg6[%c0_10, %c0_11], %12 {strides = array<i32>} : memref<8x128xf32, #tpu.memory_space<vmem>>, vector<8x128xf32>,
    } else {
    }
    %c0 = arith.constant 0 : index
    %c0_1 = arith.constant 0 : index
    %3 = vector.load %arg6[%c0, %c0_1] : memref<8x128xf32, #tpu.memory_space<vmem>>, vector<8x128xf32>
    %c0_2 = arith.constant 0 : index
    %c0_3 = arith.constant 0 : index
    %4 = vector.load %arg2[%c0_2, %c0_3] : memref<8x256xbf16, #tpu.memory_space<vmem>>, vector<8x256xbf16>
    %c0_4 = arith.constant 0 : index
    %c0_5 = arith.constant 0 : index
    %5 = vector.load %arg3[%c0_4, %c0_5] : memref<256x128xbf16, #tpu.memory_space<vmem>>, vector<256x128xbf16>
    %cst = arith.constant dense<0.000000e+00> : vector<8x128xf32>
    %6 = tpu.matmul %4, %5, %cst {dimension_numbers = #tpu.dot_dimension_numbers<[1], [0], [0], [1], [0, 0, 1, 1], [], []>} : vector<8x256xbf16>, vector<256x128xbf16>, vector<8x128xf32> -> vector<8x128xf32>
    %7 = arith.addf %3, %6 : vector<8x128xf32>
    %c0_6 = arith.constant 0 : index
    %c0_7 = arith.constant 0 : index
    %8 = vector.load %arg6[%c0_6, %c0_7] : memref<8x128xf32, #tpu.memory_space<vmem>>, vector<8x128xf32>
    tpu.vector_store %arg6[%c0_6, %c0_7], %7 {strides = array<i32>} : memref<8x128xf32, #tpu.memory_space<vmem>>, vector<8x128xf32>,
    %c1_i32 = arith.constant 1 : i32
    %9 = arith.cmpi eq, %arg1, %c1_i32 : i32
    %10 = arith.extui %9 : i1 to i32
    %c0_i32_8 = arith.constant 0 : i32
    %11 = arith.cmpi ne, %10, %c0_i32_8 : i32
    scf.if %11 {
      %c0_9 = arith.constant 0 : index
      %c0_10 = arith.constant 0 : index
      %12 = vector.load %arg6[%c0_9, %c0_10] : memref<8x128xf32, #tpu.memory_space<vmem>>, vector<8x128xf32>
      %c0_11 = arith.constant 0 : index
      %c0_12 = arith.constant 0 : index
      %13 = vector.load %arg4[%c0_11, %c0_12] : memref<8x1xf32, #tpu.memory_space<vmem>>, vector<8x1xf32>
      %14 = vector.broadcast %13 : vector<8x1xf32> to vector<8x128xf32>
      %15 = arith.mulf %12, %14 : vector<8x128xf32>
      %c0_13 = arith.constant 0 : index
      %c0_14 = arith.constant 0 : index
      %16 = vector.load %arg5[%c0_13, %c0_14] : memref<8x1xf32, #tpu.memory_space<vmem>>, vector<8x1xf32>
      %17 = vector.broadcast %16 : vector<8x1xf32> to vector<8x128xf32>
      %18 = arith.addf %15, %17 : vector<8x128xf32>
      %c0_15 = arith.constant 0 : index
      %c0_16 = arith.constant 0 : index
      %19 = vector.load %arg6[%c0_15, %c0_16] : memref<8x128xf32, #tpu.memory_space<vmem>>, vector<8x128xf32>
      tpu.vector_store %arg6[%c0_15, %c0_16], %18 {strides = array<i32>} : memref<8x128xf32, #tpu.memory_space<vmem>>, vector<8x128xf32>,
    } else {
    }
    return
  }
  func.func @transform_0(%arg0: i32, %arg1: i32) -> (i32, i32) {
    %c0_i32 = arith.constant 0 : i32
    %c0_i32_0 = arith.constant 0 : i32
    return %c0_i32, %arg1 : i32, i32
  }
  func.func @transform_1(%arg0: i32, %arg1: i32) -> (i32, i32) {
    %c0_i32 = arith.constant 0 : i32
    return %arg1, %arg0 : i32, i32
  }
  func.func @transform_2(%arg0: i32, %arg1: i32) -> (i32, i32) {
    %c0_i32 = arith.constant 0 : i32
    %c0_i32_0 = arith.constant 0 : i32
    %c0_i32_1 = arith.constant 0 : i32
    return %c0_i32, %c0_i32_0 : i32, i32
  }
  func.func @transform_3(%arg0: i32, %arg1: i32) -> (i32, i32) {
    %c0_i32 = arith.constant 0 : i32
    %c0_i32_0 = arith.constant 0 : i32
    %c0_i32_1 = arith.constant 0 : i32
    return %c0_i32, %c0_i32_0 : i32, i32
  }
  func.func @transform_4(%arg0: i32, %arg1: i32) -> (i32, i32) {
    %c0_i32 = arith.constant 0 : i32
    %c0_i32_0 = arith.constant 0 : i32
    return %c0_i32, %arg0 : i32, i32
  }
}

module attributes {stable_mosaic.version = 11 : i64} {
  func.func @_matmul_bn_relu_kernel(%arg0: i32, %arg1: i32, %arg2: memref<32x256xbf16, #tpu.memory_space<vmem>>, %arg3: memref<256x128xbf16, #tpu.memory_space<vmem>>, %arg4: memref<32x1xf32, #tpu.memory_space<vmem>>, %arg5: memref<32x1xf32, #tpu.memory_space<vmem>>, %arg6: memref<32x128xf32, #tpu.memory_space<vmem>>) attributes {dimension_semantics = [#tpu.dimension_semantics<parallel>, #tpu.dimension_semantics<arbitrary>], iteration_bounds = array<i64: 1, 4>, scalar_prefetch = 0 : i64, scratch_operands = 0 : i64, tpu.core_type = #tpu.core_type<tc>, window_params = [{transform_indices = @transform_0, window_bounds = array<i64: 32, 256>}, {transform_indices = @transform_1, window_bounds = array<i64: 256, 128>}, {pipeline_mode = #tpu.pipeline_mode<synchronous>, transform_indices = @transform_2, window_bounds = array<i64: 32, 1>}, {pipeline_mode = #tpu.pipeline_mode<synchronous>, transform_indices = @transform_3, window_bounds = array<i64: 32, 1>}, {transform_indices = @transform_4, window_bounds = array<i64: 32, 128>}]} {
    %c0_i32 = arith.constant 0 : i32
    %0 = arith.cmpi eq, %arg1, %c0_i32 : i32
    %1 = arith.extui %0 : i1 to i32
    %c0_i32_0 = arith.constant 0 : i32
    %2 = arith.cmpi ne, %1, %c0_i32_0 : i32
    scf.if %2 {
      %cst_9 = arith.constant 0.000000e+00 : f32
      %12 = vector.broadcast %cst_9 : f32 to vector<32x128xf32>
      %c0_10 = arith.constant 0 : index
      %c0_11 = arith.constant 0 : index
      %13 = vector.load %arg6[%c0_10, %c0_11] : memref<32x128xf32, #tpu.memory_space<vmem>>, vector<32x128xf32>
      tpu.vector_store %arg6[%c0_10, %c0_11], %12 {strides = array<i32>} : memref<32x128xf32, #tpu.memory_space<vmem>>, vector<32x128xf32>,
    } else {
    }
    %c0 = arith.constant 0 : index
    %c0_1 = arith.constant 0 : index
    %3 = vector.load %arg6[%c0, %c0_1] : memref<32x128xf32, #tpu.memory_space<vmem>>, vector<32x128xf32>
    %c0_2 = arith.constant 0 : index
    %c0_3 = arith.constant 0 : index
    %4 = vector.load %arg2[%c0_2, %c0_3] : memref<32x256xbf16, #tpu.memory_space<vmem>>, vector<32x256xbf16>
    %c0_4 = arith.constant 0 : index
    %c0_5 = arith.constant 0 : index
    %5 = vector.load %arg3[%c0_4, %c0_5] : memref<256x128xbf16, #tpu.memory_space<vmem>>, vector<256x128xbf16>
    %cst = arith.constant dense<0.000000e+00> : vector<32x128xf32>
    %6 = tpu.matmul %4, %5, %cst {dimension_numbers = #tpu.dot_dimension_numbers<[1], [0], [0], [1], [0, 0, 1, 1], [], []>} : vector<32x256xbf16>, vector<256x128xbf16>, vector<32x128xf32> -> vector<32x128xf32>
    %7 = arith.addf %3, %6 : vector<32x128xf32>
    %c0_6 = arith.constant 0 : index
    %c0_7 = arith.constant 0 : index
    %8 = vector.load %arg6[%c0_6, %c0_7] : memref<32x128xf32, #tpu.memory_space<vmem>>, vector<32x128xf32>
    tpu.vector_store %arg6[%c0_6, %c0_7], %7 {strides = array<i32>} : memref<32x128xf32, #tpu.memory_space<vmem>>, vector<32x128xf32>,
    %c3_i32 = arith.constant 3 : i32
    %9 = arith.cmpi eq, %arg1, %c3_i32 : i32
    %10 = arith.extui %9 : i1 to i32
    %c0_i32_8 = arith.constant 0 : i32
    %11 = arith.cmpi ne, %10, %c0_i32_8 : i32
    scf.if %11 {
      %c0_9 = arith.constant 0 : index
      %c0_10 = arith.constant 0 : index
      %12 = vector.load %arg6[%c0_9, %c0_10] : memref<32x128xf32, #tpu.memory_space<vmem>>, vector<32x128xf32>
      %c0_11 = arith.constant 0 : index
      %c0_12 = arith.constant 0 : index
      %13 = vector.load %arg4[%c0_11, %c0_12] : memref<32x1xf32, #tpu.memory_space<vmem>>, vector<32x1xf32>
      %14 = vector.broadcast %13 : vector<32x1xf32> to vector<32x128xf32>
      %15 = arith.mulf %12, %14 : vector<32x128xf32>
      %c0_13 = arith.constant 0 : index
      %c0_14 = arith.constant 0 : index
      %16 = vector.load %arg5[%c0_13, %c0_14] : memref<32x1xf32, #tpu.memory_space<vmem>>, vector<32x1xf32>
      %17 = vector.broadcast %16 : vector<32x1xf32> to vector<32x128xf32>
      %18 = arith.addf %15, %17 : vector<32x128xf32>
      %cst_15 = arith.constant 0.000000e+00 : f32
      %19 = vector.broadcast %cst_15 : f32 to vector<32x128xf32>
      %20 = arith.maximumf %18, %19 : vector<32x128xf32>
      %c0_16 = arith.constant 0 : index
      %c0_17 = arith.constant 0 : index
      %21 = vector.load %arg6[%c0_16, %c0_17] : memref<32x128xf32, #tpu.memory_space<vmem>>, vector<32x128xf32>
      tpu.vector_store %arg6[%c0_16, %c0_17], %20 {strides = array<i32>} : memref<32x128xf32, #tpu.memory_space<vmem>>, vector<32x128xf32>,
    } else {
    }
    return
  }
  func.func @transform_0(%arg0: i32, %arg1: i32) -> (i32, i32) {
    %c0_i32 = arith.constant 0 : i32
    %c0_i32_0 = arith.constant 0 : i32
    return %c0_i32, %arg1 : i32, i32
  }
  func.func @transform_1(%arg0: i32, %arg1: i32) -> (i32, i32) {
    %c0_i32 = arith.constant 0 : i32
    return %arg1, %arg0 : i32, i32
  }
  func.func @transform_2(%arg0: i32, %arg1: i32) -> (i32, i32) {
    %c0_i32 = arith.constant 0 : i32
    %c0_i32_0 = arith.constant 0 : i32
    %c0_i32_1 = arith.constant 0 : i32
    return %c0_i32, %c0_i32_0 : i32, i32
  }
  func.func @transform_3(%arg0: i32, %arg1: i32) -> (i32, i32) {
    %c0_i32 = arith.constant 0 : i32
    %c0_i32_0 = arith.constant 0 : i32
    %c0_i32_1 = arith.constant 0 : i32
    return %c0_i32, %c0_i32_0 : i32, i32
  }
  func.func @transform_4(%arg0: i32, %arg1: i32) -> (i32, i32) {
    %c0_i32 = arith.constant 0 : i32
    %c0_i32_0 = arith.constant 0 : i32
    return %c0_i32, %arg0 : i32, i32
  }
}

module attributes {stable_mosaic.version = 11 : i64} {
  func.func @_matmul_bn_relu_kernel(%arg0: i32, %arg1: i32, %arg2: memref<32x256xbf16, #tpu.memory_space<vmem>>, %arg3: memref<256x128xbf16, #tpu.memory_space<vmem>>, %arg4: memref<32x1xf32, #tpu.memory_space<vmem>>, %arg5: memref<32x1xf32, #tpu.memory_space<vmem>>, %arg6: memref<32x128xf32, #tpu.memory_space<vmem>>) attributes {dimension_semantics = [#tpu.dimension_semantics<parallel>, #tpu.dimension_semantics<arbitrary>], iteration_bounds = array<i64: 1, 11>, scalar_prefetch = 0 : i64, scratch_operands = 0 : i64, tpu.core_type = #tpu.core_type<tc>, window_params = [{transform_indices = @transform_0, window_bounds = array<i64: 32, 256>}, {transform_indices = @transform_1, window_bounds = array<i64: 256, 128>}, {pipeline_mode = #tpu.pipeline_mode<synchronous>, transform_indices = @transform_2, window_bounds = array<i64: 32, 1>}, {pipeline_mode = #tpu.pipeline_mode<synchronous>, transform_indices = @transform_3, window_bounds = array<i64: 32, 1>}, {transform_indices = @transform_4, window_bounds = array<i64: 32, 128>}]} {
    %c0_i32 = arith.constant 0 : i32
    %0 = arith.cmpi eq, %arg1, %c0_i32 : i32
    %1 = arith.extui %0 : i1 to i32
    %c0_i32_0 = arith.constant 0 : i32
    %2 = arith.cmpi ne, %1, %c0_i32_0 : i32
    scf.if %2 {
      %cst_9 = arith.constant 0.000000e+00 : f32
      %12 = vector.broadcast %cst_9 : f32 to vector<32x128xf32>
      %c0_10 = arith.constant 0 : index
      %c0_11 = arith.constant 0 : index
      %13 = vector.load %arg6[%c0_10, %c0_11] : memref<32x128xf32, #tpu.memory_space<vmem>>, vector<32x128xf32>
      tpu.vector_store %arg6[%c0_10, %c0_11], %12 {strides = array<i32>} : memref<32x128xf32, #tpu.memory_space<vmem>>, vector<32x128xf32>,
    } else {
    }
    %c0 = arith.constant 0 : index
    %c0_1 = arith.constant 0 : index
    %3 = vector.load %arg6[%c0, %c0_1] : memref<32x128xf32, #tpu.memory_space<vmem>>, vector<32x128xf32>
    %c0_2 = arith.constant 0 : index
    %c0_3 = arith.constant 0 : index
    %4 = vector.load %arg2[%c0_2, %c0_3] : memref<32x256xbf16, #tpu.memory_space<vmem>>, vector<32x256xbf16>
    %c0_4 = arith.constant 0 : index
    %c0_5 = arith.constant 0 : index
    %5 = vector.load %arg3[%c0_4, %c0_5] : memref<256x128xbf16, #tpu.memory_space<vmem>>, vector<256x128xbf16>
    %cst = arith.constant dense<0.000000e+00> : vector<32x128xf32>
    %6 = tpu.matmul %4, %5, %cst {dimension_numbers = #tpu.dot_dimension_numbers<[1], [0], [0], [1], [0, 0, 1, 1], [], []>} : vector<32x256xbf16>, vector<256x128xbf16>, vector<32x128xf32> -> vector<32x128xf32>
    %7 = arith.addf %3, %6 : vector<32x128xf32>
    %c0_6 = arith.constant 0 : index
    %c0_7 = arith.constant 0 : index
    %8 = vector.load %arg6[%c0_6, %c0_7] : memref<32x128xf32, #tpu.memory_space<vmem>>, vector<32x128xf32>
    tpu.vector_store %arg6[%c0_6, %c0_7], %7 {strides = array<i32>} : memref<32x128xf32, #tpu.memory_space<vmem>>, vector<32x128xf32>,
    %c10_i32 = arith.constant 10 : i32
    %9 = arith.cmpi eq, %arg1, %c10_i32 : i32
    %10 = arith.extui %9 : i1 to i32
    %c0_i32_8 = arith.constant 0 : i32
    %11 = arith.cmpi ne, %10, %c0_i32_8 : i32
    scf.if %11 {
      %c0_9 = arith.constant 0 : index
      %c0_10 = arith.constant 0 : index
      %12 = vector.load %arg6[%c0_9, %c0_10] : memref<32x128xf32, #tpu.memory_space<vmem>>, vector<32x128xf32>
      %c0_11 = arith.constant 0 : index
      %c0_12 = arith.constant 0 : index
      %13 = vector.load %arg4[%c0_11, %c0_12] : memref<32x1xf32, #tpu.memory_space<vmem>>, vector<32x1xf32>
      %14 = vector.broadcast %13 : vector<32x1xf32> to vector<32x128xf32>
      %15 = arith.mulf %12, %14 : vector<32x128xf32>
      %c0_13 = arith.constant 0 : index
      %c0_14 = arith.constant 0 : index
      %16 = vector.load %arg5[%c0_13, %c0_14] : memref<32x1xf32, #tpu.memory_space<vmem>>, vector<32x1xf32>
      %17 = vector.broadcast %16 : vector<32x1xf32> to vector<32x128xf32>
      %18 = arith.addf %15, %17 : vector<32x128xf32>
      %cst_15 = arith.constant 0.000000e+00 : f32
      %19 = vector.broadcast %cst_15 : f32 to vector<32x128xf32>
      %20 = arith.maximumf %18, %19 : vector<32x128xf32>
      %c0_16 = arith.constant 0 : index
      %c0_17 = arith.constant 0 : index
      %21 = vector.load %arg6[%c0_16, %c0_17] : memref<32x128xf32, #tpu.memory_space<vmem>>, vector<32x128xf32>
      tpu.vector_store %arg6[%c0_16, %c0_17], %20 {strides = array<i32>} : memref<32x128xf32, #tpu.memory_space<vmem>>, vector<32x128xf32>,
    } else {
    }
    return
  }
  func.func @transform_0(%arg0: i32, %arg1: i32) -> (i32, i32) {
    %c0_i32 = arith.constant 0 : i32
    %c0_i32_0 = arith.constant 0 : i32
    return %c0_i32, %arg1 : i32, i32
  }
  func.func @transform_1(%arg0: i32, %arg1: i32) -> (i32, i32) {
    %c0_i32 = arith.constant 0 : i32
    return %arg1, %arg0 : i32, i32
  }
  func.func @transform_2(%arg0: i32, %arg1: i32) -> (i32, i32) {
    %c0_i32 = arith.constant 0 : i32
    %c0_i32_0 = arith.constant 0 : i32
    %c0_i32_1 = arith.constant 0 : i32
    return %c0_i32, %c0_i32_0 : i32, i32
  }
  func.func @transform_3(%arg0: i32, %arg1: i32) -> (i32, i32) {
    %c0_i32 = arith.constant 0 : i32
    %c0_i32_0 = arith.constant 0 : i32
    %c0_i32_1 = arith.constant 0 : i32
    return %c0_i32, %c0_i32_0 : i32, i32
  }
  func.func @transform_4(%arg0: i32, %arg1: i32) -> (i32, i32) {
    %c0_i32 = arith.constant 0 : i32
    %c0_i32_0 = arith.constant 0 : i32
    return %c0_i32, %arg0 : i32, i32
  }
}

module attributes {stable_mosaic.version = 11 : i64} {
  func.func @_matmul_bn_relu_kernel(%arg0: i32, %arg1: i32, %arg2: memref<32x256xbf16, #tpu.memory_space<vmem>>, %arg3: memref<256x128xbf16, #tpu.memory_space<vmem>>, %arg4: memref<32x1xf32, #tpu.memory_space<vmem>>, %arg5: memref<32x1xf32, #tpu.memory_space<vmem>>, %arg6: memref<32x128xf32, #tpu.memory_space<vmem>>) attributes {dimension_semantics = [#tpu.dimension_semantics<parallel>, #tpu.dimension_semantics<arbitrary>], iteration_bounds = array<i64: 1, 1>, scalar_prefetch = 0 : i64, scratch_operands = 0 : i64, tpu.core_type = #tpu.core_type<tc>, window_params = [{transform_indices = @transform_0, window_bounds = array<i64: 32, 256>}, {transform_indices = @transform_1, window_bounds = array<i64: 256, 128>}, {pipeline_mode = #tpu.pipeline_mode<synchronous>, transform_indices = @transform_2, window_bounds = array<i64: 32, 1>}, {pipeline_mode = #tpu.pipeline_mode<synchronous>, transform_indices = @transform_3, window_bounds = array<i64: 32, 1>}, {transform_indices = @transform_4, window_bounds = array<i64: 32, 128>}]} {
    %c0_i32 = arith.constant 0 : i32
    %0 = arith.cmpi eq, %arg1, %c0_i32 : i32
    %1 = arith.extui %0 : i1 to i32
    %c0_i32_0 = arith.constant 0 : i32
    %2 = arith.cmpi ne, %1, %c0_i32_0 : i32
    scf.if %2 {
      %cst_10 = arith.constant 0.000000e+00 : f32
      %12 = vector.broadcast %cst_10 : f32 to vector<32x128xf32>
      %c0_11 = arith.constant 0 : index
      %c0_12 = arith.constant 0 : index
      %13 = vector.load %arg6[%c0_11, %c0_12] : memref<32x128xf32, #tpu.memory_space<vmem>>, vector<32x128xf32>
      tpu.vector_store %arg6[%c0_11, %c0_12], %12 {strides = array<i32>} : memref<32x128xf32, #tpu.memory_space<vmem>>, vector<32x128xf32>,
    } else {
    }
    %c0 = arith.constant 0 : index
    %c0_1 = arith.constant 0 : index
    %3 = vector.load %arg6[%c0, %c0_1] : memref<32x128xf32, #tpu.memory_space<vmem>>, vector<32x128xf32>
    %c0_2 = arith.constant 0 : index
    %c0_3 = arith.constant 0 : index
    %4 = vector.load %arg2[%c0_2, %c0_3] : memref<32x256xbf16, #tpu.memory_space<vmem>>, vector<32x256xbf16>
    %c0_4 = arith.constant 0 : index
    %c0_5 = arith.constant 0 : index
    %5 = vector.load %arg3[%c0_4, %c0_5] : memref<256x128xbf16, #tpu.memory_space<vmem>>, vector<256x128xbf16>
    %cst = arith.constant dense<0.000000e+00> : vector<32x128xf32>
    %6 = tpu.matmul %4, %5, %cst {dimension_numbers = #tpu.dot_dimension_numbers<[1], [0], [0], [1], [0, 0, 1, 1], [], []>} : vector<32x256xbf16>, vector<256x128xbf16>, vector<32x128xf32> -> vector<32x128xf32>
    %7 = arith.addf %3, %6 : vector<32x128xf32>
    %c0_6 = arith.constant 0 : index
    %c0_7 = arith.constant 0 : index
    %8 = vector.load %arg6[%c0_6, %c0_7] : memref<32x128xf32, #tpu.memory_space<vmem>>, vector<32x128xf32>
    tpu.vector_store %arg6[%c0_6, %c0_7], %7 {strides = array<i32>} : memref<32x128xf32, #tpu.memory_space<vmem>>, vector<32x128xf32>,
    %c0_i32_8 = arith.constant 0 : i32
    %9 = arith.cmpi eq, %arg1, %c0_i32_8 : i32
    %10 = arith.extui %9 : i1 to i32
    %c0_i32_9 = arith.constant 0 : i32
    %11 = arith.cmpi ne, %10, %c0_i32_9 : i32
    scf.if %11 {
      %c0_10 = arith.constant 0 : index
      %c0_11 = arith.constant 0 : index
      %12 = vector.load %arg6[%c0_10, %c0_11] : memref<32x128xf32, #tpu.memory_space<vmem>>, vector<32x128xf32>
      %c0_12 = arith.constant 0 : index
      %c0_13 = arith.constant 0 : index
      %13 = vector.load %arg4[%c0_12, %c0_13] : memref<32x1xf32, #tpu.memory_space<vmem>>, vector<32x1xf32>
      %14 = vector.broadcast %13 : vector<32x1xf32> to vector<32x128xf32>
      %15 = arith.mulf %12, %14 : vector<32x128xf32>
      %c0_14 = arith.constant 0 : index
      %c0_15 = arith.constant 0 : index
      %16 = vector.load %arg5[%c0_14, %c0_15] : memref<32x1xf32, #tpu.memory_space<vmem>>, vector<32x1xf32>
      %17 = vector.broadcast %16 : vector<32x1xf32> to vector<32x128xf32>
      %18 = arith.addf %15, %17 : vector<32x128xf32>
      %c0_16 = arith.constant 0 : index
      %c0_17 = arith.constant 0 : index
      %19 = vector.load %arg6[%c0_16, %c0_17] : memref<32x128xf32, #tpu.memory_space<vmem>>, vector<32x128xf32>
      tpu.vector_store %arg6[%c0_16, %c0_17], %18 {strides = array<i32>} : memref<32x128xf32, #tpu.memory_space<vmem>>, vector<32x128xf32>,
    } else {
    }
    return
  }
  func.func @transform_0(%arg0: i32, %arg1: i32) -> (i32, i32) {
    %c0_i32 = arith.constant 0 : i32
    %c0_i32_0 = arith.constant 0 : i32
    return %c0_i32, %arg1 : i32, i32
  }
  func.func @transform_1(%arg0: i32, %arg1: i32) -> (i32, i32) {
    %c0_i32 = arith.constant 0 : i32
    return %arg1, %arg0 : i32, i32
  }
  func.func @transform_2(%arg0: i32, %arg1: i32) -> (i32, i32) {
    %c0_i32 = arith.constant 0 : i32
    %c0_i32_0 = arith.constant 0 : i32
    %c0_i32_1 = arith.constant 0 : i32
    return %c0_i32, %c0_i32_0 : i32, i32
  }
  func.func @transform_3(%arg0: i32, %arg1: i32) -> (i32, i32) {
    %c0_i32 = arith.constant 0 : i32
    %c0_i32_0 = arith.constant 0 : i32
    %c0_i32_1 = arith.constant 0 : i32
    return %c0_i32, %c0_i32_0 : i32, i32
  }
  func.func @transform_4(%arg0: i32, %arg1: i32) -> (i32, i32) {
    %c0_i32 = arith.constant 0 : i32
    %c0_i32_0 = arith.constant 0 : i32
    return %c0_i32, %arg0 : i32, i32
  }
}

module attributes {stable_mosaic.version = 11 : i64} {
  func.func @_matmul_bn_relu_kernel(%arg0: i32, %arg1: i32, %arg2: memref<32x128xbf16, #tpu.memory_space<vmem>>, %arg3: memref<128x128xbf16, #tpu.memory_space<vmem>>, %arg4: memref<32x1xf32, #tpu.memory_space<vmem>>, %arg5: memref<32x1xf32, #tpu.memory_space<vmem>>, %arg6: memref<32x128xf32, #tpu.memory_space<vmem>>) attributes {dimension_semantics = [#tpu.dimension_semantics<parallel>, #tpu.dimension_semantics<arbitrary>], iteration_bounds = array<i64: 1, 1>, scalar_prefetch = 0 : i64, scratch_operands = 0 : i64, tpu.core_type = #tpu.core_type<tc>, window_params = [{transform_indices = @transform_0, window_bounds = array<i64: 32, 128>}, {transform_indices = @transform_1, window_bounds = array<i64: 128, 128>}, {pipeline_mode = #tpu.pipeline_mode<synchronous>, transform_indices = @transform_2, window_bounds = array<i64: 32, 1>}, {pipeline_mode = #tpu.pipeline_mode<synchronous>, transform_indices = @transform_3, window_bounds = array<i64: 32, 1>}, {transform_indices = @transform_4, window_bounds = array<i64: 32, 128>}]} {
    %c0_i32 = arith.constant 0 : i32
    %0 = arith.cmpi eq, %arg1, %c0_i32 : i32
    %1 = arith.extui %0 : i1 to i32
    %c0_i32_0 = arith.constant 0 : i32
    %2 = arith.cmpi ne, %1, %c0_i32_0 : i32
    scf.if %2 {
      %cst_10 = arith.constant 0.000000e+00 : f32
      %12 = vector.broadcast %cst_10 : f32 to vector<32x128xf32>
      %c0_11 = arith.constant 0 : index
      %c0_12 = arith.constant 0 : index
      %13 = vector.load %arg6[%c0_11, %c0_12] : memref<32x128xf32, #tpu.memory_space<vmem>>, vector<32x128xf32>
      tpu.vector_store %arg6[%c0_11, %c0_12], %12 {strides = array<i32>} : memref<32x128xf32, #tpu.memory_space<vmem>>, vector<32x128xf32>,
    } else {
    }
    %c0 = arith.constant 0 : index
    %c0_1 = arith.constant 0 : index
    %3 = vector.load %arg6[%c0, %c0_1] : memref<32x128xf32, #tpu.memory_space<vmem>>, vector<32x128xf32>
    %c0_2 = arith.constant 0 : index
    %c0_3 = arith.constant 0 : index
    %4 = vector.load %arg2[%c0_2, %c0_3] : memref<32x128xbf16, #tpu.memory_space<vmem>>, vector<32x128xbf16>
    %c0_4 = arith.constant 0 : index
    %c0_5 = arith.constant 0 : index
    %5 = vector.load %arg3[%c0_4, %c0_5] : memref<128x128xbf16, #tpu.memory_space<vmem>>, vector<128x128xbf16>
    %cst = arith.constant dense<0.000000e+00> : vector<32x128xf32>
    %6 = tpu.matmul %4, %5, %cst {dimension_numbers = #tpu.dot_dimension_numbers<[1], [0], [0], [1], [0, 0, 1, 1], [], []>} : vector<32x128xbf16>, vector<128x128xbf16>, vector<32x128xf32> -> vector<32x128xf32>
    %7 = arith.addf %3, %6 : vector<32x128xf32>
    %c0_6 = arith.constant 0 : index
    %c0_7 = arith.constant 0 : index
    %8 = vector.load %arg6[%c0_6, %c0_7] : memref<32x128xf32, #tpu.memory_space<vmem>>, vector<32x128xf32>
    tpu.vector_store %arg6[%c0_6, %c0_7], %7 {strides = array<i32>} : memref<32x128xf32, #tpu.memory_space<vmem>>, vector<32x128xf32>,
    %c0_i32_8 = arith.constant 0 : i32
    %9 = arith.cmpi eq, %arg1, %c0_i32_8 : i32
    %10 = arith.extui %9 : i1 to i32
    %c0_i32_9 = arith.constant 0 : i32
    %11 = arith.cmpi ne, %10, %c0_i32_9 : i32
    scf.if %11 {
      %c0_10 = arith.constant 0 : index
      %c0_11 = arith.constant 0 : index
      %12 = vector.load %arg6[%c0_10, %c0_11] : memref<32x128xf32, #tpu.memory_space<vmem>>, vector<32x128xf32>
      %c0_12 = arith.constant 0 : index
      %c0_13 = arith.constant 0 : index
      %13 = vector.load %arg4[%c0_12, %c0_13] : memref<32x1xf32, #tpu.memory_space<vmem>>, vector<32x1xf32>
      %14 = vector.broadcast %13 : vector<32x1xf32> to vector<32x128xf32>
      %15 = arith.mulf %12, %14 : vector<32x128xf32>
      %c0_14 = arith.constant 0 : index
      %c0_15 = arith.constant 0 : index
      %16 = vector.load %arg5[%c0_14, %c0_15] : memref<32x1xf32, #tpu.memory_space<vmem>>, vector<32x1xf32>
      %17 = vector.broadcast %16 : vector<32x1xf32> to vector<32x128xf32>
      %18 = arith.addf %15, %17 : vector<32x128xf32>
      %c0_16 = arith.constant 0 : index
      %c0_17 = arith.constant 0 : index
      %19 = vector.load %arg6[%c0_16, %c0_17] : memref<32x128xf32, #tpu.memory_space<vmem>>, vector<32x128xf32>
      tpu.vector_store %arg6[%c0_16, %c0_17], %18 {strides = array<i32>} : memref<32x128xf32, #tpu.memory_space<vmem>>, vector<32x128xf32>,
    } else {
    }
    return
  }
  func.func @transform_0(%arg0: i32, %arg1: i32) -> (i32, i32) {
    %c0_i32 = arith.constant 0 : i32
    %c0_i32_0 = arith.constant 0 : i32
    return %c0_i32, %arg1 : i32, i32
  }
  func.func @transform_1(%arg0: i32, %arg1: i32) -> (i32, i32) {
    %c0_i32 = arith.constant 0 : i32
    return %arg1, %arg0 : i32, i32
  }
  func.func @transform_2(%arg0: i32, %arg1: i32) -> (i32, i32) {
    %c0_i32 = arith.constant 0 : i32
    %c0_i32_0 = arith.constant 0 : i32
    %c0_i32_1 = arith.constant 0 : i32
    return %c0_i32, %c0_i32_0 : i32, i32
  }
  func.func @transform_3(%arg0: i32, %arg1: i32) -> (i32, i32) {
    %c0_i32 = arith.constant 0 : i32
    %c0_i32_0 = arith.constant 0 : i32
    %c0_i32_1 = arith.constant 0 : i32
    return %c0_i32, %c0_i32_0 : i32, i32
  }
  func.func @transform_4(%arg0: i32, %arg1: i32) -> (i32, i32) {
    %c0_i32 = arith.constant 0 : i32
    %c0_i32_0 = arith.constant 0 : i32
    return %c0_i32, %arg0 : i32, i32
  }
}

module attributes {stable_mosaic.version = 11 : i64} {
  func.func @_matmul_bn_relu_kernel(%arg0: i32, %arg1: i32, %arg2: memref<8x256xbf16, #tpu.memory_space<vmem>>, %arg3: memref<256x128xbf16, #tpu.memory_space<vmem>>, %arg4: memref<8x1xf32, #tpu.memory_space<vmem>>, %arg5: memref<8x1xf32, #tpu.memory_space<vmem>>, %arg6: memref<8x128xf32, #tpu.memory_space<vmem>>) attributes {dimension_semantics = [#tpu.dimension_semantics<parallel>, #tpu.dimension_semantics<arbitrary>], iteration_bounds = array<i64: 1, 4>, scalar_prefetch = 0 : i64, scratch_operands = 0 : i64, tpu.core_type = #tpu.core_type<tc>, window_params = [{transform_indices = @transform_0, window_bounds = array<i64: 8, 256>}, {transform_indices = @transform_1, window_bounds = array<i64: 256, 128>}, {pipeline_mode = #tpu.pipeline_mode<synchronous>, transform_indices = @transform_2, window_bounds = array<i64: 8, 1>}, {pipeline_mode = #tpu.pipeline_mode<synchronous>, transform_indices = @transform_3, window_bounds = array<i64: 8, 1>}, {transform_indices = @transform_4, window_bounds = array<i64: 8, 128>}]} {
    %c0_i32 = arith.constant 0 : i32
    %0 = arith.cmpi eq, %arg1, %c0_i32 : i32
    %1 = arith.extui %0 : i1 to i32
    %c0_i32_0 = arith.constant 0 : i32
    %2 = arith.cmpi ne, %1, %c0_i32_0 : i32
    scf.if %2 {
      %cst_9 = arith.constant 0.000000e+00 : f32
      %12 = vector.broadcast %cst_9 : f32 to vector<8x128xf32>
      %c0_10 = arith.constant 0 : index
      %c0_11 = arith.constant 0 : index
      %13 = vector.load %arg6[%c0_10, %c0_11] : memref<8x128xf32, #tpu.memory_space<vmem>>, vector<8x128xf32>
      tpu.vector_store %arg6[%c0_10, %c0_11], %12 {strides = array<i32>} : memref<8x128xf32, #tpu.memory_space<vmem>>, vector<8x128xf32>,
    } else {
    }
    %c0 = arith.constant 0 : index
    %c0_1 = arith.constant 0 : index
    %3 = vector.load %arg6[%c0, %c0_1] : memref<8x128xf32, #tpu.memory_space<vmem>>, vector<8x128xf32>
    %c0_2 = arith.constant 0 : index
    %c0_3 = arith.constant 0 : index
    %4 = vector.load %arg2[%c0_2, %c0_3] : memref<8x256xbf16, #tpu.memory_space<vmem>>, vector<8x256xbf16>
    %c0_4 = arith.constant 0 : index
    %c0_5 = arith.constant 0 : index
    %5 = vector.load %arg3[%c0_4, %c0_5] : memref<256x128xbf16, #tpu.memory_space<vmem>>, vector<256x128xbf16>
    %cst = arith.constant dense<0.000000e+00> : vector<8x128xf32>
    %6 = tpu.matmul %4, %5, %cst {dimension_numbers = #tpu.dot_dimension_numbers<[1], [0], [0], [1], [0, 0, 1, 1], [], []>} : vector<8x256xbf16>, vector<256x128xbf16>, vector<8x128xf32> -> vector<8x128xf32>
    %7 = arith.addf %3, %6 : vector<8x128xf32>
    %c0_6 = arith.constant 0 : index
    %c0_7 = arith.constant 0 : index
    %8 = vector.load %arg6[%c0_6, %c0_7] : memref<8x128xf32, #tpu.memory_space<vmem>>, vector<8x128xf32>
    tpu.vector_store %arg6[%c0_6, %c0_7], %7 {strides = array<i32>} : memref<8x128xf32, #tpu.memory_space<vmem>>, vector<8x128xf32>,
    %c3_i32 = arith.constant 3 : i32
    %9 = arith.cmpi eq, %arg1, %c3_i32 : i32
    %10 = arith.extui %9 : i1 to i32
    %c0_i32_8 = arith.constant 0 : i32
    %11 = arith.cmpi ne, %10, %c0_i32_8 : i32
    scf.if %11 {
      %c0_9 = arith.constant 0 : index
      %c0_10 = arith.constant 0 : index
      %12 = vector.load %arg6[%c0_9, %c0_10] : memref<8x128xf32, #tpu.memory_space<vmem>>, vector<8x128xf32>
      %c0_11 = arith.constant 0 : index
      %c0_12 = arith.constant 0 : index
      %13 = vector.load %arg4[%c0_11, %c0_12] : memref<8x1xf32, #tpu.memory_space<vmem>>, vector<8x1xf32>
      %14 = vector.broadcast %13 : vector<8x1xf32> to vector<8x128xf32>
      %15 = arith.mulf %12, %14 : vector<8x128xf32>
      %c0_13 = arith.constant 0 : index
      %c0_14 = arith.constant 0 : index
      %16 = vector.load %arg5[%c0_13, %c0_14] : memref<8x1xf32, #tpu.memory_space<vmem>>, vector<8x1xf32>
      %17 = vector.broadcast %16 : vector<8x1xf32> to vector<8x128xf32>
      %18 = arith.addf %15, %17 : vector<8x128xf32>
      %c0_15 = arith.constant 0 : index
      %c0_16 = arith.constant 0 : index
      %19 = vector.load %arg6[%c0_15, %c0_16] : memref<8x128xf32, #tpu.memory_space<vmem>>, vector<8x128xf32>
      tpu.vector_store %arg6[%c0_15, %c0_16], %18 {strides = array<i32>} : memref<8x128xf32, #tpu.memory_space<vmem>>, vector<8x128xf32>,
    } else {
    }
    return
  }
  func.func @transform_0(%arg0: i32, %arg1: i32) -> (i32, i32) {
    %c0_i32 = arith.constant 0 : i32
    %c0_i32_0 = arith.constant 0 : i32
    return %c0_i32, %arg1 : i32, i32
  }
  func.func @transform_1(%arg0: i32, %arg1: i32) -> (i32, i32) {
    %c0_i32 = arith.constant 0 : i32
    return %arg1, %arg0 : i32, i32
  }
  func.func @transform_2(%arg0: i32, %arg1: i32) -> (i32, i32) {
    %c0_i32 = arith.constant 0 : i32
    %c0_i32_0 = arith.constant 0 : i32
    %c0_i32_1 = arith.constant 0 : i32
    return %c0_i32, %c0_i32_0 : i32, i32
  }
  func.func @transform_3(%arg0: i32, %arg1: i32) -> (i32, i32) {
    %c0_i32 = arith.constant 0 : i32
    %c0_i32_0 = arith.constant 0 : i32
    %c0_i32_1 = arith.constant 0 : i32
    return %c0_i32, %c0_i32_0 : i32, i32
  }
  func.func @transform_4(%arg0: i32, %arg1: i32) -> (i32, i32) {
    %c0_i32 = arith.constant 0 : i32
    %c0_i32_0 = arith.constant 0 : i32
    return %c0_i32, %arg0 : i32, i32
  }
}

module attributes {stable_mosaic.version = 11 : i64} {
  func.func @_disp_regress_kernel(%arg0: i32, %arg1: i32, %arg2: memref<1x8x8x16xf32, #tpu.memory_space<vmem>>, %arg3: memref<8x1x1xf32, #tpu.memory_space<vmem>>, %arg4: memref<1x8x16xf32, #tpu.memory_space<vmem>>) attributes {dimension_semantics = [#tpu.dimension_semantics<parallel>, #tpu.dimension_semantics<parallel>], iteration_bounds = array<i64: 2, 2>, scalar_prefetch = 0 : i64, scratch_operands = 0 : i64, tpu.core_type = #tpu.core_type<tc>, window_params = [{transform_indices = @transform_0, window_bounds = array<i64: 1, 8, 8, 16>}, {pipeline_mode = #tpu.pipeline_mode<synchronous>, transform_indices = @transform_1, window_bounds = array<i64: 8, 1, 1>}, {transform_indices = @transform_2, window_bounds = array<i64: 1, 8, 16>}]} {
    %c0 = arith.constant 0 : index
    %c0_0 = arith.constant 0 : index
    %c0_1 = arith.constant 0 : index
    %c0_2 = arith.constant 0 : index
    %0 = vector.load %arg2[%c0, %c0_0, %c0_1, %c0_2] : memref<1x8x8x16xf32, #tpu.memory_space<vmem>>, vector<1x8x8x16xf32>
    %1 = vector.shape_cast %0 : vector<1x8x8x16xf32> to vector<8x8x16xf32>
    %cst = arith.constant dense<0xFF800000> : vector<8x16xf32>
    %2 = vector.multi_reduction <maximumf>, %1, %cst [0] : vector<8x8x16xf32> to vector<8x16xf32>
    %3 = vector.shape_cast %2 : vector<8x16xf32> to vector<1x8x16xf32>
    %4 = vector.broadcast %3 : vector<1x8x16xf32> to vector<8x8x16xf32>
    %5 = arith.subf %1, %4 : vector<8x8x16xf32>
    %6 = math.exp %5 : vector<8x8x16xf32>
    %cst_3 = arith.constant dense<0.000000e+00> : vector<8x16xf32>
    %7 = vector.multi_reduction <add>, %6, %cst_3 [0] : vector<8x8x16xf32> to vector<8x16xf32>
    %c0_4 = arith.constant 0 : index
    %c0_5 = arith.constant 0 : index
    %c0_6 = arith.constant 0 : index
    %8 = vector.load %arg3[%c0_4, %c0_5, %c0_6] : memref<8x1x1xf32, #tpu.memory_space<vmem>>, vector<8x1x1xf32>
    %9 = vector.broadcast %8 : vector<8x1x1xf32> to vector<8x8x16xf32>
    %10 = arith.mulf %6, %9 : vector<8x8x16xf32>
    %cst_7 = arith.constant dense<0.000000e+00> : vector<8x16xf32>
    %11 = vector.multi_reduction <add>, %10, %cst_7 [0] : vector<8x8x16xf32> to vector<8x16xf32>
    %12 = tpu.reciprocal %7 {approx = true} : vector<8x16xf32> -> vector<8x16xf32>
    %13 = arith.mulf %11, %12 : vector<8x16xf32>
    %c0_8 = arith.constant 0 : index
    %c0_9 = arith.constant 0 : index
    %c0_10 = arith.constant 0 : index
    %14 = vector.load %arg4[%c0_8, %c0_9, %c0_10] : memref<1x8x16xf32, #tpu.memory_space<vmem>>, vector<1x8x16xf32>
    %15 = vector.shape_cast %14 : vector<1x8x16xf32> to vector<8x16xf32>
    %16 = vector.shape_cast %13 : vector<8x16xf32> to vector<1x8x16xf32>
    tpu.vector_store %arg4[%c0_8, %c0_9, %c0_10], %16 {strides = array<i32>} : memref<1x8x16xf32, #tpu.memory_space<vmem>>, vector<1x8x16xf32>,
    return
  }
  func.func @transform_0(%arg0: i32, %arg1: i32) -> (i32, i32, i32, i32) {
    %c0_i32 = arith.constant 0 : i32
    %c0_i32_0 = arith.constant 0 : i32
    %c0_i32_1 = arith.constant 0 : i32
    return %arg0, %c0_i32, %arg1, %c0_i32_0 : i32, i32, i32, i32
  }
  func.func @transform_1(%arg0: i32, %arg1: i32) -> (i32, i32, i32) {
    %c0_i32 = arith.constant 0 : i32
    %c0_i32_0 = arith.constant 0 : i32
    %c0_i32_1 = arith.constant 0 : i32
    %c0_i32_2 = arith.constant 0 : i32
    return %c0_i32, %c0_i32_0, %c0_i32_1 : i32, i32, i32
  }
  func.func @transform_2(%arg0: i32, %arg1: i32) -> (i32, i32, i32) {
    %c0_i32 = arith.constant 0 : i32
    %c0_i32_0 = arith.constant 0 : i32
    return %arg0, %arg1, %c0_i32 : i32, i32, i32
  }
}

</mosaic_0001>

<bundles_post_ra>
// kernel: psmnet_forward.64
= control target key start
LH: loop header
LB: loop body
LE: loop exit
PB: predicated region body
PF: predicated region fallthrough
CT: control target
= control target key end

     0   :  { %v205_v2 = vmov 0   ;;  %s276_s1 = inlined_call_operand.vmem [shape: bf16[128,128], index: 1, kind: input, shape index: {}]   ;;  %s277_s2 = inlined_call_operand.vmem [shape: f32[16,1], index: 2, kind: input, shape index: {}]   ;;  %s278_s3 = inlined_call_operand.vmem [shape: f32[16,1], index: 3, kind: input, shape index: {}]   ;;  %s279_s0 = inlined_call_operand.vmem [shape: bf16[16,128], index: 0, kind: input, shape index: {}]   ;;  %s280_s4 = inlined_call_operand.vmem [shape: f32[16,128], index: 4, kind: output, shape index: {}]  }
   0x1   :  { %v200_v0 = vld [vmem:[%s276_s1 + $0x38] sm:$0xff]  ;;  %v199_v1 = vld [vmem:[%s276_s1 + $0x30] sm:$0xff]  ;;  %203 = vset.pattern.permute.xlu0 %v205_v2  ;;  %v120_v3 = vld [vmem:[%s277_s2] sm:$0xff]  ;;  %204 = vset.pattern.permute.xlu1 %v205_v2 }
   0x2   :  { %97 = vmatpush.bf16.msra.mxu0 %v200_v0  ;;  %v134_v4 = vld [vmem:[%s278_s3] sm:$0xff]  ;;  %124 = vperm.xlu0 %203, %v120_v3   ;;  %v198_v5 = vld [vmem:[%s276_s1 + $0x28] sm:$0xff]  ;;  %v196_v9 = vld [vmem:[%s276_s1 + $0x18] sm:$0xff] }
   0x3   :  { %138 = vperm.xlu1 %204, %v134_v4   ;;  %v121_v6 = vld [vmem:[%s277_s2 + $0x8] sm:$0xff]  ;;  %v197_v8 = vld [vmem:[%s276_s1 + $0x20] sm:$0xff]  ;;  %v195_v10 = vld [vmem:[%s276_s1 + $0x10] sm:$0xff] }
   0x4   :  { %v135_v7 = vld [vmem:[%s278_s3 + $0x8] sm:$0xff]  ;;  %v193_v12 = vld [vmem:[%s276_s1] sm:$0xff] }
   0x5   :  { %v194_v11 = vld [vmem:[%s276_s1 + $0x8] sm:$0xff]  ;;  %v192_v13 = vld [vmem:[%s279_s0] sm:$0xff] }
   0x6   :  { %98 = vmatpush.bf16.msra.mxu0 %v199_v1 }
   0xa   :  { %99 = vmatpush.bf16.msra.mxu0 %v198_v5  ;;  %129 = vperm.xlu0 %203, %v121_v6  }
   0xb   :  { %143 = vperm.xlu1 %204, %v135_v7  }
   0xe   :  { %100 = vmatpush.bf16.msra.mxu0 %v197_v8 }
  0x12   :  { %101 = vmatpush.bf16.msra.mxu0 %v196_v9 }
  0x16   :  { %102 = vmatpush.bf16.msra.mxu0 %v195_v10 }
  0x1a   :  { %103 = vmatpush.bf16.msra.mxu0 %v194_v11 }
  0x1e   :  { %104 = vmatpush.bf16.msra.mxu0 %v193_v12 }
  0x21   :  { %105 = vmatmul.bf16.vlgmr.msra.gmra.mxu0 %v192_v13 }
  0x74   :  { %v125_v15 = vpop.permute.xlu0 %124 }
  0x75   :  { %v139_v16 = vpop.permute.xlu1 %138 }
  0x7c   :  { %v130_v21 = vpop.permute.xlu0 %129 }
  0x7d   :  { %v144_v23 = vpop.permute.xlu1 %143 }
  0x9e   :  { %v106_v14 = vpop.f32.mrf.mxu0 }
  0x9f   :  { %v132_v17 = vmul.f32 %v125_v15, %v106_v14 }
  0xa1   :  { %v146_v18 = vadd.f32 %v139_v16, %v132_v17 }
  0xa3   :  { %v148_v19 = vmax.f32 %v146_v18, 0.0 }
  0xa5   :  { %150 = vst [vmem:[%s280_s4] sm:$0xff] %v148_v19 }
  0xa6   :  { %v108_v20 = vpop.f32.mrf.mxu0 }
  0xa7   :  { %v133_v22 = vmul.f32 %v130_v21, %v108_v20 }
  0xa9   :  { %v147_v24 = vadd.f32 %v144_v23, %v133_v22 }
  0xab   :  { %v149_v25 = vmax.f32 %v147_v24, 0.0 }
  0xad   :  { %151 = vst [vmem:[%s280_s4 + $0x8] sm:$0xff] %v149_v25 }

// kernel: psmnet_forward.65
= control target key start
LH: loop header
LB: loop body
LE: loop exit
PB: predicated region body
PF: predicated region fallthrough
CT: control target
= control target key end

     0   :  { %v423_v2 = vmov 0   ;;  %s557_s1 = inlined_call_operand.vmem [shape: bf16[256,128], index: 1, kind: input, shape index: {}]   ;;  %s558_s2 = inlined_call_operand.vmem [shape: f32[32,1], index: 2, kind: input, shape index: {}]   ;;  %s559_s3 = inlined_call_operand.vmem [shape: f32[32,1], index: 3, kind: input, shape index: {}]   ;;  %s560_s0 = inlined_call_operand.vmem [shape: bf16[32,256], index: 0, kind: input, shape index: {}]   ;;  %s561_s4 = inlined_call_operand.vmem [shape: f32[32,128], index: 4, kind: output, shape index: {}]  }
   0x1   :  { %v393_v0 = vld [vmem:[%s557_s1 + $0x38] sm:$0xff]  ;;  %421 = vset.pattern.permute.xlu1 %v423_v2  ;;  %420 = vset.pattern.permute.xlu0 %v423_v2  ;;  %v392_v3 = vld [vmem:[%s557_s1 + $0x30] sm:$0xff]  ;;  %v391_v5 = vld [vmem:[%s557_s1 + $0x28] sm:$0xff] }
   0x2   :  { %v401_v1 = vld [vmem:[%s557_s1 + $0x78] sm:$0xff]  ;;  %422 = vset.pattern.permute.xlu2 %v423_v2  ;;  %181 = vmatpush.bf16.msra.mxu0 %v393_v0  ;;  %v400_v4 = vld [vmem:[%s557_s1 + $0x70] sm:$0xff]  ;;  %v399_v6 = vld [vmem:[%s557_s1 + $0x68] sm:$0xff] }
   0x3   :  { %402 = vmatpush.bf16.msra.mxu2 %v393_v0  ;;  %200 = vmatpush.bf16.msra.mxu1 %v401_v1  ;;  %v236_v7 = vld [vmem:[%s558_s2 + $0x10] sm:$0xff]  ;;  %v234_v8 = vld [vmem:[%s558_s2] sm:$0xff]  ;;  %v389_v12 = vld [vmem:[%s557_s1 + $0x18] sm:$0xff] }
   0x4   :  { %410 = vmatpush.bf16.msra.mxu3 %v401_v1  ;;  %250 = vperm.xlu1 %421, %v236_v7   ;;  %v390_v9 = vld [vmem:[%s557_s1 + $0x20] sm:$0xff]  ;;  %v237_v13 = vld [vmem:[%s558_s2 + $0x18] sm:$0xff]  ;;  %v235_v14 = vld [vmem:[%s558_s2 + $0x8] sm:$0xff] }
   0x5   :  { %240 = vperm.xlu0 %420, %v234_v8   ;;  %v262_v10 = vld [vmem:[%s559_s3] sm:$0xff]  ;;  %v397_v15 = vld [vmem:[%s557_s1 + $0x58] sm:$0xff]  ;;  %v263_v16 = vld [vmem:[%s559_s3 + $0x8] sm:$0xff] }
   0x6   :  { %182 = vmatpush.bf16.msra.mxu0 %v392_v3  ;;  %v398_v11 = vld [vmem:[%s557_s1 + $0x60] sm:$0xff]  ;;  %268 = vperm.xlu2 %422, %v262_v10   ;;  %v388_v17 = vld [vmem:[%s557_s1 + $0x10] sm:$0xff]  ;;  %v387_v19 = vld [vmem:[%s557_s1 + $0x8] sm:$0xff] }
   0x7   :  { %403 = vmatpush.bf16.msra.mxu2 %v392_v3  ;;  %201 = vmatpush.bf16.msra.mxu1 %v400_v4  ;;  %v396_v18 = vld [vmem:[%s557_s1 + $0x50] sm:$0xff]  ;;  %v265_v20 = vld [vmem:[%s559_s3 + $0x18] sm:$0xff]  ;;  %v395_v22 = vld [vmem:[%s557_s1 + $0x48] sm:$0xff] }
   0x8   :  { %411 = vmatpush.bf16.msra.mxu3 %v400_v4  ;;  %v264_v21 = vld [vmem:[%s559_s3 + $0x10] sm:$0xff]  ;;  %v386_v23 = vld [vmem:[%s557_s1] sm:$0xff]  ;;  %v383_v26 = vld [vmem:[%s560_s0 + $0x4] sm:$0xf0] }
   0x9   :  { %v394_v24 = vld [vmem:[%s557_s1 + $0x40] sm:$0xff]  ;;  %v312_v27 = vld [vmem:[%s560_s0 + $0x10] sm:$0xf]  ;;  %v385_v28 = vld [vmem:[%s560_s0 + $0x14] sm:$0xf0] }
   0xa   :  { %183 = vmatpush.bf16.msra.mxu0 %v391_v5  ;;  %v304_v25 = vld [vmem:[%s560_s0] sm:$0xf]  ;;  %v382_v29 = vld [vmem:[%s560_s0 + $0x4] sm:$0xf]  ;;  %v306_v30 = vld [vmem:[%s560_s0 + $0x8] sm:$0xf0]  ;;  %v313_v34 = vor.u32 %v385_v28, %v312_v27 }
   0xb   :  { %404 = vmatpush.bf16.msra.mxu2 %v391_v5  ;;  %202 = vmatpush.bf16.msra.mxu1 %v399_v6  ;;  %v384_v31 = vld [vmem:[%s560_s0 + $0x14] sm:$0xf]  ;;  %v314_v32 = vld [vmem:[%s560_s0 + $0x18] sm:$0xf0]  ;;  %v305_v33 = vor.u32 %v383_v26, %v304_v25  ;;  %v309_v35 = vor.u32 %v382_v29, %v306_v30 }
   0xc   :  { %412 = vmatpush.bf16.msra.mxu3 %v399_v6  ;;  %255 = vperm.xlu1 %421, %v237_v13   ;;  %v317_v36 = vor.u32 %v384_v31, %v314_v32 }
   0xd   :  { %245 = vperm.xlu0 %420, %v235_v14  }
   0xe   :  { %184 = vmatpush.bf16.msra.mxu0 %v390_v9  ;;  %273 = vperm.xlu2 %422, %v263_v16  }
   0xf   :  { %405 = vmatpush.bf16.msra.mxu2 %v390_v9  ;;  %203 = vmatpush.bf16.msra.mxu1 %v398_v11 }
  0x10   :  { %413 = vmatpush.bf16.msra.mxu3 %v398_v11 }
  0x12   :  { %185 = vmatpush.bf16.msra.mxu0 %v389_v12 }
  0x13   :  { %406 = vmatpush.bf16.msra.mxu2 %v389_v12  ;;  %204 = vmatpush.bf16.msra.mxu1 %v397_v15 }
  0x14   :  { %414 = vmatpush.bf16.msra.mxu3 %v397_v15  ;;  %283 = vperm.xlu1 %421, %v265_v20  }
  0x15   :  { %278 = vperm.xlu0 %420, %v264_v21  }
  0x16   :  { %186 = vmatpush.bf16.msra.mxu0 %v388_v17 }
  0x17   :  { %407 = vmatpush.bf16.msra.mxu2 %v388_v17  ;;  %205 = vmatpush.bf16.msra.mxu1 %v396_v18 }
  0x18   :  { %415 = vmatpush.bf16.msra.mxu3 %v396_v18 }
  0x1a   :  { %187 = vmatpush.bf16.msra.mxu0 %v387_v19 }
  0x1b   :  { %408 = vmatpush.bf16.msra.mxu2 %v387_v19  ;;  %206 = vmatpush.bf16.msra.mxu1 %v395_v22 }
  0x1c   :  { %416 = vmatpush.bf16.msra.mxu3 %v395_v22 }
  0x1e   :  { %188 = vmatpush.bf16.msra.mxu0 %v386_v23 }
  0x1f   :  { %409 = vmatpush.bf16.msra.mxu2 %v386_v23  ;;  %207 = vmatpush.bf16.msra.mxu1 %v394_v24 }
  0x20   :  { %417 = vmatpush.bf16.msra.mxu3 %v394_v24 }
  0x21   :  { %189 = vmatmul.bf16.vlgmr.msra.gmra.mxu0 %v305_v33 }
  0x22   :  { %194 = vmatmul.bf16.vlgmr.msra.gmra.mxu2 %v313_v34  ;;  %208 = vmatmul.bf16.vlgmr.msra.gmra.mxu1 %v309_v35 }
  0x23   :  { %213 = vmatmul.bf16.vlgmr.msra.gmra.mxu3 %v317_v36 }
  0x60   :  { %v269_v43 = vpop.permute.xlu2 %268 }
  0x68   :  { %v274_v60 = vpop.permute.xlu2 %273 }
  0x76   :  { %v251_v39 = vpop.permute.xlu1 %250 }
  0x77   :  { %v241_v37 = vpop.permute.xlu0 %240 }
  0x7e   :  { %v256_v53 = vpop.permute.xlu1 %255 }
  0x7f   :  { %v246_v42 = vpop.permute.xlu0 %245 }
  0x86   :  { %v284_v2 = vpop.permute.xlu1 %283 }
  0x87   :  { %v279_v55 = vpop.permute.xlu0 %278 }
  0x9e   :  { %v190_v38 = vpop.f32.mrf.mxu0 }
  0x9f   :  { %v209_v40 = vpop.f32.mrf.mxu1 }
  0xa0   :  { %v210_v41 = vadd.f32 %v209_v40, %v190_v38 }
  0xa2   :  { %v258_v45 = vmul.f32 %v241_v37, %v210_v41 }
  0xa4   :  { %v286_v49 = vadd.f32 %v269_v43, %v258_v45 }
  0xa5   :  { %v195_v44 = vpop.f32.mrf.mxu2 }
  0xa6   :  { %v214_v46 = vpop.f32.mrf.mxu3  ;;  %v192_v48 = vpop.f32.mrf.mxu0  ;;  %v290_v52 = vmax.f32 %v286_v49, 0.0 }
  0xa7   :  { %v215_v47 = vadd.f32 %v214_v46, %v195_v44  ;;  %v211_v50 = vpop.f32.mrf.mxu1 }
  0xa8   :  { %v212_v51 = vadd.f32 %v211_v50, %v192_v48  ;;  %294 = vst [vmem:[%s561_s4] sm:$0xff] %v290_v52 }
  0xa9   :  { %v260_v54 = vmul.f32 %v251_v39, %v215_v47 }
  0xaa   :  { %v259_v58 = vmul.f32 %v246_v42, %v212_v51 }
  0xab   :  { %v288_v56 = vadd.f32 %v279_v55, %v260_v54 }
  0xac   :  { %v287_v63 = vadd.f32 %v274_v60, %v259_v58 }
  0xad   :  { %v197_v57 = vpop.f32.mrf.mxu2  ;;  %v292_v61 = vmax.f32 %v288_v56, 0.0 }
  0xae   :  { %v216_v59 = vpop.f32.mrf.mxu3  ;;  %v291_v0 = vmax.f32 %v287_v63, 0.0 }
  0xaf   :  { %v217_v62 = vadd.f32 %v216_v59, %v197_v57  ;;  %296 = vst [vmem:[%s561_s4 + $0x10] sm:$0xff] %v292_v61 }
  0xb0   :  { %295 = vst [vmem:[%s561_s4 + $0x8] sm:$0xff] %v291_v0 }
  0xb1   :  { %v261_v1 = vmul.f32 %v256_v53, %v217_v62 }
  0xb3   :  { %v289_v3 = vadd.f32 %v284_v2, %v261_v1 }
  0xb5   :  { %v293_v4 = vmax.f32 %v289_v3, 0.0 }
  0xb7   :  { %297 = vst [vmem:[%s561_s4 + $0x18] sm:$0xff] %v293_v4 }

// kernel: psmnet_forward.66
= control target key start
LH: loop header
LB: loop body
LE: loop exit
PB: predicated region body
PF: predicated region fallthrough
CT: control target
= control target key end

     0   :  { %s896_s15 = smov 0   ;;  %s898_s16 = smov 0   ;;  %s1075_s0 = inlined_call_operand.vmem [shape: bf16[32,512], index: 0, kind: input, shape index: {}]   ;;  %s1076_s1 = inlined_call_operand.vmem [shape: bf16[512,128], index: 1, kind: input, shape index: {}]   ;;  %s1077_s2 = inlined_call_operand.vmem [shape: f32[32,1], index: 2, kind: input, shape index: {}]   ;;  %s1078_s3 = inlined_call_operand.vmem [shape: f32[32,1], index: 3, kind: input, shape index: {}]   ;;  %s1079_s4 = inlined_call_operand.vmem [shape: f32[32,128], index: 4, kind: output, shape index: {}]  }
   0x1   :  { %s900_s17 = smov 0   ;;  %s902_s18 = smov 0  }
   0x2   :  { %s904_s19 = smov 0  }
   0x3 LB: > { %s23_s20 = sadd.s32 1, %s863_s18  ;;  %p40_p1 = scmp.ne.s32.totalorder %s855_s16, %s851_s15  ;;  %s867_s19 = sphi %s904_s19, %s14_s19   ;;  %s863_s18 = sphi %s902_s18, %s1083_s18   ;;  %s859_s17 = sphi %s900_s17, %s1082_s17   ;;  %s855_s16 = sphi %s898_s16, %s1081_s16   ;;  %s851_s15 = sphi %s896_s15, %s1080_s15  }
   0x4   : > { %p24_p0 = scmp.ge.s32.totalorder %s23_s20, 2  ;;  %p41_p2 = scmp.eq.s32.totalorder %s867_s19, 0 }
   0x5   : > { %s33_s22 = sadd.s32 1, %s855_s16  ;;  %p654_p5 = scmp.ge.s32.totalorder %s867_s19, 2 }
   0x6   : > { %s1085_s20 = smov (%p24_p0, %s23_s20), 0  ;;  %p42_p3 = por %p41_p2, %p40_p1 }
   0x7   : > { %s30_s21 = ssub.s32 %s863_s18, %s1085_s20  ;;  %168 = sbr.rel (%p654_p5) target bundleno = 20 (0x14), region = 24 }
   0x8   : > { %p31_p4 = scmp.eq.s32.totalorder %s30_s21, 0 }
   0xa   : > { %s931_s23 = scalar_select %p31_p4, %s855_s16, %s33_s22  }
   0xc   : > { %171 = sbr.rel (!%p42_p3) target bundleno = 20 (0x14), region = 28  ;;  %s173_s24 = sand.u32 (%p42_p3), 1, %s855_s16  }
   0xd   : > { %s747_s25 = sshll.u32 (%p42_p3), %s863_s18, 3  ;;  %s655_s26 = sshll.u32 (%p42_p3), %s173_s24, 5 }
   0xe   : > { %s178_s29 = scalar_lea.vmem (%p42_p3), %s1075_s0, %s747_s25  ;;  %s175_s30 = scalar_lea.vmem (%p42_p3), [#allocation2], %s655_s26 }
   0xf   : > { %v213_v0 = vld [vmem:[%s178_s29] sm:$0xff] (%p42_p3)  ;;  %v215_v1 = vld [vmem:[%s178_s29 + $0x10] sm:$0xff] (%p42_p3) }
  0x10   : > { %v217_v2 = vld [vmem:[%s178_s29 + $0x20] sm:$0xff] (%p42_p3)  ;;  %214 = vst [vmem:[%s175_s30] sm:$0xff] (%p42_p3), %v213_v0  ;;  %v219_v3 = vld [vmem:[%s178_s29 + $0x30] sm:$0xff] (%p42_p3) }
  0x11   : > { %216 = vst [vmem:[%s175_s30 + $0x8] sm:$0xff] %v215_v1 }
  0x12   : > { %218 = vst [vmem:[%s175_s30 + $0x10] sm:$0xff] %v217_v2 }
  0x13   : > { %220 = vst [vmem:[%s175_s30 + $0x18] sm:$0xff] %v219_v3 }
  0x14 PF: > { %p658_p6 = scmp.ge.s32.totalorder %s867_s19, 1  ;;  %p237_p7 = scmp.lt.s32.totalorder %s867_s19, 3 }
  0x16   : > { %p238_p8 = pnand %p658_p6, %p237_p7 }
  0x17   : > { %s244_s5 = sand.u32 (!%p238_p8), 1, %s851_s15   ;;  %s660_s6 = sshll.u32 (!%p238_p8), %s859_s17, 5 }
  0x18   : > { %241 = sbr.rel (%p238_p8) target bundleno = 356 (0x164), region = 70  ;;  %s659_s7 = sshll.u32 (!%p238_p8), %s244_s5, 5 }
  0x19   : > { %p278_p9 = scmp.lt.s32.totalorder (!%p238_p8), %s660_s6, 63  ;;  %s948_s12 = scalar_lea.vmem (!%p238_p8), [#allocation2], %s659_s7 }
  0x1a   : > { %p662_p10 = scmp.ne.s32.totalorder (!%p238_p8), %s859_s17, 0 }
  0x1d   : > { %s1087_s6 = smov (!%p278_p9, %s660_s6), 63  ;;  %293 = sbr.rel (%p662_p10) target bundleno = 39 (0x27), region = 78 }
  0x1e   : > { %s661_s8 = sshll.u32 %s1087_s6, 2 }
  0x1f   : > { %s946_s11 = scalar_lea.vmem %s1076_s1, %s661_s8 }
  0x22   : > { %v869_v4 = vmov 0.0  }
  0x23   : > { %294 = vst [vmem:[%s1079_s4] sm:$0xff] %v869_v4 }
  0x24   : > { %295 = vst [vmem:[%s1079_s4 + $0x8] sm:$0xff] %v869_v4 }
  0x25   : > { %296 = vst [vmem:[%s1079_s4 + $0x10] sm:$0xff] %v869_v4 }
  0x26   : > { %297 = vst [vmem:[%s1079_s4 + $0x18] sm:$0xff] %v869_v4 }
  0x27 PF: > { %v759_v5 = vld [vmem:[%s946_s11 + $0x38] sm:$0xff]  ;;  %v758_v7 = vld [vmem:[%s946_s11 + $0x30] sm:$0xff]  ;;  %v757_v9 = vld [vmem:[%s946_s11 + $0x28] sm:$0xff]  ;;  %p743_p11 = scmp.ne.s32.totalorder %s859_s17, 1 }
  0x28   : > { %v767_v6 = vld [vmem:[%s946_s11 + $0x78] sm:$0xff]  ;;  %454 = vmatpush.bf16.msra.mxu0 %v759_v5  ;;  %768 = vmatpush.bf16.msra.mxu2 %v759_v5  ;;  %v766_v8 = vld [vmem:[%s946_s11 + $0x70] sm:$0xff]  ;;  %v765_v10 = vld [vmem:[%s946_s11 + $0x68] sm:$0xff] }
  0x29   : > { %473 = vmatpush.bf16.msra.mxu1 %v767_v6  ;;  %776 = vmatpush.bf16.msra.mxu3 %v767_v6  ;;  %v756_v11 = vld [vmem:[%s946_s11 + $0x20] sm:$0xff]  ;;  %v755_v13 = vld [vmem:[%s946_s11 + $0x18] sm:$0xff]  ;;  %v754_v15 = vld [vmem:[%s946_s11 + $0x10] sm:$0xff] }
  0x2a   : > { %v764_v12 = vld [vmem:[%s946_s11 + $0x60] sm:$0xff]  ;;  %v763_v14 = vld [vmem:[%s946_s11 + $0x58] sm:$0xff]  ;;  %v762_v16 = vld [vmem:[%s946_s11 + $0x50] sm:$0xff] }
  0x2b   : > { %v753_v17 = vld [vmem:[%s946_s11 + $0x8] sm:$0xff]  ;;  %v752_v19 = vld [vmem:[%s946_s11] sm:$0xff]  ;;  %v673_v23 = vld [vmem:[%s948_s12 + $0x10] sm:$0xf] }
  0x2c   : > { %455 = vmatpush.bf16.msra.mxu0 %v758_v7  ;;  %769 = vmatpush.bf16.msra.mxu2 %v758_v7  ;;  %v761_v18 = vld [vmem:[%s946_s11 + $0x48] sm:$0xff]  ;;  %v760_v20 = vld [vmem:[%s946_s11 + $0x40] sm:$0xff]  ;;  %v751_v24 = vld [vmem:[%s948_s12 + $0x14] sm:$0xf0] }
  0x2d   : > { %474 = vmatpush.bf16.msra.mxu1 %v766_v8  ;;  %777 = vmatpush.bf16.msra.mxu3 %v766_v8  ;;  %v665_v21 = vld [vmem:[%s948_s12] sm:$0xf]  ;;  %v749_v22 = vld [vmem:[%s948_s12 + $0x4] sm:$0xf0]  ;;  %v748_v25 = vld [vmem:[%s948_s12 + $0x4] sm:$0xf]  ;;  %v674_v30 = vor.u32 %v751_v24, %v673_v23 }
  0x2e   : > { %v667_v26 = vld [vmem:[%s948_s12 + $0x8] sm:$0xf0]  ;;  %v750_v27 = vld [vmem:[%s948_s12 + $0x14] sm:$0xf]  ;;  %v675_v28 = vld [vmem:[%s948_s12 + $0x18] sm:$0xf0]  ;;  %v666_v29 = vor.u32 %v749_v22, %v665_v21 }
  0x2f   : > { %v670_v31 = vor.u32 %v748_v25, %v667_v26  ;;  %v678_v32 = vor.u32 %v750_v27, %v675_v28  ;;  %v298_v34 = vld [vmem:[%s1079_s4] sm:$0xff]  ;;  %v300_v39 = vld [vmem:[%s1079_s4 + $0x10] sm:$0xff]  ;;  %v299_v43 = vld [vmem:[%s1079_s4 + $0x8] sm:$0xff] }
  0x30   : > { %456 = vmatpush.bf16.msra.mxu0 %v757_v9  ;;  %770 = vmatpush.bf16.msra.mxu2 %v757_v9  ;;  %v301_v49 = vld [vmem:[%s1079_s4 + $0x18] sm:$0xff] }
  0x31   : > { %475 = vmatpush.bf16.msra.mxu1 %v765_v10  ;;  %778 = vmatpush.bf16.msra.mxu3 %v765_v10 }
  0x34   : > { %457 = vmatpush.bf16.msra.mxu0 %v756_v11  ;;  %771 = vmatpush.bf16.msra.mxu2 %v756_v11 }
  0x35   : > { %476 = vmatpush.bf16.msra.mxu1 %v764_v12  ;;  %779 = vmatpush.bf16.msra.mxu3 %v764_v12 }
  0x38   : > { %458 = vmatpush.bf16.msra.mxu0 %v755_v13  ;;  %772 = vmatpush.bf16.msra.mxu2 %v755_v13 }
  0x39   : > { %477 = vmatpush.bf16.msra.mxu1 %v763_v14  ;;  %780 = vmatpush.bf16.msra.mxu3 %v763_v14 }
  0x3c   : > { %459 = vmatpush.bf16.msra.mxu0 %v754_v15  ;;  %773 = vmatpush.bf16.msra.mxu2 %v754_v15 }
  0x3d   : > { %478 = vmatpush.bf16.msra.mxu1 %v762_v16  ;;  %781 = vmatpush.bf16.msra.mxu3 %v762_v16 }
  0x40   : > { %460 = vmatpush.bf16.msra.mxu0 %v753_v17  ;;  %774 = vmatpush.bf16.msra.mxu2 %v753_v17 }
  0x41   : > { %479 = vmatpush.bf16.msra.mxu1 %v761_v18  ;;  %782 = vmatpush.bf16.msra.mxu3 %v761_v18 }
  0x44   : > { %461 = vmatpush.bf16.msra.mxu0 %v752_v19  ;;  %775 = vmatpush.bf16.msra.mxu2 %v752_v19 }
  0x45   : > { %480 = vmatpush.bf16.msra.mxu1 %v760_v20  ;;  %783 = vmatpush.bf16.msra.mxu3 %v760_v20 }
  0x47   : > { %462 = vmatmul.bf16.vlgmr.msra.gmra.mxu0 %v666_v29  ;;  %467 = vmatmul.bf16.vlgmr.msra.gmra.mxu2 %v674_v30 }
  0x48   : > { %481 = vmatmul.bf16.vlgmr.msra.gmra.mxu1 %v670_v31  ;;  %486 = vmatmul.bf16.vlgmr.msra.gmra.mxu3 %v678_v32 }
  0xc4   : > { %v463_v33 = vpop.f32.mrf.mxu0 }
  0xc5   : > { %v482_v35 = vpop.f32.mrf.mxu1 }
  0xc6   : > { %v483_v36 = vadd.f32 %v482_v35, %v463_v33 }
  0xc8   : > { %v492_v37 = vadd.f32 %v483_v36, %v298_v34 }
  0xca   : > { %496 = vst [vmem:[%s1079_s4] sm:$0xff] %v492_v37  ;;  %v468_v38 = vpop.f32.mrf.mxu2 }
  0xcb   : > { %v487_v40 = vpop.f32.mrf.mxu3 }
  0xcc   : > { %v488_v41 = vadd.f32 %v487_v40, %v468_v38  ;;  %v465_v42 = vpop.f32.mrf.mxu0 }
  0xcd   : > { %v484_v44 = vpop.f32.mrf.mxu1 }
  0xce   : > { %v494_v45 = vadd.f32 %v488_v41, %v300_v39  ;;  %v485_v46 = vadd.f32 %v484_v44, %v465_v42 }
  0xd0   : > { %498 = vst [vmem:[%s1079_s4 + $0x10] sm:$0xff] %v494_v45  ;;  %v493_v47 = vadd.f32 %v485_v46, %v299_v43 }
  0xd2   : > { %497 = vst [vmem:[%s1079_s4 + $0x8] sm:$0xff] %v493_v47  ;;  %v470_v48 = vpop.f32.mrf.mxu2 }
  0xd3   : > { %v489_v50 = vpop.f32.mrf.mxu3 }
  0xd4   : > { %v490_v51 = vadd.f32 %v489_v50, %v470_v48  ;;  %503 = sbr.rel (%p743_p11) target bundleno = 356 (0x164), region = 82 }
  0xd6   : > { %v495_v52 = vadd.f32 %v490_v51, %v301_v49 }
  0xd8   : > { %499 = vst [vmem:[%s1079_s4 + $0x18] sm:$0xff] %v495_v52 }
  0xd9   : > { %v510_v53 = vld [vmem:[%s1077_s2 + $0x10] sm:$0xff]  ;;  %v508_v54 = vld [vmem:[%s1077_s2] sm:$0xff]  ;;  %v870_v55 = vmov 0   ;;  %v511_v57 = vld [vmem:[%s1077_s2 + $0x18] sm:$0xff] }
  0xda   : > { %827 = vset.pattern.permute.xlu1 %v870_v55  ;;  %826 = vset.pattern.permute.xlu0 %v870_v55  ;;  %v536_v56 = vld [vmem:[%s1078_s3] sm:$0xff]  ;;  %v509_v58 = vld [vmem:[%s1077_s2 + $0x8] sm:$0xff]  ;;  %v539_v60 = vld [vmem:[%s1078_s3 + $0x18] sm:$0xff] }
  0xdb   : > { %524 = vperm.xlu1 %827, %v510_v53   ;;  %514 = vperm.xlu0 %826, %v508_v54   ;;  %v537_v59 = vld [vmem:[%s1078_s3 + $0x8] sm:$0xff]  ;;  %v538_v61 = vld [vmem:[%s1078_s3 + $0x10] sm:$0xff]  ;;  %v504_v62 = vld [vmem:[%s1079_s4] sm:$0xff] }
  0xdc   : > { %828 = vset.pattern.permute.xlu2 %v870_v55  ;;  %v505_v5 = vld [vmem:[%s1079_s4 + $0x8] sm:$0xff]  ;;  %v506_v11 = vld [vmem:[%s1079_s4 + $0x10] sm:$0xff] }
  0xdd   : > { %542 = vperm.xlu2 %828, %v536_v56  }
  0xdf   : > { %v507_v12 = vld [vmem:[%s1079_s4 + $0x18] sm:$0xff] }
  0xe3   : > { %529 = vperm.xlu1 %827, %v511_v57   ;;  %519 = vperm.xlu0 %826, %v509_v58  }
  0xe5   : > { %547 = vperm.xlu2 %828, %v537_v59  }
  0xeb   : > { %557 = vperm.xlu1 %827, %v539_v60   ;;  %552 = vperm.xlu0 %826, %v538_v61  }
 0x137   : > { %v543_v63 = vpop.permute.xlu2 %542 }
 0x13f   : > { %v548_v9 = vpop.permute.xlu2 %547 }
 0x14d   : > { %v525_v0 = vpop.permute.xlu1 %524  ;;  %v515_v1 = vpop.permute.xlu0 %514 }
 0x14e   : > { %v532_v2 = vmul.f32 %v515_v1, %v504_v62  ;;  %v534_v14 = vmul.f32 %v525_v0, %v506_v11 }
 0x150   : > { %v560_v3 = vadd.f32 %v543_v63, %v532_v2 }
 0x152   : > { %v564_v4 = vmax.f32 %v560_v3, 0.0 }
 0x154   : > { %568 = vst [vmem:[%s1079_s4] sm:$0xff] %v564_v4 }
 0x155   : > { %v530_v6 = vpop.permute.xlu1 %529  ;;  %v520_v7 = vpop.permute.xlu0 %519 }
 0x156   : > { %v533_v8 = vmul.f32 %v520_v7, %v505_v5  ;;  %v535_v15 = vmul.f32 %v530_v6, %v507_v12 }
 0x158   : > { %v561_v10 = vadd.f32 %v548_v9, %v533_v8 }
 0x15a   : > { %v565_v13 = vmax.f32 %v561_v10, 0.0 }
 0x15c   : > { %569 = vst [vmem:[%s1079_s4 + $0x8] sm:$0xff] %v565_v13 }
 0x15d   : > { %v558_v16 = vpop.permute.xlu1 %557  ;;  %v553_v17 = vpop.permute.xlu0 %552 }
 0x15e   : > { %v563_v18 = vadd.f32 %v558_v16, %v535_v15  ;;  %v562_v19 = vadd.f32 %v553_v17, %v534_v14 }
 0x160   : > { %v567_v20 = vmax.f32 %v563_v18, 0.0  ;;  %v566_v21 = vmax.f32 %v562_v19, 0.0 }
 0x162   : > { %571 = vst [vmem:[%s1079_s4 + $0x18] sm:$0xff] %v567_v20 }
 0x163   : > { %570 = vst [vmem:[%s1079_s4 + $0x10] sm:$0xff] %v566_v21 }
 0x164 PF: > { %s14_s19 = sadd.s32 1, %s867_s19   ;;  %s1080_s15 = smov %s855_s16 }
 0x165   : > { %p11_p12 = scmp.ge.s32.totalorder %s14_s19, 4   ;;  %s1081_s16 = smov %s931_s23 }
 0x166   : > { %s1082_s17 = smov %s863_s18  ;;  %s1083_s18 = smov %s1085_s20 }
 0x167   :  { %13 = sbr.rel (!%p11_p12) target bundleno = 3 (0x3), region = 120 }

// kernel: psmnet_forward.68
= control target key start
LH: loop header
LB: loop body
LE: loop exit
PB: predicated region body
PF: predicated region fallthrough
CT: control target
= control target key end

     0   :  { %s679_s9 = smov 0   ;;  %s681_s10 = smov 0   ;;  %s1048_s0 = inlined_call_operand.vmem [shape: f32[16,4,128], index: 0, kind: input, shape index: {}]   ;;  %s1049_s1 = inlined_call_operand.vmem [shape: f32[2,16,4,128], index: 1, kind: input, shape index: {}]   ;;  %s1050_s2 = inlined_call_operand.vmem [shape: f32[2,16,128], index: 2, kind: output, shape index: {}]  }
   0x1   :  { %s683_s11 = smov 0  }
   0x2 LB: > { %s24_s12 = sadd.s32 1, %s658_s10  ;;  %p607_p0 = scmp.ge.s32.totalorder %s662_s11, 1  ;;  %s662_s11 = sphi %s683_s11, %s12_s11   ;;  %s658_s10 = sphi %s681_s10, %s1052_s10   ;;  %s654_s9 = sphi %s679_s9, %s1051_s9  }
   0x3   : > { %p26_p1 = scmp.ge.s32.totalorder %s24_s12, 2  ;;  %p140_p2 = scmp.lt.s32.totalorder %s662_s11, 3 }
   0x5   : > { %s1054_s12 = smov (%p26_p1, %s24_s12), 0  ;;  %p141_p3 = pnand %p607_p0, %p140_p2 }
   0x6   : > { %p176_p4 = scmp.lt.s32.totalorder (!%p141_p3), %s654_s9, 1 }
   0x7   : > { %144 = sbr.rel (%p141_p3) target bundleno = 76 (0x4c), region = 28 }
   0xc   : > { %s1056_s9 = smov (!%p176_p4, %s654_s9), 1  ;;  %v192_v0 = vld [vmem:[%s1048_s0] sm:$0x1]  ;;  %v193_v2 = vld [vmem:[%s1048_s0 + $0x4] sm:$0x1]  ;;  %vm465_vm0 = vcmask 1041409  }
   0xd   : > { %s614_s13 = sshll.u32 %s1056_s9, 6  ;;  %v194_v3 = vld [vmem:[%s1048_s0 + $0x8] sm:$0x1]  ;;  %v195_v4 = vld [vmem:[%s1048_s0 + $0xc] sm:$0x1]  ;;  %vm468_vm1 = vcmask 1042434  }
   0xe   : > { %s703_s16 = scalar_lea.vmem %s1049_s1, %s614_s13  ;;  %v196_v5 = vld [vmem:[%s1048_s0 + $0x10] sm:$0x1]  ;;  %v197_v10 = vld [vmem:[%s1048_s0 + $0x14] sm:$0x1]  ;;  %v198_v11 = vld [vmem:[%s1048_s0 + $0x18] sm:$0x1] }
   0xf   : > { %v208_v1 = vld [vmem:[%s703_s16] sm:$0x1]  ;;  %v209_v6 = vld [vmem:[%s703_s16 + $0x4] sm:$0x1]  ;;  %v210_v7 = vld [vmem:[%s703_s16 + $0x8] sm:$0x1] }
  0x10   : > { %v211_v8 = vld [vmem:[%s703_s16 + $0xc] sm:$0x1]  ;;  %v212_v9 = vld [vmem:[%s703_s16 + $0x10] sm:$0x1]  ;;  %v199_v12 = vld [vmem:[%s1048_s0 + $0x1c] sm:$0x1]  ;;  %v775_v34 = vmul.f32 %v208_v1, %v192_v0  ;;  %v225_v39 = vmul.f32 %v209_v6, %v193_v2  ;;  %v787_v40 = vmul.f32 %v210_v7, %v194_v3 }
  0x11   : > { %v200_v13 = vld [vmem:[%s1048_s0 + $0x20] sm:$0x1]  ;;  %v213_v14 = vld [vmem:[%s703_s16 + $0x14] sm:$0x1]  ;;  %v214_v15 = vld [vmem:[%s703_s16 + $0x18] sm:$0x1]  ;;  %v789_v41 = vmul.f32 %v211_v8, %v195_v4  ;;  %v791_v42 = vmul.f32 %v212_v9, %v196_v5 }
  0x12   : > { %v215_v16 = vld [vmem:[%s703_s16 + $0x1c] sm:$0x1]  ;;  %v216_v17 = vld [vmem:[%s703_s16 + $0x20] sm:$0x1]  ;;  %v201_v18 = vld [vmem:[%s1048_s0 + $0x24] sm:$0x1]  ;;  %v808_v50 = vmul.f32 %v213_v14, %v197_v10  ;;  %v810_v51 = vmul.f32 %v214_v15, %v198_v11 }
  0x13   : > { %v202_v19 = vld [vmem:[%s1048_s0 + $0x28] sm:$0x1]  ;;  %v203_v20 = vld [vmem:[%s1048_s0 + $0x2c] sm:$0x1]  ;;  %v204_v21 = vld [vmem:[%s1048_s0 + $0x30] sm:$0x1]  ;;  %v812_v52 = vmul.f32 %v215_v16, %v199_v12  ;;  %v814_v53 = vmul.f32 %v216_v17, %v200_v13 }
  0x14   : > { %v217_v22 = vld [vmem:[%s703_s16 + $0x24] sm:$0x1]  ;;  %v218_v23 = vld [vmem:[%s703_s16 + $0x28] sm:$0x1]  ;;  %v219_v24 = vld [vmem:[%s703_s16 + $0x2c] sm:$0x1] }
  0x15   : > { %v220_v25 = vld [vmem:[%s703_s16 + $0x30] sm:$0x1]  ;;  %v205_v26 = vld [vmem:[%s1048_s0 + $0x34] sm:$0x1]  ;;  %v206_v27 = vld [vmem:[%s1048_s0 + $0x38] sm:$0x1]  ;;  %v831_v61 = vmul.f32 %v217_v22, %v201_v18  ;;  %v833_v62 = vmul.f32 %v218_v23, %v202_v19  ;;  %v835_v63 = vmul.f32 %v219_v24, %v203_v20 }
  0x16   : > { %v221_v28 = vld [vmem:[%s703_s16 + $0x34] sm:$0x1]  ;;  %v222_v29 = vld [vmem:[%s703_s16 + $0x38] sm:$0x1]  ;;  %v240_v30 = vld [vmem:[%s1048_s0 + $0x1] sm:$0x1]  ;;  %v837_v0 = vmul.f32 %v220_v25, %v204_v21 }
  0x17   : > { %v241_v31 = vld [vmem:[%s1048_s0 + $0x5] sm:$0x1]  ;;  %v207_v32 = vld [vmem:[%s1048_s0 + $0x3c] sm:$0x1]  ;;  %v242_v35 = vld [vmem:[%s1048_s0 + $0x9] sm:$0x1]  ;;  %v845_v5 = vmul.f32 %v221_v28, %v205_v26  ;;  %v847_v6 = vmul.f32 %v222_v29, %v206_v27 }
  0x18   : > { %v223_v33 = vld [vmem:[%s703_s16 + $0x3c] sm:$0x1]  ;;  %v243_v36 = vld [vmem:[%s1048_s0 + $0xd] sm:$0x1]  ;;  %v244_v37 = vld [vmem:[%s1048_s0 + $0x11] sm:$0x1] }
  0x19   : > { %v256_v38 = vld [vmem:[%s703_s16 + $0x1] sm:$0x1]  ;;  %v245_v43 = vld [vmem:[%s1048_s0 + $0x15] sm:$0x1]  ;;  %v246_v44 = vld [vmem:[%s1048_s0 + $0x19] sm:$0x1]  ;;  %v852_v12 = vmul.f32 %v223_v33, %v207_v32 }
  0x1a   : > { %v247_v45 = vld [vmem:[%s1048_s0 + $0x1d] sm:$0x1]  ;;  %v248_v46 = vld [vmem:[%s1048_s0 + $0x21] sm:$0x1]  ;;  %v257_v47 = vld [vmem:[%s703_s16 + $0x5] sm:$0x1]  ;;  %v272_v10 = vmul.f32 %v256_v38, %v240_v30 }
  0x1b   : > { %v258_v48 = vld [vmem:[%s703_s16 + $0x9] sm:$0x1]  ;;  %v259_v49 = vld [vmem:[%s703_s16 + $0xd] sm:$0x1]  ;;  %v249_v54 = vld [vmem:[%s1048_s0 + $0x25] sm:$0x1]  ;;  %v273_v11 = vmul.f32 %v257_v47, %v241_v31 }
  0x1c   : > { %v250_v55 = vld [vmem:[%s1048_s0 + $0x29] sm:$0x1]  ;;  %v251_v56 = vld [vmem:[%s1048_s0 + $0x2d] sm:$0x1]  ;;  %v252_v57 = vld [vmem:[%s1048_s0 + $0x31] sm:$0x1]  ;;  %v274_v16 = vmul.f32 %v258_v48, %v242_v35  ;;  %v275_v17 = vmul.f32 %v259_v49, %v243_v36  ;;  %v870_v33 = vadd.f32 %v272_v10, %v775_v34 }
  0x1d   : > { %v260_v58 = vld [vmem:[%s703_s16 + $0x11] sm:$0x1]  ;;  %v261_v59 = vld [vmem:[%s703_s16 + $0x15] sm:$0x1]  ;;  %v262_v60 = vld [vmem:[%s703_s16 + $0x19] sm:$0x1]  ;;  %v872_v35 = vadd.f32 %v273_v11, %v225_v39 }
  0x1e   : > { %v253_v1 = vld [vmem:[%s1048_s0 + $0x35] sm:$0x1]  ;;  %v263_v2 = vld [vmem:[%s703_s16 + $0x1d] sm:$0x1]  ;;  %v264_v3 = vld [vmem:[%s703_s16 + $0x21] sm:$0x1]  ;;  %v276_v18 = vmul.f32 %v260_v58, %v244_v37  ;;  %v277_v21 = vmul.f32 %v261_v59, %v245_v43  ;;  %v278_v22 = vmul.f32 %v262_v60, %v246_v44  ;;  %v885_v34 = vadd.f32 %v274_v16, %v787_v40 }
  0x1f   : > { %v265_v4 = vld [vmem:[%s703_s16 + $0x25] sm:$0x1]  ;;  %v266_v7 = vld [vmem:[%s703_s16 + $0x29] sm:$0x1]  ;;  %v267_v8 = vld [vmem:[%s703_s16 + $0x2d] sm:$0x1]  ;;  %v279_v23 = vmul.f32 %v263_v2, %v247_v45  ;;  %v280_v24 = vmul.f32 %v264_v3, %v248_v46  ;;  %v888_v39 = vadd.f32 %v275_v17, %v789_v41 }
  0x20   : > { %v268_v9 = vld [vmem:[%s703_s16 + $0x31] sm:$0x1]  ;;  %v254_v13 = vld [vmem:[%s1048_s0 + $0x39] sm:$0x1]  ;;  %v269_v14 = vld [vmem:[%s703_s16 + $0x35] sm:$0x1]  ;;  %v281_v25 = vmul.f32 %v265_v4, %v249_v54  ;;  %v282_v26 = vmul.f32 %v266_v7, %v250_v55  ;;  %v283_v27 = vmul.f32 %v267_v8, %v251_v56  ;;  %v891_v45 = vadd.f32 %v276_v18, %v791_v42 }
  0x21   : > { %v270_v15 = vld [vmem:[%s703_s16 + $0x39] sm:$0x1]  ;;  %v255_v19 = vld [vmem:[%s1048_s0 + $0x3d] sm:$0x1]  ;;  %v284_v28 = vmul.f32 %v268_v9, %v252_v57  ;;  %v304_v29 = vld [vmem:[%s1048_s0 + $0x2] sm:$0x1]  ;;  %v285_v31 = vmul.f32 %v269_v14, %v253_v1  ;;  %v293_v54 = vadd.f32 %v277_v21, %v808_v50  ;;  %v294_v55 = vadd.f32 %v278_v22, %v810_v51 }
  0x22   : > { %v271_v20 = vld [vmem:[%s703_s16 + $0x3d] sm:$0x1]  ;;  %v305_v30 = vld [vmem:[%s1048_s0 + $0x6] sm:$0x1]  ;;  %v286_v32 = vmul.f32 %v270_v15, %v254_v13  ;;  %v306_v36 = vld [vmem:[%s1048_s0 + $0xa] sm:$0x1]  ;;  %v295_v56 = vadd.f32 %v279_v23, %v812_v52  ;;  %v296_v57 = vadd.f32 %v280_v24, %v814_v53  ;;  %v297_v1 = vadd.f32 %v281_v25, %v831_v61 }
  0x23   : > { %v307_v37 = vld [vmem:[%s1048_s0 + $0xe] sm:$0x1]  ;;  %v308_v38 = vld [vmem:[%s1048_s0 + $0x12] sm:$0x1]  ;;  %v320_v43 = vld [vmem:[%s703_s16 + $0x2] sm:$0x1]  ;;  %v287_v44 = vmul.f32 %v271_v20, %v255_v19  ;;  %v298_v2 = vadd.f32 %v282_v26, %v833_v62  ;;  %v299_v3 = vadd.f32 %v283_v27, %v835_v63  ;;  %v300_v4 = vadd.f32 %v284_v28, %v837_v0 }
  0x24   : > { %v309_v46 = vld [vmem:[%s1048_s0 + $0x16] sm:$0x1]  ;;  %v310_v47 = vld [vmem:[%s1048_s0 + $0x1a] sm:$0x1]  ;;  %v311_v40 = vld [vmem:[%s1048_s0 + $0x1e] sm:$0x1]  ;;  %v301_v11 = vadd.f32 %v285_v31, %v845_v5  ;;  %v302_v61 = vadd.f32 %v286_v32, %v847_v6  ;;  %v336_v15 = vmul.f32 %v320_v43, %v304_v29 }
  0x25   : > { %v312_v41 = vld [vmem:[%s1048_s0 + $0x22] sm:$0x1]  ;;  %v321_v42 = vld [vmem:[%s703_s16 + $0x6] sm:$0x1]  ;;  %v322_v48 = vld [vmem:[%s703_s16 + $0xa] sm:$0x1]  ;;  %v303_v16 = vadd.f32 %v287_v44, %v852_v12 }
  0x26   : > { %v323_v49 = vld [vmem:[%s703_s16 + $0xe] sm:$0x1]  ;;  %v313_v58 = vld [vmem:[%s1048_s0 + $0x26] sm:$0x1]  ;;  %v314_v59 = vld [vmem:[%s1048_s0 + $0x2a] sm:$0x1]  ;;  %v337_v63 = vmul.f32 %v321_v42, %v305_v30  ;;  %v338_v19 = vmul.f32 %v322_v48, %v306_v36  ;;  %v352_v36 = vadd.f32 %v336_v15, %v870_v33 }
  0x27   : > { %v315_v50 = vld [vmem:[%s1048_s0 + $0x2e] sm:$0x1]  ;;  %v316_v51 = vld [vmem:[%s1048_s0 + $0x32] sm:$0x1]  ;;  %v325_v53 = vld [vmem:[%s703_s16 + $0x16] sm:$0x1]  ;;  %v339_v20 = vmul.f32 %v323_v49, %v307_v37 }
  0x28   : > { %v324_v52 = vld [vmem:[%s703_s16 + $0x12] sm:$0x1]  ;;  %v326_v60 = vld [vmem:[%s703_s16 + $0x1a] sm:$0x1]  ;;  %v317_v7 = vld [vmem:[%s1048_s0 + $0x36] sm:$0x1]  ;;  %v341_v22 = vmul.f32 %v325_v53, %v309_v46  ;;  %v353_v37 = vadd.f32 %v337_v63, %v872_v35 }
  0x29   : > { %v327_v8 = vld [vmem:[%s703_s16 + $0x1e] sm:$0x1]  ;;  %v328_v9 = vld [vmem:[%s703_s16 + $0x22] sm:$0x1]  ;;  %v329_v10 = vld [vmem:[%s703_s16 + $0x26] sm:$0x1]  ;;  %v340_v21 = vmul.f32 %v324_v52, %v308_v38  ;;  %v342_v23 = vmul.f32 %v326_v60, %v310_v47  ;;  %v354_v47 = vadd.f32 %v338_v19, %v885_v34 }
  0x2a   : > { %v330_v13 = vld [vmem:[%s703_s16 + $0x2a] sm:$0x1]  ;;  %v331_v62 = vld [vmem:[%s703_s16 + $0x2e] sm:$0x1]  ;;  %v332_v14 = vld [vmem:[%s703_s16 + $0x32] sm:$0x1]  ;;  %v343_v24 = vmul.f32 %v327_v8, %v311_v40  ;;  %v344_v25 = vmul.f32 %v328_v9, %v312_v41  ;;  %v345_v26 = vmul.f32 %v329_v10, %v313_v58  ;;  %v355_v40 = vadd.f32 %v339_v20, %v888_v39 }
  0x2b   : > { %v318_v0 = vld [vmem:[%s1048_s0 + $0x3a] sm:$0x1]  ;;  %v333_v17 = vld [vmem:[%s703_s16 + $0x36] sm:$0x1]  ;;  %v319_v5 = vld [vmem:[%s1048_s0 + $0x3e] sm:$0x1]  ;;  %v346_v12 = vmul.f32 %v330_v13, %v314_v59  ;;  %v347_v27 = vmul.f32 %v331_v62, %v315_v50  ;;  %v348_v28 = vmul.f32 %v332_v14, %v316_v51  ;;  %v356_v33 = vadd.f32 %v340_v21, %v891_v45 }
  0x2c   : > { %v334_v18 = vld [vmem:[%s703_s16 + $0x3a] sm:$0x1]  ;;  %v335_v6 = vld [vmem:[%s703_s16 + $0x3e] sm:$0x1]  ;;  %v368_v29 = vld [vmem:[%s1048_s0 + $0x3] sm:$0x1]  ;;  %v349_v31 = vmul.f32 %v333_v17, %v317_v7  ;;  %v357_v48 = vadd.f32 %v341_v22, %v293_v54  ;;  %v358_v34 = vadd.f32 %v342_v23, %v294_v55  ;;  %v359_v49 = vadd.f32 %v343_v24, %v295_v56 }
  0x2d   : > { %v369_v30 = vld [vmem:[%s1048_s0 + $0x7] sm:$0x1]  ;;  %v350_v32 = vmul.f32 %v334_v18, %v318_v0  ;;  %v370_v38 = vld [vmem:[%s1048_s0 + $0xb] sm:$0x1]  ;;  %v371_v43 = vld [vmem:[%s1048_s0 + $0xf] sm:$0x1]  ;;  %v351_v46 = vmul.f32 %v335_v6, %v319_v5  ;;  %v360_v39 = vadd.f32 %v344_v25, %v296_v57  ;;  %v361_v50 = vadd.f32 %v345_v26, %v297_v1 }
  0x2e   : > { %v372_v44 = vld [vmem:[%s1048_s0 + $0x13] sm:$0x1]  ;;  %v373_v35 = vld [vmem:[%s1048_s0 + $0x17] sm:$0x1]  ;;  %v374_v41 = vld [vmem:[%s1048_s0 + $0x1b] sm:$0x1]  ;;  %v362_v54 = vadd.f32 %v346_v12, %v298_v2  ;;  %v363_v55 = vadd.f32 %v347_v27, %v299_v3  ;;  %v364_v56 = vadd.f32 %v348_v28, %v300_v4  ;;  %v365_v1 = vadd.f32 %v349_v31, %v301_v11 }
  0x2f   : > { %v375_v42 = vld [vmem:[%s1048_s0 + $0x1f] sm:$0x1]  ;;  %v376_v45 = vld [vmem:[%s1048_s0 + $0x23] sm:$0x1]  ;;  %v377_v58 = vld [vmem:[%s1048_s0 + $0x27] sm:$0x1]  ;;  %v366_v2 = vadd.f32 %v350_v32, %v302_v61  ;;  %v367_v11 = vadd.f32 %v351_v46, %v303_v16 }
  0x30   : > { %v378_v59 = vld [vmem:[%s1048_s0 + $0x2b] sm:$0x1]  ;;  %v379_v57 = vld [vmem:[%s1048_s0 + $0x2f] sm:$0x1]  ;;  %v380_v51 = vld [vmem:[%s1048_s0 + $0x33] sm:$0x1] }
  0x31   : > { %v381_v52 = vld [vmem:[%s1048_s0 + $0x37] sm:$0x1]  ;;  %v384_v53 = vld [vmem:[%s703_s16 + $0x3] sm:$0x1]  ;;  %v385_v60 = vld [vmem:[%s703_s16 + $0x7] sm:$0x1] }
  0x32   : > { %v382_v3 = vld [vmem:[%s1048_s0 + $0x3b] sm:$0x1]  ;;  %v383_v4 = vld [vmem:[%s1048_s0 + $0x3f] sm:$0x1]  ;;  %v386_v7 = vld [vmem:[%s703_s16 + $0xb] sm:$0x1]  ;;  %v400_v10 = vmul.f32 %v384_v53, %v368_v29  ;;  %v401_v13 = vmul.f32 %v385_v60, %v369_v30 }
  0x33   : > { %v387_v8 = vld [vmem:[%s703_s16 + $0xf] sm:$0x1]  ;;  %v388_v9 = vld [vmem:[%s703_s16 + $0x13] sm:$0x1]  ;;  %v389_v61 = vld [vmem:[%s703_s16 + $0x17] sm:$0x1]  ;;  %v402_v15 = vmul.f32 %v386_v7, %v370_v38 }
  0x34   : > { %v390_v62 = vld [vmem:[%s703_s16 + $0x1b] sm:$0x1]  ;;  %v391_v14 = vld [vmem:[%s703_s16 + $0x1f] sm:$0x1]  ;;  %v403_v63 = vmul.f32 %v387_v8, %v371_v43  ;;  %v404_v0 = vmul.f32 %v388_v9, %v372_v44  ;;  %v392_v17 = vld [vmem:[%s703_s16 + $0x23] sm:$0x1]  ;;  %v405_v20 = vmul.f32 %v389_v61, %v373_v35  ;;  %v416_v6 = vadd.f32 %v400_v10, %v352_v36 }
  0x35   : > { %v393_v18 = vld [vmem:[%s703_s16 + $0x27] sm:$0x1]  ;;  %v394_v19 = vld [vmem:[%s703_s16 + $0x2b] sm:$0x1]  ;;  %v406_v21 = vmul.f32 %v390_v62, %v374_v41  ;;  %v407_v5 = vmul.f32 %v391_v14, %v375_v42  ;;  %v395_v22 = vld [vmem:[%s703_s16 + $0x2f] sm:$0x1]  ;;  %v408_v16 = vmul.f32 %v392_v17, %v376_v45  ;;  %v417_v12 = vadd.f32 %v401_v13, %v353_v37 }
  0x36   : > { %v396_v23 = vld [vmem:[%s703_s16 + $0x33] sm:$0x1]  ;;  %v397_v24 = vld [vmem:[%s703_s16 + $0x37] sm:$0x1]  ;;  %v409_v25 = vmul.f32 %v393_v18, %v377_v58  ;;  %v410_v26 = vmul.f32 %v394_v19, %v378_v59  ;;  %v398_v27 = vld [vmem:[%s703_s16 + $0x3b] sm:$0x1]  ;;  %v411_v29 = vmul.f32 %v395_v22, %v379_v57  ;;  %v418_v32 = vadd.f32 %v402_v15, %v354_v47 }
  0x37   : > { %v399_v28 = vld [vmem:[%s703_s16 + $0x3f] sm:$0x1]  ;;  %v412_v30 = vmul.f32 %v396_v23, %v380_v51  ;;  %v413_v31 = vmul.f32 %v397_v24, %v381_v52  ;;  %v414_v38 = vmul.f32 %v398_v27, %v382_v3  ;;  %v419_v44 = vadd.f32 %v403_v63, %v355_v40  ;;  %s615_s16 = sshll.u32 %s1056_s9, 4 }
  0x38   : > { %v415_v43 = vmul.f32 %v399_v28, %v383_v4  ;;  %v420_v46 = vadd.f32 %v404_v0, %v356_v33  ;;  %v421_v35 = vadd.f32 %v405_v20, %v357_v48  ;;  %v422_v41 = vadd.f32 %v406_v21, %v358_v34  ;;  %s191_s4 = scalar_lea.vmem %s1050_s2, %s615_s16 }
  0x39   : > { %v423_v36 = vadd.f32 %v407_v5, %v359_v49  ;;  %v424_v42 = vadd.f32 %v408_v16, %v360_v39  ;;  %v425_v53 = vadd.f32 %v409_v25, %v361_v50  ;;  %v426_v60 = vadd.f32 %v410_v26, %v362_v54 }
  0x3a   : > { %v427_v45 = vadd.f32 %v411_v29, %v363_v55  ;;  %v428_v58 = vadd.f32 %v412_v30, %v364_v56  ;;  %v429_v59 = vadd.f32 %v413_v31, %v365_v1  ;;  %v430_v37 = vadd.f32 %v414_v38, %v366_v2 }
  0x3b   : > { %v431_v7 = vadd.f32 %v415_v43, %v367_v11  ;;  %v432_v8 = vmul.f32 0.25, %v416_v6  ;;  %v433_v57 = vmul.f32 0.25, %v417_v12  ;;  %v434_v51 = vmul.f32 0.25, %v418_v32 }
  0x3c   : > { %v435_v52 = vmul.f32 0.25, %v419_v44  ;;  %v436_v47 = vmul.f32 0.25, %v420_v46  ;;  %v437_v3 = vmul.f32 0.25, %v421_v35  ;;  %v438_v4 = vmul.f32 0.25, %v422_v41 }
  0x3d   : > { %v439_v40 = vmul.f32 0.25, %v423_v36  ;;  %v440_v33 = vmul.f32 0.25, %v424_v42  ;;  %v441_v48 = vmul.f32 0.25, %v425_v53  ;;  %v442_v34 = vmul.f32 0.25, %v426_v60 }
  0x3e   : > { %v443_v49 = vmul.f32 0.25, %v427_v45  ;;  %v444_v39 = vmul.f32 0.25, %v428_v58  ;;  %v445_v50 = vmul.f32 0.25, %v429_v59  ;;  %v446_v54 = vmul.f32 0.25, %v430_v37 }
  0x3f   : > { %v447_v55 = vmul.f32 0.25, %v431_v7  ;;  %v464_v56 = vrot.slane %v433_v57, 7  ;;  %v467_v1 = vrot.slane %v434_v51, 6  ;;  %v470_v2 = vrot.slane %v435_v52, 5 }
  0x40   : > { %vm471_vm2 = vcmask 1043459   ;;  %v473_v10 = vrot.slane %v436_v47, 4  ;;  %vm474_vm3 = vcmask 1044484   ;;  %v476_v11 = vrot.slane %v437_v3, 3 }
  0x41   : > { %v466_v9 = vsel %vm465_vm0, %v464_v56, %v432_v8  ;;  %vm477_vm4 = vcmask 1045509   ;;  %v479_v61 = vrot.slane %v438_v4, 2  ;;  %vm480_vm5 = vcmask 1046534  }
  0x42   : > { %v469_v13 = vsel %vm468_vm1, %v467_v1, %v466_v9  ;;  %v482_v14 = vrot.slane %v439_v40, 1  ;;  %vm483_vm6 = vcmask 1047559   ;;  %v485_v63 = vrot.slane %v441_v48, 7 }
  0x43   : > { %v472_v62 = vsel %vm471_vm2, %v470_v2, %v469_v13  ;;  %v487_v0 = vrot.slane %v442_v34, 6  ;;  %v489_v17 = vrot.slane %v443_v49, 5  ;;  %v491_v19 = vrot.slane %v444_v39, 4 }
  0x44   : > { %v475_v15 = vsel %vm474_vm3, %v473_v10, %v472_v62  ;;  %v486_v21 = vsel %vm465_vm0, %v485_v63, %v440_v33  ;;  %v493_v5 = vrot.slane %v445_v50, 3  ;;  %v495_v23 = vrot.slane %v446_v54, 2 }
  0x45   : > { %v478_v18 = vsel %vm477_vm4, %v476_v11, %v475_v15  ;;  %v488_v22 = vsel %vm468_vm1, %v487_v0, %v486_v21  ;;  %v497_v16 = vrot.slane %v447_v55, 1 }
  0x46   : > { %v481_v20 = vsel %vm480_vm5, %v479_v61, %v478_v18  ;;  %v490_v24 = vsel %vm471_vm2, %v489_v17, %v488_v22 }
  0x47   : > { %v484_v6 = vsel %vm483_vm6, %v482_v14, %v481_v20  ;;  %v492_v25 = vsel %vm474_vm3, %v491_v19, %v490_v24 }
  0x48   : > { %501 = vst [vmem:[%s191_s4] sm:$0xff] %v484_v6  ;;  %v494_v26 = vsel %vm477_vm4, %v493_v5, %v492_v25 }
  0x49   : > { %v496_v12 = vsel %vm480_vm5, %v495_v23, %v494_v26 }
  0x4a   : > { %v498_v27 = vsel %vm483_vm6, %v497_v16, %v496_v12 }
  0x4b   : > { %502 = vst [vmem:[%s191_s4 + $0x8] sm:$0xff] %v498_v27 }
  0x4c PF: > { %s12_s11 = sadd.s32 1, %s662_s11   ;;  %s1051_s9 = smov %s658_s10 }
  0x4d   : > { %p9_p5 = scmp.ge.s32.totalorder %s12_s11, 4   ;;  %s1052_s10 = smov %s1054_s12 }
  0x4f   :  { %11 = sbr.rel (!%p9_p5) target bundleno = 2 (0x2), region = 61 }

// kernel: psmnet_forward.63
= control target key start
LH: loop header
LB: loop body
LE: loop exit
PB: predicated region body
PF: predicated region fallthrough
CT: control target
= control target key end

     0   :  { %s678_s15 = smov 0   ;;  %s680_s16 = smov 0   ;;  %s759_s0 = inlined_call_operand.vmem [shape: bf16[8,512], index: 0, kind: input, shape index: {}]   ;;  %s760_s1 = inlined_call_operand.vmem [shape: bf16[512,128], index: 1, kind: input, shape index: {}]   ;;  %s761_s2 = inlined_call_operand.vmem [shape: f32[8,1], index: 2, kind: input, shape index: {}]   ;;  %s762_s3 = inlined_call_operand.vmem [shape: f32[8,1], index: 3, kind: input, shape index: {}]   ;;  %s763_s4 = inlined_call_operand.vmem [shape: f32[8,128], index: 4, kind: output, shape index: {}]  }
   0x1   :  { %s682_s17 = smov 0  }
   0x2 LB: > { %s23_s18 = sadd.s32 1, %s645_s16  ;;  %p510_p0 = scmp.ge.s32.totalorder %s649_s17, 1  ;;  %s649_s17 = sphi %s682_s17, %s14_s17   ;;  %s645_s16 = sphi %s680_s16, %s765_s16   ;;  %s641_s15 = sphi %s678_s15, %s764_s15  }
   0x3   : > { %p24_p1 = scmp.ge.s32.totalorder %s23_s18, 2  ;;  %p191_p2 = scmp.lt.s32.totalorder %s649_s17, 3 }
   0x5   : > { %s767_s18 = smov (%p24_p1, %s23_s18), 0  ;;  %p192_p3 = pnand %p510_p0, %p191_p2 }
   0x6   : > { %s511_s19 = sshll.u32 (!%p192_p3), %s641_s15, 1  ;;  %s513_s20 = sshll.u32 (!%p192_p3), %s641_s15, 5 }
   0x7   : > { %195 = sbr.rel (%p192_p3) target bundleno = 317 (0x13d), region = 36  ;;  %p225_p4 = scmp.lt.s32.totalorder (!%p192_p3), %s511_s19, 3 }
   0x8   : > { %p231_p5 = scmp.lt.s32.totalorder (!%p192_p3), %s513_s20, 63  ;;  %p515_p6 = scmp.ne.s32.totalorder (!%p192_p3), %s641_s15, 0 }
   0xc   : > { %s769_s19 = smov (!%p225_p4, %s511_s19), 3  ;;  %s771_s20 = smov (!%p231_p5, %s513_s20), 63 }
   0xd   : > { %s512_s21 = sshll.u32 %s769_s19, 2  ;;  %s514_s25 = sshll.u32 %s771_s20, 2 }
   0xe   : > { %s703_s24 = scalar_lea.vmem %s759_s0, %s512_s21  ;;  %s708_s28 = scalar_lea.vmem %s760_s1, %s514_s25 }
   0xf   : > { %246 = sbr.rel (%p515_p6) target bundleno = 22 (0x16), region = 40 }
  0x14   : > { %v651_v0 = vmov 0.0  }
  0x15   : > { %247 = vst [vmem:[%s763_s4] sm:$0xff] %v651_v0 }
  0x16 PF: > { %v591_v1 = vld [vmem:[%s708_s28 + $0x38] sm:$0xff]  ;;  %v590_v3 = vld [vmem:[%s708_s28 + $0x30] sm:$0xff]  ;;  %v589_v5 = vld [vmem:[%s708_s28 + $0x28] sm:$0xff]  ;;  %p580_p7 = scmp.ne.s32.totalorder %s641_s15, 1 }
  0x17   : > { %v599_v2 = vld [vmem:[%s708_s28 + $0x78] sm:$0xff]  ;;  %385 = vmatpush.bf16.msra.mxu0 %v591_v1  ;;  %v598_v4 = vld [vmem:[%s708_s28 + $0x70] sm:$0xff]  ;;  %v597_v6 = vld [vmem:[%s708_s28 + $0x68] sm:$0xff] }
  0x18   : > { %398 = vmatpush.bf16.msra.mxu1 %v599_v2  ;;  %v588_v7 = vld [vmem:[%s708_s28 + $0x20] sm:$0xff]  ;;  %v587_v9 = vld [vmem:[%s708_s28 + $0x18] sm:$0xff]  ;;  %v586_v11 = vld [vmem:[%s708_s28 + $0x10] sm:$0xff] }
  0x19   : > { %v596_v8 = vld [vmem:[%s708_s28 + $0x60] sm:$0xff]  ;;  %v595_v10 = vld [vmem:[%s708_s28 + $0x58] sm:$0xff]  ;;  %v594_v12 = vld [vmem:[%s708_s28 + $0x50] sm:$0xff] }
  0x1a   : > { %v585_v13 = vld [vmem:[%s708_s28 + $0x8] sm:$0xff]  ;;  %v249_v15 = vld [vmem:[%s703_s24] sm:$0xff] }
  0x1b   : > { %386 = vmatpush.bf16.msra.mxu0 %v590_v3  ;;  %v593_v14 = vld [vmem:[%s708_s28 + $0x48] sm:$0xff]  ;;  %v283_v16 = vunpack.c.l.b16 %v249_v15  ;;  %v284_v17 = vunpack.c.h.b16 %v249_v15  ;;  %v584_v18 = vld [vmem:[%s708_s28] sm:$0xff] }
  0x1c   : > { %399 = vmatpush.bf16.msra.mxu1 %v598_v4  ;;  %v592_v19 = vld [vmem:[%s708_s28 + $0x40] sm:$0xff] }
  0x1d   : > { %v285_v20 = vpack.c.b16 %v283_v16, %v283_v16  ;;  %v286_v21 = vpack.c.b16 %v284_v17, %v284_v17  ;;  %v248_v23 = vld [vmem:[%s763_s4] sm:$0xff] }
  0x1f   : > { %387 = vmatpush.bf16.msra.mxu0 %v589_v5 }
  0x20   : > { %400 = vmatpush.bf16.msra.mxu1 %v597_v6 }
  0x23   : > { %388 = vmatpush.bf16.msra.mxu0 %v588_v7 }
  0x24   : > { %401 = vmatpush.bf16.msra.mxu1 %v596_v8 }
  0x27   : > { %389 = vmatpush.bf16.msra.mxu0 %v587_v9 }
  0x28   : > { %402 = vmatpush.bf16.msra.mxu1 %v595_v10 }
  0x2b   : > { %390 = vmatpush.bf16.msra.mxu0 %v586_v11 }
  0x2c   : > { %403 = vmatpush.bf16.msra.mxu1 %v594_v12 }
  0x2f   : > { %391 = vmatpush.bf16.msra.mxu0 %v585_v13 }
  0x30   : > { %404 = vmatpush.bf16.msra.mxu1 %v593_v14 }
  0x33   : > { %392 = vmatpush.bf16.msra.mxu0 %v584_v18 }
  0x34   : > { %405 = vmatpush.bf16.msra.mxu1 %v592_v19 }
  0x36   : > { %393 = vmatmul.bf16.vlgmr.msra.gmra.mxu0 %v285_v20 }
  0x37   : > { %406 = vmatmul.bf16.vlgmr.msra.gmra.mxu1 %v286_v21 }
  0xb3   : > { %v394_v22 = vpop.f32.mrf.mxu0 }
  0xb4   : > { %v407_v24 = vpop.f32.mrf.mxu1 }
  0xb5   : > { %v408_v25 = vadd.f32 %v407_v24, %v394_v22 }
  0xb7   : > { %v411_v26 = vadd.f32 %v408_v25, %v248_v23 }
  0xb8   : > { %416 = sbr.rel (%p580_p7) target bundleno = 317 (0x13d), region = 44 }
  0xb9   : > { %412 = vst [vmem:[%s763_s4] sm:$0xff] %v411_v26 }
  0xbb   : > { %v396_v27 = vpop.f32.mrf.mxu0 }
  0xbc   : > { %v409_v28 = vpop.f32.mrf.mxu1 }
  0xbd   : > { %v418_v29 = vld [vmem:[%s761_s2] sm:$0xff]  ;;  %v652_v30 = vmov 0  }
  0xbe   : > { %626 = vset.pattern.permute.xlu0 %v652_v30  ;;  %v425_v31 = vld [vmem:[%s762_s3] sm:$0xff] }
  0xbf   : > { %421 = vperm.xlu0 %626, %v418_v29  }
  0xc0   : > { %v417_v33 = vld [vmem:[%s763_s4] sm:$0xff] }
  0xc7   : > { %428 = vperm.xlu0 %626, %v425_v31  }
 0x131   : > { %v422_v32 = vpop.permute.xlu0 %421 }
 0x132   : > { %v424_v34 = vmul.f32 %v422_v32, %v417_v33 }
 0x139   : > { %v429_v35 = vpop.permute.xlu0 %428 }
 0x13a   : > { %v431_v36 = vadd.f32 %v429_v35, %v424_v34 }
 0x13c   : > { %432 = vst [vmem:[%s763_s4] sm:$0xff] %v431_v36 }
 0x13d PF: > { %s14_s17 = sadd.s32 1, %s649_s17   ;;  %s764_s15 = smov %s645_s16 }
 0x13e   : > { %p11_p8 = scmp.ge.s32.totalorder %s14_s17, 4   ;;  %s765_s16 = smov %s767_s18 }
 0x140   :  { %13 = sbr.rel (!%p11_p8) target bundleno = 2 (0x2), region = 77 }

// kernel: psmnet_forward.70
= control target key start
LH: loop header
LB: loop body
LE: loop exit
PB: predicated region body
PF: predicated region fallthrough
CT: control target
= control target key end

     0   :  { %s896_s15 = smov 0   ;;  %s898_s16 = smov 0   ;;  %s1075_s0 = inlined_call_operand.vmem [shape: bf16[32,1024], index: 0, kind: input, shape index: {}]   ;;  %s1076_s1 = inlined_call_operand.vmem [shape: bf16[1024,128], index: 1, kind: input, shape index: {}]   ;;  %s1077_s2 = inlined_call_operand.vmem [shape: f32[32,1], index: 2, kind: input, shape index: {}]   ;;  %s1078_s3 = inlined_call_operand.vmem [shape: f32[32,1], index: 3, kind: input, shape index: {}]   ;;  %s1079_s4 = inlined_call_operand.vmem [shape: f32[32,128], index: 4, kind: output, shape index: {}]  }
   0x1   :  { %s900_s17 = smov 0   ;;  %s902_s18 = smov 0  }
   0x2   :  { %s904_s19 = smov 0  }
   0x3 LB: > { %s23_s20 = sadd.s32 1, %s863_s18  ;;  %p40_p1 = scmp.ne.s32.totalorder %s855_s16, %s851_s15  ;;  %s867_s19 = sphi %s904_s19, %s14_s19   ;;  %s863_s18 = sphi %s902_s18, %s1083_s18   ;;  %s859_s17 = sphi %s900_s17, %s1082_s17   ;;  %s855_s16 = sphi %s898_s16, %s1081_s16   ;;  %s851_s15 = sphi %s896_s15, %s1080_s15  }
   0x4   : > { %p24_p0 = scmp.ge.s32.totalorder %s23_s20, 4  ;;  %p41_p2 = scmp.eq.s32.totalorder %s867_s19, 0 }
   0x5   : > { %s33_s22 = sadd.s32 1, %s855_s16  ;;  %p654_p5 = scmp.ge.s32.totalorder %s867_s19, 4 }
   0x6   : > { %s1085_s20 = smov (%p24_p0, %s23_s20), 0  ;;  %p42_p3 = por %p41_p2, %p40_p1 }
   0x7   : > { %s30_s21 = ssub.s32 %s863_s18, %s1085_s20  ;;  %168 = sbr.rel (%p654_p5) target bundleno = 20 (0x14), region = 24 }
   0x8   : > { %p31_p4 = scmp.eq.s32.totalorder %s30_s21, 0 }
   0xa   : > { %s931_s23 = scalar_select %p31_p4, %s855_s16, %s33_s22  }
   0xc   : > { %171 = sbr.rel (!%p42_p3) target bundleno = 20 (0x14), region = 28  ;;  %s173_s24 = sand.u32 (%p42_p3), 1, %s855_s16  }
   0xd   : > { %s747_s25 = sshll.u32 (%p42_p3), %s863_s18, 3  ;;  %s655_s26 = sshll.u32 (%p42_p3), %s173_s24, 5 }
   0xe   : > { %s178_s29 = scalar_lea.vmem (%p42_p3), %s1075_s0, %s747_s25  ;;  %s175_s30 = scalar_lea.vmem (%p42_p3), [#allocation2], %s655_s26 }
   0xf   : > { %v213_v0 = vld [vmem:[%s178_s29] sm:$0xff] (%p42_p3) }
  0x10   : > { %v215_v1 = vld [vmem:[%s178_s29 + $0x20] sm:$0xff] (%p42_p3)  ;;  %214 = vst [vmem:[%s175_s30] sm:$0xff] (%p42_p3), %v213_v0 }
  0x11   : > { %v217_v2 = vld [vmem:[%s178_s29 + $0x40] sm:$0xff]  ;;  %216 = vst [vmem:[%s175_s30 + $0x8] sm:$0xff] %v215_v1 }
  0x12   : > { %v219_v3 = vld [vmem:[%s178_s29 + $0x60] sm:$0xff]  ;;  %218 = vst [vmem:[%s175_s30 + $0x10] sm:$0xff] %v217_v2 }
  0x13   : > { %220 = vst [vmem:[%s175_s30 + $0x18] sm:$0xff] %v219_v3 }
  0x14 PF: > { %p658_p6 = scmp.ge.s32.totalorder %s867_s19, 1  ;;  %p237_p7 = scmp.lt.s32.totalorder %s867_s19, 5 }
  0x16   : > { %p238_p8 = pnand %p658_p6, %p237_p7 }
  0x17   : > { %s244_s5 = sand.u32 (!%p238_p8), 1, %s851_s15   ;;  %s660_s6 = sshll.u32 (!%p238_p8), %s859_s17, 5 }
  0x18   : > { %241 = sbr.rel (%p238_p8) target bundleno = 356 (0x164), region = 70  ;;  %s659_s7 = sshll.u32 (!%p238_p8), %s244_s5, 5 }
  0x19   : > { %p278_p9 = scmp.lt.s32.totalorder (!%p238_p8), %s660_s6, 127  ;;  %s948_s12 = scalar_lea.vmem (!%p238_p8), [#allocation2], %s659_s7 }
  0x1a   : > { %p662_p10 = scmp.ne.s32.totalorder (!%p238_p8), %s859_s17, 0 }
  0x1d   : > { %s1087_s6 = smov (!%p278_p9, %s660_s6), 127  ;;  %293 = sbr.rel (%p662_p10) target bundleno = 39 (0x27), region = 78 }
  0x1e   : > { %s661_s8 = sshll.u32 %s1087_s6, 2 }
  0x1f   : > { %s946_s11 = scalar_lea.vmem %s1076_s1, %s661_s8 }
  0x22   : > { %v869_v4 = vmov 0.0  }
  0x23   : > { %294 = vst [vmem:[%s1079_s4] sm:$0xff] %v869_v4 }
  0x24   : > { %295 = vst [vmem:[%s1079_s4 + $0x8] sm:$0xff] %v869_v4 }
  0x25   : > { %296 = vst [vmem:[%s1079_s4 + $0x10] sm:$0xff] %v869_v4 }
  0x26   : > { %297 = vst [vmem:[%s1079_s4 + $0x18] sm:$0xff] %v869_v4 }
  0x27 PF: > { %v759_v5 = vld [vmem:[%s946_s11 + $0x38] sm:$0xff]  ;;  %v758_v7 = vld [vmem:[%s946_s11 + $0x30] sm:$0xff]  ;;  %v757_v9 = vld [vmem:[%s946_s11 + $0x28] sm:$0xff]  ;;  %p743_p11 = scmp.ne.s32.totalorder %s859_s17, 3 }
  0x28   : > { %v767_v6 = vld [vmem:[%s946_s11 + $0x78] sm:$0xff]  ;;  %454 = vmatpush.bf16.msra.mxu0 %v759_v5  ;;  %768 = vmatpush.bf16.msra.mxu2 %v759_v5  ;;  %v766_v8 = vld [vmem:[%s946_s11 + $0x70] sm:$0xff]  ;;  %v765_v10 = vld [vmem:[%s946_s11 + $0x68] sm:$0xff] }
  0x29   : > { %473 = vmatpush.bf16.msra.mxu1 %v767_v6  ;;  %776 = vmatpush.bf16.msra.mxu3 %v767_v6  ;;  %v756_v11 = vld [vmem:[%s946_s11 + $0x20] sm:$0xff]  ;;  %v755_v13 = vld [vmem:[%s946_s11 + $0x18] sm:$0xff]  ;;  %v754_v15 = vld [vmem:[%s946_s11 + $0x10] sm:$0xff] }
  0x2a   : > { %v764_v12 = vld [vmem:[%s946_s11 + $0x60] sm:$0xff]  ;;  %v763_v14 = vld [vmem:[%s946_s11 + $0x58] sm:$0xff]  ;;  %v762_v16 = vld [vmem:[%s946_s11 + $0x50] sm:$0xff] }
  0x2b   : > { %v753_v17 = vld [vmem:[%s946_s11 + $0x8] sm:$0xff]  ;;  %v752_v19 = vld [vmem:[%s946_s11] sm:$0xff]  ;;  %v673_v23 = vld [vmem:[%s948_s12 + $0x10] sm:$0xf] }
  0x2c   : > { %455 = vmatpush.bf16.msra.mxu0 %v758_v7  ;;  %769 = vmatpush.bf16.msra.mxu2 %v758_v7  ;;  %v761_v18 = vld [vmem:[%s946_s11 + $0x48] sm:$0xff]  ;;  %v760_v20 = vld [vmem:[%s946_s11 + $0x40] sm:$0xff]  ;;  %v751_v24 = vld [vmem:[%s948_s12 + $0x14] sm:$0xf0] }
  0x2d   : > { %474 = vmatpush.bf16.msra.mxu1 %v766_v8  ;;  %777 = vmatpush.bf16.msra.mxu3 %v766_v8  ;;  %v665_v21 = vld [vmem:[%s948_s12] sm:$0xf]  ;;  %v749_v22 = vld [vmem:[%s948_s12 + $0x4] sm:$0xf0]  ;;  %v748_v25 = vld [vmem:[%s948_s12 + $0x4] sm:$0xf]  ;;  %v674_v30 = vor.u32 %v751_v24, %v673_v23 }
  0x2e   : > { %v667_v26 = vld [vmem:[%s948_s12 + $0x8] sm:$0xf0]  ;;  %v750_v27 = vld [vmem:[%s948_s12 + $0x14] sm:$0xf]  ;;  %v675_v28 = vld [vmem:[%s948_s12 + $0x18] sm:$0xf0]  ;;  %v666_v29 = vor.u32 %v749_v22, %v665_v21 }
  0x2f   : > { %v670_v31 = vor.u32 %v748_v25, %v667_v26  ;;  %v678_v32 = vor.u32 %v750_v27, %v675_v28  ;;  %v298_v34 = vld [vmem:[%s1079_s4] sm:$0xff]  ;;  %v300_v39 = vld [vmem:[%s1079_s4 + $0x10] sm:$0xff]  ;;  %v299_v43 = vld [vmem:[%s1079_s4 + $0x8] sm:$0xff] }
  0x30   : > { %456 = vmatpush.bf16.msra.mxu0 %v757_v9  ;;  %770 = vmatpush.bf16.msra.mxu2 %v757_v9  ;;  %v301_v49 = vld [vmem:[%s1079_s4 + $0x18] sm:$0xff] }
  0x31   : > { %475 = vmatpush.bf16.msra.mxu1 %v765_v10  ;;  %778 = vmatpush.bf16.msra.mxu3 %v765_v10 }
  0x34   : > { %457 = vmatpush.bf16.msra.mxu0 %v756_v11  ;;  %771 = vmatpush.bf16.msra.mxu2 %v756_v11 }
  0x35   : > { %476 = vmatpush.bf16.msra.mxu1 %v764_v12  ;;  %779 = vmatpush.bf16.msra.mxu3 %v764_v12 }
  0x38   : > { %458 = vmatpush.bf16.msra.mxu0 %v755_v13  ;;  %772 = vmatpush.bf16.msra.mxu2 %v755_v13 }
  0x39   : > { %477 = vmatpush.bf16.msra.mxu1 %v763_v14  ;;  %780 = vmatpush.bf16.msra.mxu3 %v763_v14 }
  0x3c   : > { %459 = vmatpush.bf16.msra.mxu0 %v754_v15  ;;  %773 = vmatpush.bf16.msra.mxu2 %v754_v15 }
  0x3d   : > { %478 = vmatpush.bf16.msra.mxu1 %v762_v16  ;;  %781 = vmatpush.bf16.msra.mxu3 %v762_v16 }
  0x40   : > { %460 = vmatpush.bf16.msra.mxu0 %v753_v17  ;;  %774 = vmatpush.bf16.msra.mxu2 %v753_v17 }
  0x41   : > { %479 = vmatpush.bf16.msra.mxu1 %v761_v18  ;;  %782 = vmatpush.bf16.msra.mxu3 %v761_v18 }
  0x44   : > { %461 = vmatpush.bf16.msra.mxu0 %v752_v19  ;;  %775 = vmatpush.bf16.msra.mxu2 %v752_v19 }
  0x45   : > { %480 = vmatpush.bf16.msra.mxu1 %v760_v20  ;;  %783 = vmatpush.bf16.msra.mxu3 %v760_v20 }
  0x47   : > { %462 = vmatmul.bf16.vlgmr.msra.gmra.mxu0 %v666_v29  ;;  %467 = vmatmul.bf16.vlgmr.msra.gmra.mxu2 %v674_v30 }
  0x48   : > { %481 = vmatmul.bf16.vlgmr.msra.gmra.mxu1 %v670_v31  ;;  %486 = vmatmul.bf16.vlgmr.msra.gmra.mxu3 %v678_v32 }
  0xc4   : > { %v463_v33 = vpop.f32.mrf.mxu0 }
  0xc5   : > { %v482_v35 = vpop.f32.mrf.mxu1 }
  0xc6   : > { %v483_v36 = vadd.f32 %v482_v35, %v463_v33 }
  0xc8   : > { %v492_v37 = vadd.f32 %v483_v36, %v298_v34 }
  0xca   : > { %496 = vst [vmem:[%s1079_s4] sm:$0xff] %v492_v37  ;;  %v468_v38 = vpop.f32.mrf.mxu2 }
  0xcb   : > { %v487_v40 = vpop.f32.mrf.mxu3 }
  0xcc   : > { %v488_v41 = vadd.f32 %v487_v40, %v468_v38  ;;  %v465_v42 = vpop.f32.mrf.mxu0 }
  0xcd   : > { %v484_v44 = vpop.f32.mrf.mxu1 }
  0xce   : > { %v494_v45 = vadd.f32 %v488_v41, %v300_v39  ;;  %v485_v46 = vadd.f32 %v484_v44, %v465_v42 }
  0xd0   : > { %498 = vst [vmem:[%s1079_s4 + $0x10] sm:$0xff] %v494_v45  ;;  %v493_v47 = vadd.f32 %v485_v46, %v299_v43 }
  0xd2   : > { %497 = vst [vmem:[%s1079_s4 + $0x8] sm:$0xff] %v493_v47  ;;  %v470_v48 = vpop.f32.mrf.mxu2 }
  0xd3   : > { %v489_v50 = vpop.f32.mrf.mxu3 }
  0xd4   : > { %v490_v51 = vadd.f32 %v489_v50, %v470_v48  ;;  %503 = sbr.rel (%p743_p11) target bundleno = 356 (0x164), region = 82 }
  0xd6   : > { %v495_v52 = vadd.f32 %v490_v51, %v301_v49 }
  0xd8   : > { %499 = vst [vmem:[%s1079_s4 + $0x18] sm:$0xff] %v495_v52 }
  0xd9   : > { %v510_v53 = vld [vmem:[%s1077_s2 + $0x10] sm:$0xff]  ;;  %v508_v54 = vld [vmem:[%s1077_s2] sm:$0xff]  ;;  %v870_v55 = vmov 0   ;;  %v511_v57 = vld [vmem:[%s1077_s2 + $0x18] sm:$0xff] }
  0xda   : > { %827 = vset.pattern.permute.xlu1 %v870_v55  ;;  %826 = vset.pattern.permute.xlu0 %v870_v55  ;;  %v536_v56 = vld [vmem:[%s1078_s3] sm:$0xff]  ;;  %v509_v58 = vld [vmem:[%s1077_s2 + $0x8] sm:$0xff]  ;;  %v539_v60 = vld [vmem:[%s1078_s3 + $0x18] sm:$0xff] }
  0xdb   : > { %524 = vperm.xlu1 %827, %v510_v53   ;;  %514 = vperm.xlu0 %826, %v508_v54   ;;  %v537_v59 = vld [vmem:[%s1078_s3 + $0x8] sm:$0xff]  ;;  %v538_v61 = vld [vmem:[%s1078_s3 + $0x10] sm:$0xff]  ;;  %v504_v62 = vld [vmem:[%s1079_s4] sm:$0xff] }
  0xdc   : > { %828 = vset.pattern.permute.xlu2 %v870_v55  ;;  %v505_v5 = vld [vmem:[%s1079_s4 + $0x8] sm:$0xff]  ;;  %v506_v11 = vld [vmem:[%s1079_s4 + $0x10] sm:$0xff] }
  0xdd   : > { %542 = vperm.xlu2 %828, %v536_v56  }
  0xdf   : > { %v507_v12 = vld [vmem:[%s1079_s4 + $0x18] sm:$0xff] }
  0xe3   : > { %529 = vperm.xlu1 %827, %v511_v57   ;;  %519 = vperm.xlu0 %826, %v509_v58  }
  0xe5   : > { %547 = vperm.xlu2 %828, %v537_v59  }
  0xeb   : > { %557 = vperm.xlu1 %827, %v539_v60   ;;  %552 = vperm.xlu0 %826, %v538_v61  }
 0x137   : > { %v543_v63 = vpop.permute.xlu2 %542 }
 0x13f   : > { %v548_v9 = vpop.permute.xlu2 %547 }
 0x14d   : > { %v525_v0 = vpop.permute.xlu1 %524  ;;  %v515_v1 = vpop.permute.xlu0 %514 }
 0x14e   : > { %v532_v2 = vmul.f32 %v515_v1, %v504_v62  ;;  %v534_v14 = vmul.f32 %v525_v0, %v506_v11 }
 0x150   : > { %v560_v3 = vadd.f32 %v543_v63, %v532_v2 }
 0x152   : > { %v564_v4 = vmax.f32 %v560_v3, 0.0 }
 0x154   : > { %568 = vst [vmem:[%s1079_s4] sm:$0xff] %v564_v4 }
 0x155   : > { %v530_v6 = vpop.permute.xlu1 %529  ;;  %v520_v7 = vpop.permute.xlu0 %519 }
 0x156   : > { %v533_v8 = vmul.f32 %v520_v7, %v505_v5  ;;  %v535_v15 = vmul.f32 %v530_v6, %v507_v12 }
 0x158   : > { %v561_v10 = vadd.f32 %v548_v9, %v533_v8 }
 0x15a   : > { %v565_v13 = vmax.f32 %v561_v10, 0.0 }
 0x15c   : > { %569 = vst [vmem:[%s1079_s4 + $0x8] sm:$0xff] %v565_v13 }
 0x15d   : > { %v558_v16 = vpop.permute.xlu1 %557  ;;  %v553_v17 = vpop.permute.xlu0 %552 }
 0x15e   : > { %v563_v18 = vadd.f32 %v558_v16, %v535_v15  ;;  %v562_v19 = vadd.f32 %v553_v17, %v534_v14 }
 0x160   : > { %v567_v20 = vmax.f32 %v563_v18, 0.0  ;;  %v566_v21 = vmax.f32 %v562_v19, 0.0 }
 0x162   : > { %571 = vst [vmem:[%s1079_s4 + $0x18] sm:$0xff] %v567_v20 }
 0x163   : > { %570 = vst [vmem:[%s1079_s4 + $0x10] sm:$0xff] %v566_v21 }
 0x164 PF: > { %s14_s19 = sadd.s32 1, %s867_s19   ;;  %s1080_s15 = smov %s855_s16 }
 0x165   : > { %p11_p12 = scmp.ge.s32.totalorder %s14_s19, 6   ;;  %s1081_s16 = smov %s931_s23 }
 0x166   : > { %s1082_s17 = smov %s863_s18  ;;  %s1083_s18 = smov %s1085_s20 }
 0x167   :  { %13 = sbr.rel (!%p11_p12) target bundleno = 3 (0x3), region = 120 }

// kernel: psmnet_forward.75
= control target key start
LH: loop header
LB: loop body
LE: loop exit
PB: predicated region body
PF: predicated region fallthrough
CT: control target
= control target key end

     0   :  { %s896_s15 = smov 0   ;;  %s898_s16 = smov 0   ;;  %s1075_s0 = inlined_call_operand.vmem [shape: bf16[32,2816], index: 0, kind: input, shape index: {}]   ;;  %s1076_s1 = inlined_call_operand.vmem [shape: bf16[2816,128], index: 1, kind: input, shape index: {}]   ;;  %s1077_s2 = inlined_call_operand.vmem [shape: f32[32,1], index: 2, kind: input, shape index: {}]   ;;  %s1078_s3 = inlined_call_operand.vmem [shape: f32[32,1], index: 3, kind: input, shape index: {}]   ;;  %s1079_s4 = inlined_call_operand.vmem [shape: f32[32,128], index: 4, kind: output, shape index: {}]  }
   0x1   :  { %s900_s17 = smov 0   ;;  %s902_s18 = smov 0  }
   0x2   :  { %s904_s19 = smov 0  }
   0x3 LB: > { %s23_s20 = sadd.s32 1, %s863_s18  ;;  %p40_p1 = scmp.ne.s32.totalorder %s855_s16, %s851_s15  ;;  %s867_s19 = sphi %s904_s19, %s14_s19   ;;  %s863_s18 = sphi %s902_s18, %s1083_s18   ;;  %s859_s17 = sphi %s900_s17, %s1082_s17   ;;  %s855_s16 = sphi %s898_s16, %s1081_s16   ;;  %s851_s15 = sphi %s896_s15, %s1080_s15  }
   0x4   : > { %p24_p0 = scmp.ge.s32.totalorder %s23_s20, 11  ;;  %p41_p2 = scmp.eq.s32.totalorder %s867_s19, 0 }
   0x5   : > { %s33_s22 = sadd.s32 1, %s855_s16  ;;  %p654_p5 = scmp.ge.s32.totalorder %s867_s19, 11 }
   0x6   : > { %s1085_s20 = smov (%p24_p0, %s23_s20), 0  ;;  %p42_p3 = por %p41_p2, %p40_p1 }
   0x7   : > { %s30_s21 = ssub.s32 %s863_s18, %s1085_s20  ;;  %168 = sbr.rel (%p654_p5) target bundleno = 20 (0x14), region = 24 }
   0x8   : > { %p31_p4 = scmp.eq.s32.totalorder %s30_s21, 0 }
   0xa   : > { %s931_s23 = scalar_select %p31_p4, %s855_s16, %s33_s22  }
   0xc   : > { %171 = sbr.rel (!%p42_p3) target bundleno = 20 (0x14), region = 28  ;;  %s173_s24 = sand.u32 (%p42_p3), 1, %s855_s16  }
   0xd   : > { %s747_s25 = sshll.u32 (%p42_p3), %s863_s18, 3  ;;  %s655_s26 = sshll.u32 (%p42_p3), %s173_s24, 5 }
   0xe   : > { %s178_s29 = scalar_lea.vmem (%p42_p3), %s1075_s0, %s747_s25  ;;  %s175_s30 = scalar_lea.vmem (%p42_p3), [#allocation2], %s655_s26 }
   0xf   : > { %v213_v0 = vld [vmem:[%s178_s29] sm:$0xff] (%p42_p3)  ;;  %v215_v1 = vld [vmem:[%s178_s29 + $0x58] sm:$0xff] (%p42_p3)  ;;  %v217_v2 = vld [vmem:[%s178_s29 + $0xb0] sm:$0xff] (%p42_p3) }
  0x10   : > { %214 = vst [vmem:[%s175_s30] sm:$0xff] (%p42_p3), %v213_v0  ;;  %v219_v3 = vld [vmem:[%s178_s29 + $0x108] sm:$0xff] (%p42_p3) }
  0x11   : > { %216 = vst [vmem:[%s175_s30 + $0x8] sm:$0xff] %v215_v1 }
  0x12   : > { %218 = vst [vmem:[%s175_s30 + $0x10] sm:$0xff] %v217_v2 }
  0x13   : > { %220 = vst [vmem:[%s175_s30 + $0x18] sm:$0xff] %v219_v3 }
  0x14 PF: > { %p658_p6 = scmp.ge.s32.totalorder %s867_s19, 1  ;;  %p237_p7 = scmp.lt.s32.totalorder %s867_s19, 12 }
  0x16   : > { %p238_p8 = pnand %p658_p6, %p237_p7 }
  0x17   : > { %s244_s5 = sand.u32 (!%p238_p8), 1, %s851_s15   ;;  %s660_s6 = sshll.u32 (!%p238_p8), %s859_s17, 5 }
  0x18   : > { %241 = sbr.rel (%p238_p8) target bundleno = 356 (0x164), region = 70  ;;  %s659_s7 = sshll.u32 (!%p238_p8), %s244_s5, 5 }
  0x19   : > { %p278_p9 = scmp.lt.s32.totalorder (!%p238_p8), %s660_s6, 351  ;;  %s948_s12 = scalar_lea.vmem (!%p238_p8), [#allocation2], %s659_s7 }
  0x1a   : > { %p662_p10 = scmp.ne.s32.totalorder (!%p238_p8), %s859_s17, 0 }
  0x1d   : > { %s1087_s6 = smov (!%p278_p9, %s660_s6), 351  ;;  %293 = sbr.rel (%p662_p10) target bundleno = 39 (0x27), region = 78 }
  0x1e   : > { %s661_s8 = sshll.u32 %s1087_s6, 2 }
  0x1f   : > { %s946_s11 = scalar_lea.vmem %s1076_s1, %s661_s8 }
  0x22   : > { %v869_v4 = vmov 0.0  }
  0x23   : > { %294 = vst [vmem:[%s1079_s4] sm:$0xff] %v869_v4 }
  0x24   : > { %295 = vst [vmem:[%s1079_s4 + $0x8] sm:$0xff] %v869_v4 }
  0x25   : > { %296 = vst [vmem:[%s1079_s4 + $0x10] sm:$0xff] %v869_v4 }
  0x26   : > { %297 = vst [vmem:[%s1079_s4 + $0x18] sm:$0xff] %v869_v4 }
  0x27 PF: > { %v759_v5 = vld [vmem:[%s946_s11 + $0x38] sm:$0xff]  ;;  %v758_v7 = vld [vmem:[%s946_s11 + $0x30] sm:$0xff]  ;;  %v757_v9 = vld [vmem:[%s946_s11 + $0x28] sm:$0xff]  ;;  %p743_p11 = scmp.ne.s32.totalorder %s859_s17, 10 }
  0x28   : > { %v767_v6 = vld [vmem:[%s946_s11 + $0x78] sm:$0xff]  ;;  %454 = vmatpush.bf16.msra.mxu0 %v759_v5  ;;  %768 = vmatpush.bf16.msra.mxu2 %v759_v5  ;;  %v766_v8 = vld [vmem:[%s946_s11 + $0x70] sm:$0xff]  ;;  %v765_v10 = vld [vmem:[%s946_s11 + $0x68] sm:$0xff] }
  0x29   : > { %473 = vmatpush.bf16.msra.mxu1 %v767_v6  ;;  %776 = vmatpush.bf16.msra.mxu3 %v767_v6  ;;  %v756_v11 = vld [vmem:[%s946_s11 + $0x20] sm:$0xff]  ;;  %v755_v13 = vld [vmem:[%s946_s11 + $0x18] sm:$0xff]  ;;  %v754_v15 = vld [vmem:[%s946_s11 + $0x10] sm:$0xff] }
  0x2a   : > { %v764_v12 = vld [vmem:[%s946_s11 + $0x60] sm:$0xff]  ;;  %v763_v14 = vld [vmem:[%s946_s11 + $0x58] sm:$0xff]  ;;  %v762_v16 = vld [vmem:[%s946_s11 + $0x50] sm:$0xff] }
  0x2b   : > { %v753_v17 = vld [vmem:[%s946_s11 + $0x8] sm:$0xff]  ;;  %v752_v19 = vld [vmem:[%s946_s11] sm:$0xff]  ;;  %v673_v23 = vld [vmem:[%s948_s12 + $0x10] sm:$0xf] }
  0x2c   : > { %455 = vmatpush.bf16.msra.mxu0 %v758_v7  ;;  %769 = vmatpush.bf16.msra.mxu2 %v758_v7  ;;  %v761_v18 = vld [vmem:[%s946_s11 + $0x48] sm:$0xff]  ;;  %v760_v20 = vld [vmem:[%s946_s11 + $0x40] sm:$0xff]  ;;  %v751_v24 = vld [vmem:[%s948_s12 + $0x14] sm:$0xf0] }
  0x2d   : > { %474 = vmatpush.bf16.msra.mxu1 %v766_v8  ;;  %777 = vmatpush.bf16.msra.mxu3 %v766_v8  ;;  %v665_v21 = vld [vmem:[%s948_s12] sm:$0xf]  ;;  %v749_v22 = vld [vmem:[%s948_s12 + $0x4] sm:$0xf0]  ;;  %v748_v25 = vld [vmem:[%s948_s12 + $0x4] sm:$0xf]  ;;  %v674_v30 = vor.u32 %v751_v24, %v673_v23 }
  0x2e   : > { %v667_v26 = vld [vmem:[%s948_s12 + $0x8] sm:$0xf0]  ;;  %v750_v27 = vld [vmem:[%s948_s12 + $0x14] sm:$0xf]  ;;  %v675_v28 = vld [vmem:[%s948_s12 + $0x18] sm:$0xf0]  ;;  %v666_v29 = vor.u32 %v749_v22, %v665_v21 }
  0x2f   : > { %v670_v31 = vor.u32 %v748_v25, %v667_v26  ;;  %v678_v32 = vor.u32 %v750_v27, %v675_v28  ;;  %v298_v34 = vld [vmem:[%s1079_s4] sm:$0xff]  ;;  %v300_v39 = vld [vmem:[%s1079_s4 + $0x10] sm:$0xff]  ;;  %v299_v43 = vld [vmem:[%s1079_s4 + $0x8] sm:$0xff] }
  0x30   : > { %456 = vmatpush.bf16.msra.mxu0 %v757_v9  ;;  %770 = vmatpush.bf16.msra.mxu2 %v757_v9  ;;  %v301_v49 = vld [vmem:[%s1079_s4 + $0x18] sm:$0xff] }
  0x31   : > { %475 = vmatpush.bf16.msra.mxu1 %v765_v10  ;;  %778 = vmatpush.bf16.msra.mxu3 %v765_v10 }
  0x34   : > { %457 = vmatpush.bf16.msra.mxu0 %v756_v11  ;;  %771 = vmatpush.bf16.msra.mxu2 %v756_v11 }
  0x35   : > { %476 = vmatpush.bf16.msra.mxu1 %v764_v12  ;;  %779 = vmatpush.bf16.msra.mxu3 %v764_v12 }
  0x38   : > { %458 = vmatpush.bf16.msra.mxu0 %v755_v13  ;;  %772 = vmatpush.bf16.msra.mxu2 %v755_v13 }
  0x39   : > { %477 = vmatpush.bf16.msra.mxu1 %v763_v14  ;;  %780 = vmatpush.bf16.msra.mxu3 %v763_v14 }
  0x3c   : > { %459 = vmatpush.bf16.msra.mxu0 %v754_v15  ;;  %773 = vmatpush.bf16.msra.mxu2 %v754_v15 }
  0x3d   : > { %478 = vmatpush.bf16.msra.mxu1 %v762_v16  ;;  %781 = vmatpush.bf16.msra.mxu3 %v762_v16 }
  0x40   : > { %460 = vmatpush.bf16.msra.mxu0 %v753_v17  ;;  %774 = vmatpush.bf16.msra.mxu2 %v753_v17 }
  0x41   : > { %479 = vmatpush.bf16.msra.mxu1 %v761_v18  ;;  %782 = vmatpush.bf16.msra.mxu3 %v761_v18 }
  0x44   : > { %461 = vmatpush.bf16.msra.mxu0 %v752_v19  ;;  %775 = vmatpush.bf16.msra.mxu2 %v752_v19 }
  0x45   : > { %480 = vmatpush.bf16.msra.mxu1 %v760_v20  ;;  %783 = vmatpush.bf16.msra.mxu3 %v760_v20 }
  0x47   : > { %462 = vmatmul.bf16.vlgmr.msra.gmra.mxu0 %v666_v29  ;;  %467 = vmatmul.bf16.vlgmr.msra.gmra.mxu2 %v674_v30 }
  0x48   : > { %481 = vmatmul.bf16.vlgmr.msra.gmra.mxu1 %v670_v31  ;;  %486 = vmatmul.bf16.vlgmr.msra.gmra.mxu3 %v678_v32 }
  0xc4   : > { %v463_v33 = vpop.f32.mrf.mxu0 }
  0xc5   : > { %v482_v35 = vpop.f32.mrf.mxu1 }
  0xc6   : > { %v483_v36 = vadd.f32 %v482_v35, %v463_v33 }
  0xc8   : > { %v492_v37 = vadd.f32 %v483_v36, %v298_v34 }
  0xca   : > { %496 = vst [vmem:[%s1079_s4] sm:$0xff] %v492_v37  ;;  %v468_v38 = vpop.f32.mrf.mxu2 }
  0xcb   : > { %v487_v40 = vpop.f32.mrf.mxu3 }
  0xcc   : > { %v488_v41 = vadd.f32 %v487_v40, %v468_v38  ;;  %v465_v42 = vpop.f32.mrf.mxu0 }
  0xcd   : > { %v484_v44 = vpop.f32.mrf.mxu1 }
  0xce   : > { %v494_v45 = vadd.f32 %v488_v41, %v300_v39  ;;  %v485_v46 = vadd.f32 %v484_v44, %v465_v42 }
  0xd0   : > { %498 = vst [vmem:[%s1079_s4 + $0x10] sm:$0xff] %v494_v45  ;;  %v493_v47 = vadd.f32 %v485_v46, %v299_v43 }
  0xd2   : > { %497 = vst [vmem:[%s1079_s4 + $0x8] sm:$0xff] %v493_v47  ;;  %v470_v48 = vpop.f32.mrf.mxu2 }
  0xd3   : > { %v489_v50 = vpop.f32.mrf.mxu3 }
  0xd4   : > { %v490_v51 = vadd.f32 %v489_v50, %v470_v48  ;;  %503 = sbr.rel (%p743_p11) target bundleno = 356 (0x164), region = 82 }
  0xd6   : > { %v495_v52 = vadd.f32 %v490_v51, %v301_v49 }
  0xd8   : > { %499 = vst [vmem:[%s1079_s4 + $0x18] sm:$0xff] %v495_v52 }
  0xd9   : > { %v510_v53 = vld [vmem:[%s1077_s2 + $0x10] sm:$0xff]  ;;  %v508_v54 = vld [vmem:[%s1077_s2] sm:$0xff]  ;;  %v870_v55 = vmov 0   ;;  %v511_v57 = vld [vmem:[%s1077_s2 + $0x18] sm:$0xff] }
  0xda   : > { %827 = vset.pattern.permute.xlu1 %v870_v55  ;;  %826 = vset.pattern.permute.xlu0 %v870_v55  ;;  %v536_v56 = vld [vmem:[%s1078_s3] sm:$0xff]  ;;  %v509_v58 = vld [vmem:[%s1077_s2 + $0x8] sm:$0xff]  ;;  %v539_v60 = vld [vmem:[%s1078_s3 + $0x18] sm:$0xff] }
  0xdb   : > { %524 = vperm.xlu1 %827, %v510_v53   ;;  %514 = vperm.xlu0 %826, %v508_v54   ;;  %v537_v59 = vld [vmem:[%s1078_s3 + $0x8] sm:$0xff]  ;;  %v538_v61 = vld [vmem:[%s1078_s3 + $0x10] sm:$0xff]  ;;  %v504_v62 = vld [vmem:[%s1079_s4] sm:$0xff] }
  0xdc   : > { %828 = vset.pattern.permute.xlu2 %v870_v55  ;;  %v505_v5 = vld [vmem:[%s1079_s4 + $0x8] sm:$0xff]  ;;  %v506_v11 = vld [vmem:[%s1079_s4 + $0x10] sm:$0xff] }
  0xdd   : > { %542 = vperm.xlu2 %828, %v536_v56  }
  0xdf   : > { %v507_v12 = vld [vmem:[%s1079_s4 + $0x18] sm:$0xff] }
  0xe3   : > { %529 = vperm.xlu1 %827, %v511_v57   ;;  %519 = vperm.xlu0 %826, %v509_v58  }
  0xe5   : > { %547 = vperm.xlu2 %828, %v537_v59  }
  0xeb   : > { %557 = vperm.xlu1 %827, %v539_v60   ;;  %552 = vperm.xlu0 %826, %v538_v61  }
 0x137   : > { %v543_v63 = vpop.permute.xlu2 %542 }
 0x13f   : > { %v548_v9 = vpop.permute.xlu2 %547 }
 0x14d   : > { %v525_v0 = vpop.permute.xlu1 %524  ;;  %v515_v1 = vpop.permute.xlu0 %514 }
 0x14e   : > { %v532_v2 = vmul.f32 %v515_v1, %v504_v62  ;;  %v534_v14 = vmul.f32 %v525_v0, %v506_v11 }
 0x150   : > { %v560_v3 = vadd.f32 %v543_v63, %v532_v2 }
 0x152   : > { %v564_v4 = vmax.f32 %v560_v3, 0.0 }
 0x154   : > { %568 = vst [vmem:[%s1079_s4] sm:$0xff] %v564_v4 }
 0x155   : > { %v530_v6 = vpop.permute.xlu1 %529  ;;  %v520_v7 = vpop.permute.xlu0 %519 }
 0x156   : > { %v533_v8 = vmul.f32 %v520_v7, %v505_v5  ;;  %v535_v15 = vmul.f32 %v530_v6, %v507_v12 }
 0x158   : > { %v561_v10 = vadd.f32 %v548_v9, %v533_v8 }
 0x15a   : > { %v565_v13 = vmax.f32 %v561_v10, 0.0 }
 0x15c   : > { %569 = vst [vmem:[%s1079_s4 + $0x8] sm:$0xff] %v565_v13 }
 0x15d   : > { %v558_v16 = vpop.permute.xlu1 %557  ;;  %v553_v17 = vpop.permute.xlu0 %552 }
 0x15e   : > { %v563_v18 = vadd.f32 %v558_v16, %v535_v15  ;;  %v562_v19 = vadd.f32 %v553_v17, %v534_v14 }
 0x160   : > { %v567_v20 = vmax.f32 %v563_v18, 0.0  ;;  %v566_v21 = vmax.f32 %v562_v19, 0.0 }
 0x162   : > { %571 = vst [vmem:[%s1079_s4 + $0x18] sm:$0xff] %v567_v20 }
 0x163   : > { %570 = vst [vmem:[%s1079_s4 + $0x10] sm:$0xff] %v566_v21 }
 0x164 PF: > { %s14_s19 = sadd.s32 1, %s867_s19   ;;  %s1080_s15 = smov %s855_s16 }
 0x165   : > { %p11_p12 = scmp.ge.s32.totalorder %s14_s19, 13   ;;  %s1081_s16 = smov %s931_s23 }
 0x166   : > { %s1082_s17 = smov %s863_s18  ;;  %s1083_s18 = smov %s1085_s20 }
 0x167   :  { %13 = sbr.rel (!%p11_p12) target bundleno = 3 (0x3), region = 120 }

// kernel: psmnet_forward.83
= control target key start
LH: loop header
LB: loop body
LE: loop exit
PB: predicated region body
PF: predicated region fallthrough
CT: control target
= control target key end

     0   :  { %v419_v2 = vmov 0   ;;  %s553_s1 = inlined_call_operand.vmem [shape: bf16[256,128], index: 1, kind: input, shape index: {}]   ;;  %s554_s2 = inlined_call_operand.vmem [shape: f32[32,1], index: 2, kind: input, shape index: {}]   ;;  %s555_s3 = inlined_call_operand.vmem [shape: f32[32,1], index: 3, kind: input, shape index: {}]   ;;  %s556_s0 = inlined_call_operand.vmem [shape: bf16[32,256], index: 0, kind: input, shape index: {}]   ;;  %s557_s4 = inlined_call_operand.vmem [shape: f32[32,128], index: 4, kind: output, shape index: {}]  }
   0x1   :  { %v389_v0 = vld [vmem:[%s553_s1 + $0x38] sm:$0xff]  ;;  %417 = vset.pattern.permute.xlu1 %v419_v2  ;;  %416 = vset.pattern.permute.xlu0 %v419_v2  ;;  %v388_v3 = vld [vmem:[%s553_s1 + $0x30] sm:$0xff]  ;;  %v387_v5 = vld [vmem:[%s553_s1 + $0x28] sm:$0xff] }
   0x2   :  { %v397_v1 = vld [vmem:[%s553_s1 + $0x78] sm:$0xff]  ;;  %418 = vset.pattern.permute.xlu2 %v419_v2  ;;  %181 = vmatpush.bf16.msra.mxu0 %v389_v0  ;;  %v396_v4 = vld [vmem:[%s553_s1 + $0x70] sm:$0xff]  ;;  %v395_v6 = vld [vmem:[%s553_s1 + $0x68] sm:$0xff] }
   0x3   :  { %398 = vmatpush.bf16.msra.mxu2 %v389_v0  ;;  %200 = vmatpush.bf16.msra.mxu1 %v397_v1  ;;  %v236_v7 = vld [vmem:[%s554_s2 + $0x10] sm:$0xff]  ;;  %v234_v8 = vld [vmem:[%s554_s2] sm:$0xff]  ;;  %v385_v12 = vld [vmem:[%s553_s1 + $0x18] sm:$0xff] }
   0x4   :  { %406 = vmatpush.bf16.msra.mxu3 %v397_v1  ;;  %250 = vperm.xlu1 %417, %v236_v7   ;;  %v386_v9 = vld [vmem:[%s553_s1 + $0x20] sm:$0xff]  ;;  %v237_v13 = vld [vmem:[%s554_s2 + $0x18] sm:$0xff]  ;;  %v235_v14 = vld [vmem:[%s554_s2 + $0x8] sm:$0xff] }
   0x5   :  { %240 = vperm.xlu0 %416, %v234_v8   ;;  %v262_v10 = vld [vmem:[%s555_s3] sm:$0xff]  ;;  %v393_v15 = vld [vmem:[%s553_s1 + $0x58] sm:$0xff]  ;;  %v263_v16 = vld [vmem:[%s555_s3 + $0x8] sm:$0xff] }
   0x6   :  { %182 = vmatpush.bf16.msra.mxu0 %v388_v3  ;;  %v394_v11 = vld [vmem:[%s553_s1 + $0x60] sm:$0xff]  ;;  %268 = vperm.xlu2 %418, %v262_v10   ;;  %v384_v17 = vld [vmem:[%s553_s1 + $0x10] sm:$0xff]  ;;  %v383_v19 = vld [vmem:[%s553_s1 + $0x8] sm:$0xff] }
   0x7   :  { %399 = vmatpush.bf16.msra.mxu2 %v388_v3  ;;  %201 = vmatpush.bf16.msra.mxu1 %v396_v4  ;;  %v392_v18 = vld [vmem:[%s553_s1 + $0x50] sm:$0xff]  ;;  %v265_v20 = vld [vmem:[%s555_s3 + $0x18] sm:$0xff]  ;;  %v391_v22 = vld [vmem:[%s553_s1 + $0x48] sm:$0xff] }
   0x8   :  { %407 = vmatpush.bf16.msra.mxu3 %v396_v4  ;;  %v264_v21 = vld [vmem:[%s555_s3 + $0x10] sm:$0xff]  ;;  %v382_v23 = vld [vmem:[%s553_s1] sm:$0xff]  ;;  %v379_v26 = vld [vmem:[%s556_s0 + $0x4] sm:$0xf0] }
   0x9   :  { %v390_v24 = vld [vmem:[%s553_s1 + $0x40] sm:$0xff]  ;;  %v308_v27 = vld [vmem:[%s556_s0 + $0x10] sm:$0xf]  ;;  %v381_v28 = vld [vmem:[%s556_s0 + $0x14] sm:$0xf0] }
   0xa   :  { %183 = vmatpush.bf16.msra.mxu0 %v387_v5  ;;  %v300_v25 = vld [vmem:[%s556_s0] sm:$0xf]  ;;  %v378_v29 = vld [vmem:[%s556_s0 + $0x4] sm:$0xf]  ;;  %v302_v30 = vld [vmem:[%s556_s0 + $0x8] sm:$0xf0]  ;;  %v309_v34 = vor.u32 %v381_v28, %v308_v27 }
   0xb   :  { %400 = vmatpush.bf16.msra.mxu2 %v387_v5  ;;  %202 = vmatpush.bf16.msra.mxu1 %v395_v6  ;;  %v380_v31 = vld [vmem:[%s556_s0 + $0x14] sm:$0xf]  ;;  %v310_v32 = vld [vmem:[%s556_s0 + $0x18] sm:$0xf0]  ;;  %v301_v33 = vor.u32 %v379_v26, %v300_v25  ;;  %v305_v35 = vor.u32 %v378_v29, %v302_v30 }
   0xc   :  { %408 = vmatpush.bf16.msra.mxu3 %v395_v6  ;;  %255 = vperm.xlu1 %417, %v237_v13   ;;  %v313_v36 = vor.u32 %v380_v31, %v310_v32 }
   0xd   :  { %245 = vperm.xlu0 %416, %v235_v14  }
   0xe   :  { %184 = vmatpush.bf16.msra.mxu0 %v386_v9  ;;  %273 = vperm.xlu2 %418, %v263_v16  }
   0xf   :  { %401 = vmatpush.bf16.msra.mxu2 %v386_v9  ;;  %203 = vmatpush.bf16.msra.mxu1 %v394_v11 }
  0x10   :  { %409 = vmatpush.bf16.msra.mxu3 %v394_v11 }
  0x12   :  { %185 = vmatpush.bf16.msra.mxu0 %v385_v12 }
  0x13   :  { %402 = vmatpush.bf16.msra.mxu2 %v385_v12  ;;  %204 = vmatpush.bf16.msra.mxu1 %v393_v15 }
  0x14   :  { %410 = vmatpush.bf16.msra.mxu3 %v393_v15  ;;  %283 = vperm.xlu1 %417, %v265_v20  }
  0x15   :  { %278 = vperm.xlu0 %416, %v264_v21  }
  0x16   :  { %186 = vmatpush.bf16.msra.mxu0 %v384_v17 }
  0x17   :  { %403 = vmatpush.bf16.msra.mxu2 %v384_v17  ;;  %205 = vmatpush.bf16.msra.mxu1 %v392_v18 }
  0x18   :  { %411 = vmatpush.bf16.msra.mxu3 %v392_v18 }
  0x1a   :  { %187 = vmatpush.bf16.msra.mxu0 %v383_v19 }
  0x1b   :  { %404 = vmatpush.bf16.msra.mxu2 %v383_v19  ;;  %206 = vmatpush.bf16.msra.mxu1 %v391_v22 }
  0x1c   :  { %412 = vmatpush.bf16.msra.mxu3 %v391_v22 }
  0x1e   :  { %188 = vmatpush.bf16.msra.mxu0 %v382_v23 }
  0x1f   :  { %405 = vmatpush.bf16.msra.mxu2 %v382_v23  ;;  %207 = vmatpush.bf16.msra.mxu1 %v390_v24 }
  0x20   :  { %413 = vmatpush.bf16.msra.mxu3 %v390_v24 }
  0x21   :  { %189 = vmatmul.bf16.vlgmr.msra.gmra.mxu0 %v301_v33 }
  0x22   :  { %194 = vmatmul.bf16.vlgmr.msra.gmra.mxu2 %v309_v34  ;;  %208 = vmatmul.bf16.vlgmr.msra.gmra.mxu1 %v305_v35 }
  0x23   :  { %213 = vmatmul.bf16.vlgmr.msra.gmra.mxu3 %v313_v36 }
  0x60   :  { %v269_v43 = vpop.permute.xlu2 %268 }
  0x68   :  { %v274_v59 = vpop.permute.xlu2 %273 }
  0x76   :  { %v251_v39 = vpop.permute.xlu1 %250 }
  0x77   :  { %v241_v37 = vpop.permute.xlu0 %240 }
  0x7e   :  { %v256_v52 = vpop.permute.xlu1 %255 }
  0x7f   :  { %v246_v42 = vpop.permute.xlu0 %245 }
  0x86   :  { %v284_v63 = vpop.permute.xlu1 %283 }
  0x87   :  { %v279_v54 = vpop.permute.xlu0 %278 }
  0x9e   :  { %v190_v38 = vpop.f32.mrf.mxu0 }
  0x9f   :  { %v209_v40 = vpop.f32.mrf.mxu1 }
  0xa0   :  { %v210_v41 = vadd.f32 %v209_v40, %v190_v38 }
  0xa2   :  { %v258_v45 = vmul.f32 %v241_v37, %v210_v41 }
  0xa4   :  { %v286_v49 = vadd.f32 %v269_v43, %v258_v45 }
  0xa5   :  { %v195_v44 = vpop.f32.mrf.mxu2 }
  0xa6   :  { %v214_v46 = vpop.f32.mrf.mxu3  ;;  %v192_v48 = vpop.f32.mrf.mxu0  ;;  %290 = vst [vmem:[%s557_s4] sm:$0xff] %v286_v49 }
  0xa7   :  { %v215_v47 = vadd.f32 %v214_v46, %v195_v44  ;;  %v211_v50 = vpop.f32.mrf.mxu1 }
  0xa8   :  { %v212_v51 = vadd.f32 %v211_v50, %v192_v48 }
  0xa9   :  { %v260_v53 = vmul.f32 %v251_v39, %v215_v47 }
  0xaa   :  { %v259_v57 = vmul.f32 %v246_v42, %v212_v51 }
  0xab   :  { %v288_v55 = vadd.f32 %v279_v54, %v260_v53 }
  0xac   :  { %v287_v61 = vadd.f32 %v274_v59, %v259_v57 }
  0xad   :  { %v197_v56 = vpop.f32.mrf.mxu2  ;;  %292 = vst [vmem:[%s557_s4 + $0x10] sm:$0xff] %v288_v55 }
  0xae   :  { %v216_v58 = vpop.f32.mrf.mxu3  ;;  %291 = vst [vmem:[%s557_s4 + $0x8] sm:$0xff] %v287_v61 }
  0xaf   :  { %v217_v60 = vadd.f32 %v216_v58, %v197_v56 }
  0xb1   :  { %v261_v62 = vmul.f32 %v256_v52, %v217_v60 }
  0xb3   :  { %v289_v0 = vadd.f32 %v284_v63, %v261_v62 }
  0xb5   :  { %293 = vst [vmem:[%s557_s4 + $0x18] sm:$0xff] %v289_v0 }

// kernel: psmnet_forward.82
= control target key start
LH: loop header
LB: loop body
LE: loop exit
PB: predicated region body
PF: predicated region fallthrough
CT: control target
= control target key end

     0   :  { %v270_v1 = vmov 0   ;;  %s362_s1 = inlined_call_operand.vmem [shape: bf16[128,128], index: 1, kind: input, shape index: {}]   ;;  %s363_s2 = inlined_call_operand.vmem [shape: f32[32,1], index: 2, kind: input, shape index: {}]   ;;  %s364_s3 = inlined_call_operand.vmem [shape: f32[32,1], index: 3, kind: input, shape index: {}]   ;;  %s365_s0 = inlined_call_operand.vmem [shape: bf16[32,128], index: 0, kind: input, shape index: {}]   ;;  %s366_s4 = inlined_call_operand.vmem [shape: f32[32,128], index: 4, kind: output, shape index: {}]  }
   0x1   :  { %v256_v0 = vld [vmem:[%s362_s1 + $0x38] sm:$0xff]  ;;  %268 = vset.pattern.permute.xlu1 %v270_v1  ;;  %267 = vset.pattern.permute.xlu0 %v270_v1  ;;  %v255_v2 = vld [vmem:[%s362_s1 + $0x30] sm:$0xff]  ;;  %v143_v4 = vld [vmem:[%s363_s2] sm:$0xff] }
   0x2   :  { %269 = vset.pattern.permute.xlu2 %v270_v1  ;;  %109 = vmatpush.bf16.msra.mxu0 %v256_v0  ;;  %v145_v3 = vld [vmem:[%s363_s2 + $0x10] sm:$0xff]  ;;  %v171_v5 = vld [vmem:[%s364_s3] sm:$0xff]  ;;  %v254_v6 = vld [vmem:[%s362_s1 + $0x28] sm:$0xff] }
   0x3   :  { %257 = vmatpush.bf16.msra.mxu1 %v256_v0  ;;  %159 = vperm.xlu1 %268, %v145_v3   ;;  %v146_v7 = vld [vmem:[%s363_s2 + $0x18] sm:$0xff]  ;;  %v144_v8 = vld [vmem:[%s363_s2 + $0x8] sm:$0xff]  ;;  %v253_v9 = vld [vmem:[%s362_s1 + $0x20] sm:$0xff] }
   0x4   :  { %149 = vperm.xlu0 %267, %v143_v4   ;;  %177 = vperm.xlu2 %269, %v171_v5   ;;  %v172_v10 = vld [vmem:[%s364_s3 + $0x8] sm:$0xff]  ;;  %v252_v11 = vld [vmem:[%s362_s1 + $0x18] sm:$0xff]  ;;  %v173_v13 = vld [vmem:[%s364_s3 + $0x10] sm:$0xff] }
   0x5   :  { %v174_v12 = vld [vmem:[%s364_s3 + $0x18] sm:$0xff]  ;;  %v251_v14 = vld [vmem:[%s362_s1 + $0x10] sm:$0xff]  ;;  %v250_v15 = vld [vmem:[%s362_s1 + $0x8] sm:$0xff] }
   0x6   :  { %110 = vmatpush.bf16.msra.mxu0 %v255_v2  ;;  %v249_v16 = vld [vmem:[%s362_s1] sm:$0xff]  ;;  %v248_v18 = vld [vmem:[%s365_s0 + $0x8] sm:$0xff] }
   0x7   :  { %258 = vmatpush.bf16.msra.mxu1 %v255_v2  ;;  %v247_v17 = vld [vmem:[%s365_s0] sm:$0xff] }
   0xa   :  { %111 = vmatpush.bf16.msra.mxu0 %v254_v6 }
   0xb   :  { %259 = vmatpush.bf16.msra.mxu1 %v254_v6  ;;  %164 = vperm.xlu1 %268, %v146_v7  }
   0xc   :  { %154 = vperm.xlu0 %267, %v144_v8   ;;  %182 = vperm.xlu2 %269, %v172_v10  }
   0xe   :  { %112 = vmatpush.bf16.msra.mxu0 %v253_v9 }
   0xf   :  { %260 = vmatpush.bf16.msra.mxu1 %v253_v9 }
  0x12   :  { %113 = vmatpush.bf16.msra.mxu0 %v252_v11 }
  0x13   :  { %261 = vmatpush.bf16.msra.mxu1 %v252_v11  ;;  %192 = vperm.xlu1 %268, %v174_v12  }
  0x14   :  { %187 = vperm.xlu0 %267, %v173_v13  }
  0x16   :  { %114 = vmatpush.bf16.msra.mxu0 %v251_v14 }
  0x17   :  { %262 = vmatpush.bf16.msra.mxu1 %v251_v14 }
  0x1a   :  { %115 = vmatpush.bf16.msra.mxu0 %v250_v15 }
  0x1b   :  { %263 = vmatpush.bf16.msra.mxu1 %v250_v15 }
  0x1e   :  { %116 = vmatpush.bf16.msra.mxu0 %v249_v16 }
  0x1f   :  { %264 = vmatpush.bf16.msra.mxu1 %v249_v16 }
  0x21   :  { %117 = vmatmul.bf16.vlgmr.msra.gmra.mxu0 %v247_v17 }
  0x22   :  { %122 = vmatmul.bf16.vlgmr.msra.gmra.mxu1 %v248_v18 }
  0x5e   :  { %v178_v25 = vpop.permute.xlu2 %177 }
  0x66   :  { %v183_v36 = vpop.permute.xlu2 %182 }
  0x75   :  { %v160_v20 = vpop.permute.xlu1 %159 }
  0x76   :  { %v150_v19 = vpop.permute.xlu0 %149 }
  0x7d   :  { %v165_v24 = vpop.permute.xlu1 %164 }
  0x7e   :  { %v155_v21 = vpop.permute.xlu0 %154 }
  0x85   :  { %v193_v35 = vpop.permute.xlu1 %192 }
  0x86   :  { %v188_v28 = vpop.permute.xlu0 %187 }
  0x9e   :  { %v118_v22 = vpop.f32.mrf.mxu0 }
  0x9f   :  { %v123_v23 = vpop.f32.mrf.mxu1  ;;  %v167_v26 = vmul.f32 %v150_v19, %v118_v22 }
  0xa0   :  { %v169_v27 = vmul.f32 %v160_v20, %v123_v23 }
  0xa1   :  { %v195_v29 = vadd.f32 %v178_v25, %v167_v26 }
  0xa2   :  { %v197_v30 = vadd.f32 %v188_v28, %v169_v27 }
  0xa3   :  { %199 = vst [vmem:[%s366_s4] sm:$0xff] %v195_v29 }
  0xa4   :  { %201 = vst [vmem:[%s366_s4 + $0x10] sm:$0xff] %v197_v30 }
  0xa6   :  { %v120_v31 = vpop.f32.mrf.mxu0 }
  0xa7   :  { %v125_v32 = vpop.f32.mrf.mxu1  ;;  %v168_v34 = vmul.f32 %v155_v21, %v120_v31 }
  0xa8   :  { %v170_v33 = vmul.f32 %v165_v24, %v125_v32 }
  0xa9   :  { %v196_v38 = vadd.f32 %v183_v36, %v168_v34 }
  0xaa   :  { %v198_v37 = vadd.f32 %v193_v35, %v170_v33 }
  0xab   :  { %200 = vst [vmem:[%s366_s4 + $0x8] sm:$0xff] %v196_v38 }
  0xac   :  { %202 = vst [vmem:[%s366_s4 + $0x18] sm:$0xff] %v198_v37 }

// kernel: psmnet_forward.114
= control target key start
LH: loop header
LB: loop body
LE: loop exit
PB: predicated region body
PF: predicated region fallthrough
CT: control target
= control target key end

     0   :  { %s678_s15 = smov 0   ;;  %s680_s16 = smov 0   ;;  %s759_s0 = inlined_call_operand.vmem [shape: bf16[8,1024], index: 0, kind: input, shape index: {}]   ;;  %s760_s1 = inlined_call_operand.vmem [shape: bf16[1024,128], index: 1, kind: input, shape index: {}]   ;;  %s761_s2 = inlined_call_operand.vmem [shape: f32[8,1], index: 2, kind: input, shape index: {}]   ;;  %s762_s3 = inlined_call_operand.vmem [shape: f32[8,1], index: 3, kind: input, shape index: {}]   ;;  %s763_s4 = inlined_call_operand.vmem [shape: f32[8,128], index: 4, kind: output, shape index: {}]  }
   0x1   :  { %s682_s17 = smov 0  }
   0x2 LB: > { %s23_s18 = sadd.s32 1, %s645_s16  ;;  %p510_p0 = scmp.ge.s32.totalorder %s649_s17, 1  ;;  %s649_s17 = sphi %s682_s17, %s14_s17   ;;  %s645_s16 = sphi %s680_s16, %s765_s16   ;;  %s641_s15 = sphi %s678_s15, %s764_s15  }
   0x3   : > { %p24_p1 = scmp.ge.s32.totalorder %s23_s18, 4  ;;  %p191_p2 = scmp.lt.s32.totalorder %s649_s17, 5 }
   0x5   : > { %s767_s18 = smov (%p24_p1, %s23_s18), 0  ;;  %p192_p3 = pnand %p510_p0, %p191_p2 }
   0x6   : > { %s511_s19 = sshll.u32 (!%p192_p3), %s641_s15, 1  ;;  %s513_s20 = sshll.u32 (!%p192_p3), %s641_s15, 5 }
   0x7   : > { %195 = sbr.rel (%p192_p3) target bundleno = 317 (0x13d), region = 36  ;;  %p225_p4 = scmp.lt.s32.totalorder (!%p192_p3), %s511_s19, 7 }
   0x8   : > { %p231_p5 = scmp.lt.s32.totalorder (!%p192_p3), %s513_s20, 127  ;;  %p515_p6 = scmp.ne.s32.totalorder (!%p192_p3), %s641_s15, 0 }
   0xc   : > { %s769_s19 = smov (!%p225_p4, %s511_s19), 7  ;;  %s771_s20 = smov (!%p231_p5, %s513_s20), 127 }
   0xd   : > { %s512_s21 = sshll.u32 %s769_s19, 2  ;;  %s514_s25 = sshll.u32 %s771_s20, 2 }
   0xe   : > { %s703_s24 = scalar_lea.vmem %s759_s0, %s512_s21  ;;  %s708_s28 = scalar_lea.vmem %s760_s1, %s514_s25 }
   0xf   : > { %246 = sbr.rel (%p515_p6) target bundleno = 22 (0x16), region = 40 }
  0x14   : > { %v651_v0 = vmov 0.0  }
  0x15   : > { %247 = vst [vmem:[%s763_s4] sm:$0xff] %v651_v0 }
  0x16 PF: > { %v591_v1 = vld [vmem:[%s708_s28 + $0x38] sm:$0xff]  ;;  %v590_v3 = vld [vmem:[%s708_s28 + $0x30] sm:$0xff]  ;;  %v589_v5 = vld [vmem:[%s708_s28 + $0x28] sm:$0xff]  ;;  %p580_p7 = scmp.ne.s32.totalorder %s641_s15, 3 }
  0x17   : > { %v599_v2 = vld [vmem:[%s708_s28 + $0x78] sm:$0xff]  ;;  %385 = vmatpush.bf16.msra.mxu0 %v591_v1  ;;  %v598_v4 = vld [vmem:[%s708_s28 + $0x70] sm:$0xff]  ;;  %v597_v6 = vld [vmem:[%s708_s28 + $0x68] sm:$0xff] }
  0x18   : > { %398 = vmatpush.bf16.msra.mxu1 %v599_v2  ;;  %v588_v7 = vld [vmem:[%s708_s28 + $0x20] sm:$0xff]  ;;  %v587_v9 = vld [vmem:[%s708_s28 + $0x18] sm:$0xff]  ;;  %v586_v11 = vld [vmem:[%s708_s28 + $0x10] sm:$0xff] }
  0x19   : > { %v596_v8 = vld [vmem:[%s708_s28 + $0x60] sm:$0xff]  ;;  %v595_v10 = vld [vmem:[%s708_s28 + $0x58] sm:$0xff]  ;;  %v594_v12 = vld [vmem:[%s708_s28 + $0x50] sm:$0xff] }
  0x1a   : > { %v585_v13 = vld [vmem:[%s708_s28 + $0x8] sm:$0xff]  ;;  %v249_v15 = vld [vmem:[%s703_s24] sm:$0xff] }
  0x1b   : > { %386 = vmatpush.bf16.msra.mxu0 %v590_v3  ;;  %v593_v14 = vld [vmem:[%s708_s28 + $0x48] sm:$0xff]  ;;  %v283_v16 = vunpack.c.l.b16 %v249_v15  ;;  %v284_v17 = vunpack.c.h.b16 %v249_v15  ;;  %v584_v18 = vld [vmem:[%s708_s28] sm:$0xff] }
  0x1c   : > { %399 = vmatpush.bf16.msra.mxu1 %v598_v4  ;;  %v592_v19 = vld [vmem:[%s708_s28 + $0x40] sm:$0xff] }
  0x1d   : > { %v285_v20 = vpack.c.b16 %v283_v16, %v283_v16  ;;  %v286_v21 = vpack.c.b16 %v284_v17, %v284_v17  ;;  %v248_v23 = vld [vmem:[%s763_s4] sm:$0xff] }
  0x1f   : > { %387 = vmatpush.bf16.msra.mxu0 %v589_v5 }
  0x20   : > { %400 = vmatpush.bf16.msra.mxu1 %v597_v6 }
  0x23   : > { %388 = vmatpush.bf16.msra.mxu0 %v588_v7 }
  0x24   : > { %401 = vmatpush.bf16.msra.mxu1 %v596_v8 }
  0x27   : > { %389 = vmatpush.bf16.msra.mxu0 %v587_v9 }
  0x28   : > { %402 = vmatpush.bf16.msra.mxu1 %v595_v10 }
  0x2b   : > { %390 = vmatpush.bf16.msra.mxu0 %v586_v11 }
  0x2c   : > { %403 = vmatpush.bf16.msra.mxu1 %v594_v12 }
  0x2f   : > { %391 = vmatpush.bf16.msra.mxu0 %v585_v13 }
  0x30   : > { %404 = vmatpush.bf16.msra.mxu1 %v593_v14 }
  0x33   : > { %392 = vmatpush.bf16.msra.mxu0 %v584_v18 }
  0x34   : > { %405 = vmatpush.bf16.msra.mxu1 %v592_v19 }
  0x36   : > { %393 = vmatmul.bf16.vlgmr.msra.gmra.mxu0 %v285_v20 }
  0x37   : > { %406 = vmatmul.bf16.vlgmr.msra.gmra.mxu1 %v286_v21 }
  0xb3   : > { %v394_v22 = vpop.f32.mrf.mxu0 }
  0xb4   : > { %v407_v24 = vpop.f32.mrf.mxu1 }
  0xb5   : > { %v408_v25 = vadd.f32 %v407_v24, %v394_v22 }
  0xb7   : > { %v411_v26 = vadd.f32 %v408_v25, %v248_v23 }
  0xb8   : > { %416 = sbr.rel (%p580_p7) target bundleno = 317 (0x13d), region = 44 }
  0xb9   : > { %412 = vst [vmem:[%s763_s4] sm:$0xff] %v411_v26 }
  0xbb   : > { %v396_v27 = vpop.f32.mrf.mxu0 }
  0xbc   : > { %v409_v28 = vpop.f32.mrf.mxu1 }
  0xbd   : > { %v418_v29 = vld [vmem:[%s761_s2] sm:$0xff]  ;;  %v652_v30 = vmov 0  }
  0xbe   : > { %626 = vset.pattern.permute.xlu0 %v652_v30  ;;  %v425_v31 = vld [vmem:[%s762_s3] sm:$0xff] }
  0xbf   : > { %421 = vperm.xlu0 %626, %v418_v29  }
  0xc0   : > { %v417_v33 = vld [vmem:[%s763_s4] sm:$0xff] }
  0xc7   : > { %428 = vperm.xlu0 %626, %v425_v31  }
 0x131   : > { %v422_v32 = vpop.permute.xlu0 %421 }
 0x132   : > { %v424_v34 = vmul.f32 %v422_v32, %v417_v33 }
 0x139   : > { %v429_v35 = vpop.permute.xlu0 %428 }
 0x13a   : > { %v431_v36 = vadd.f32 %v429_v35, %v424_v34 }
 0x13c   : > { %432 = vst [vmem:[%s763_s4] sm:$0xff] %v431_v36 }
 0x13d PF: > { %s14_s17 = sadd.s32 1, %s649_s17   ;;  %s764_s15 = smov %s645_s16 }
 0x13e   : > { %p11_p8 = scmp.ge.s32.totalorder %s14_s17, 6   ;;  %s765_s16 = smov %s767_s18 }
 0x140   :  { %13 = sbr.rel (!%p11_p8) target bundleno = 2 (0x2), region = 77 }

// kernel: psmnet_forward.119
= control target key start
LH: loop header
LB: loop body
LE: loop exit
PB: predicated region body
PF: predicated region fallthrough
CT: control target
= control target key end

     0   :  { %7 = vsyncpa [#allocation4], 0  ;;  %s877_s0 = inlined_call_operand.vmem [shape: f32[2,8,16,16], index: 0, kind: input, shape index: {}]   ;;  %s878_s1 = inlined_call_operand.vmem [shape: f32[8,1,1], index: 1, kind: input, shape index: {}]   ;;  %s879_s2 = inlined_call_operand.hbm [shape: f32[2,16,16], index: 2, kind: output, shape index: {}]  }
   0x1   :  { %9 = vsyncpa [#allocation4 + $0x1], 0  ;;  %s694_s9 = smov 0   ;;  %s696_s10 = smov 0  }
   0x2   :  { %s698_s11 = smov 0   ;;  %s700_s12 = smov 0  }
   0x3   :  { %s702_s13 = smov 0   ;;  %s704_s14 = smov 0  }
   0x4   :  { %s706_s15 = smov 0   ;;  %s708_s16 = smov 0  }
   0x5 LB: > { %s466_s17 = sadd.s32 4294967295, %s676_s16   ;;  %s467_s18 = sadd.s32 4294967294, %s676_s16   ;;  %s676_s16 = sphi %s708_s16, %s15_s16   ;;  %s672_s15 = sphi %s706_s15, %s889_s15   ;;  %s668_s14 = sphi %s704_s14, %s888_s14   ;;  %s664_s13 = sphi %s702_s13, %s887_s13   ;;  %s660_s12 = sphi %s700_s12, %s886_s12   ;;  %s656_s11 = sphi %s698_s11, %s885_s11   ;;  %s652_s10 = sphi %s696_s10, %s884_s10   ;;  %s648_s9 = sphi %s694_s9, %s883_s9  }
   0x6   : > { %s24_s19 = sadd.s32 1, %s668_s14  ;;  %s27_s20 = sadd.s32 1, %s672_s15 }
   0x7   : > { %p25_p0 = scmp.ge.s32.totalorder %s24_s19, 2  ;;  %p43_p1 = scmp.ne.s32.totalorder %s656_s11, %s652_s10 }
   0x8   : > { %p44_p2 = scmp.eq.s32.totalorder %s676_s16, 0  ;;  %p96_p5 = scmp.eq.s32.totalorder %s466_s17, 3 }
   0x9   : > { %s891_s19 = smov (%p25_p0, %s24_s19), 0  ;;  %s893_s20 = smov (!%p25_p0, %s27_s20), %s672_s15 }
   0xa   : > { %s32_s21 = ssub.s32 %s668_s14, %s891_s19  ;;  %p746_p3 = por %p44_p2, %p43_p1 }
   0xb   : > { %p29_p4 = scmp.ge.s32.totalorder %s893_s20, 2  ;;  %p101_p6 = scmp.ne.s32.totalorder %s652_s10, %s648_s9 }
   0xc   : > { %p102_p7 = scmp.eq.s32.totalorder %s467_s18, 3  ;;  %p754_p8 = por %p96_p5, %p43_p1 }
   0xd   : > { %s895_s20 = smov (%p29_p4, %s893_s20), 0  ;;  %s36_s27 = sadd.s32 1, %s656_s11 }
   0xe   : > { %p758_p9 = por %p102_p7, %p101_p6  ;;  %s31_s25 = ssub.s32 %s672_s15, %s895_s20 }
   0xf   : > { %s33_s26 = sor.u32 %s32_s21, %s31_s25  ;;  %p469_p11 = scmp.ge.s32.totalorder %s676_s16, 4 }
  0x10   : > { %p34_p10 = scmp.eq.s32.totalorder %s33_s26, 0 }
  0x11   : > { %121 = sbr.rel (%p469_p11) target bundleno = 36 (0x24), region = 20 }
  0x12   : > { %s766_s28 = scalar_select %p34_p10, %s656_s11, %s36_s27  }
  0x16   : > { %124 = sbr.rel (!%p746_p3) target bundleno = 36 (0x24), region = 24  ;;  %s126_s29 = sand.u32 (%p746_p3), 1, %s656_s11  }
  0x17   : > { %s471_s30 = sshll.u32 (%p746_p3), %s672_s15, 4  ;;  %s470_s3 = sshll.u32 (%p746_p3), %s126_s29, 6 }
  0x18   : > { %s130_s4 = sadd.s32 (%p746_p3), %s668_s14, %s471_s30  ;;  %s128_s17 = scalar_lea.vmem (%p746_p3), [#allocation2], %s470_s3 }
  0x19   : > { %s472_s5 = sshll.u32 (%p746_p3), %s130_s4, 3 }
  0x1a   : > { %s132_s8 = scalar_lea.vmem (%p746_p3), %s877_s0, %s472_s5 }
  0x1b   : > { %v175_v0 = vld [vmem:[%s132_s8] sm:$0xff]  ;;  %v177_v1 = vld [vmem:[%s132_s8 + $0x10] sm:$0xff] }
  0x1c   : > { %v179_v2 = vld [vmem:[%s132_s8 + $0x20] sm:$0xff]  ;;  %176 = vst [vmem:[%s128_s17] sm:$0xff] %v175_v0  ;;  %v181_v3 = vld [vmem:[%s132_s8 + $0x30] sm:$0xff] }
  0x1d   : > { %178 = vst [vmem:[%s128_s17 + $0x8] sm:$0xff] %v177_v1  ;;  %v183_v4 = vld [vmem:[%s132_s8 + $0x40] sm:$0xff]  ;;  %v185_v5 = vld [vmem:[%s132_s8 + $0x50] sm:$0xff] }
  0x1e   : > { %180 = vst [vmem:[%s128_s17 + $0x10] sm:$0xff] %v179_v2  ;;  %v187_v6 = vld [vmem:[%s132_s8 + $0x60] sm:$0xff]  ;;  %v189_v7 = vld [vmem:[%s132_s8 + $0x70] sm:$0xff] }
  0x1f   : > { %182 = vst [vmem:[%s128_s17 + $0x18] sm:$0xff] %v181_v3 }
  0x20   : > { %184 = vst [vmem:[%s128_s17 + $0x20] sm:$0xff] %v183_v4 }
  0x21   : > { %186 = vst [vmem:[%s128_s17 + $0x28] sm:$0xff] %v185_v5 }
  0x22   : > { %188 = vst [vmem:[%s128_s17 + $0x30] sm:$0xff] %v187_v6 }
  0x23   : > { %190 = vst [vmem:[%s128_s17 + $0x38] sm:$0xff] %v189_v7 }
  0x24 PF: > { %p473_p12 = scmp.ge.s32.totalorder %s676_s16, 1  ;;  %p195_p13 = scmp.lt.s32.totalorder %s676_s16, 5 }
  0x26   : > { %p196_p0 = pnand %p473_p12, %p195_p13 }
  0x27   : > { %s804_s21 = sand.u32 (!%p196_p0), 1, %s652_s10   ;;  %s477_s26 = sshll.u32 (!%p196_p0), %s664_s13, 1 }
  0x28   : > { %199 = sbr.rel (%p196_p0) target bundleno = 193 (0xc1), region = 62  ;;  %s474_s22 = sshll.u32 (!%p196_p0), %s804_s21, 6 }
  0x29   : > { %s204_s25 = scalar_lea.vmem (!%p196_p0), [#allocation2], %s474_s22  ;;  %s379_s27 = sadd.s32 (!%p196_p0), %s660_s12, %s477_s26 }
  0x2a   : > { %s475_s13 = sshll.u32 (!%p196_p0), %s804_s21, 3  ;;  %s478_s29 = sshll.u32 (!%p196_p0), %s379_s27, 3 }
  0x2b   : > { %s381_s3 = scalar_lea.hbm (!%p196_p0), %s879_s2, %s478_s29  ;;  %s222_s4 = scalar_lea.vmem (!%p196_p0), [#allocation3], %s475_s13 }
  0x2c   : > { %s383_s5 = sshll.u32 (!%p196_p0), %s222_s4, 4  ;;  %s385_s6 = sshll.u32 (!%p196_p0), %s381_s3, 4  ;;  %s384_s5 = int_to_ptr.vmem [resolvable:$true] %s383_s5  ;;  %s386_s6 = int_to_ptr.hbm [resolvable:$true] %s385_s6 }
  0x2d   : > { %v556_v8 = vld [vmem:[%s878_s1 + $0x2] ss:$0 sm:$0xff]  ;;  %v678_v9 = vmov 0   ;;  %v557_v10 = vld [vmem:[%s878_s1] ss:$0 sm:$0xff]  ;;  %v224_v18 = vld [vmem:[%s204_s25 + $0x8] sm:$0xff] }
  0x2e   : > { %554 = vset.pattern.permute.xlu1 %v678_v9  ;;  %553 = vset.pattern.permute.xlu0 %v678_v9  ;;  %v562_v11 = vld [vmem:[%s878_s1 + $0x4] ss:$0 sm:$0xff]  ;;  %v558_v12 = vld [vmem:[%s878_s1 + $0x3] ss:$0 sm:$0xff]  ;;  %v559_v13 = vld [vmem:[%s878_s1 + $0x1] ss:$0 sm:$0xff] }
  0x2f   : > { %319 = vperm.xlu1 %554, %v556_v8   ;;  %555 = vset.pattern.permute.xlu2 %v678_v9  ;;  %v563_v14 = vld [vmem:[%s878_s1 + $0x5] ss:$0 sm:$0xff]  ;;  %v560_v15 = vld [vmem:[%s878_s1 + $0x7] ss:$0 sm:$0xff]  ;;  %v561_v16 = vld [vmem:[%s878_s1 + $0x6] ss:$0 sm:$0xff] }
  0x30   : > { %311 = vperm.xlu0 %553, %v557_v10   ;;  %327 = vperm.xlu2 %555, %v562_v11   ;;  %v223_v17 = vld [vmem:[%s204_s25] sm:$0xff]  ;;  %v225_v19 = vld [vmem:[%s204_s25 + $0x10] sm:$0xff]  ;;  %v226_v20 = vld [vmem:[%s204_s25 + $0x18] sm:$0xff]  ;;  %vm231_vm0 = vcmask 130048   ;;  %s369_s7 = scalar_lea.sflag [#allocation4], %s804_s21  ;;  %s596_s8 = sshra.s32 %s386_s6, 4  ;;  %s597_s8 = int_to_ptr.hbm [resolvable:$true] %s596_s8 }
  0x31   : > { %v227_v21 = vld [vmem:[%s204_s25 + $0x20] sm:$0xff]  ;;  %v228_v22 = vld [vmem:[%s204_s25 + $0x28] sm:$0xff]  ;;  %v229_v23 = vld [vmem:[%s204_s25 + $0x30] sm:$0xff]  ;;  %v232_v25 = vsel %vm231_vm0, %v223_v17, -inf  ;;  %v233_v26 = vsel %vm231_vm0, %v224_v18, -inf  ;;  %v234_v27 = vsel %vm231_vm0, %v225_v19, -inf  ;;  %p603_p4 = scmp.lt.s32.totalorder %s597_s8, %s879_s2 }
  0x32   : > { %v230_v24 = vld [vmem:[%s204_s25 + $0x38] sm:$0xff]  ;;  %v235_v28 = vsel %vm231_vm0, %v226_v20, -inf  ;;  %v236_v29 = vsel %vm231_vm0, %v227_v21, -inf  ;;  %v238_v30 = vsel %vm231_vm0, %v228_v22, -inf  ;;  %v240_v31 = vsel %vm231_vm0, %v229_v23, -inf  ;;  %s598_s17 = scalar_lea.hbm %s597_s8, 8 }
  0x33   : > { %v242_v32 = vsel %vm231_vm0, %v230_v24, -inf  ;;  %v237_v33 = vmax.f32 %v232_v25, %v236_v29  ;;  %v239_v34 = vmax.f32 %v233_v26, %v238_v30  ;;  %v241_v35 = vmax.f32 %v234_v27, %v240_v31  ;;  %p599_p1 = scmp.ne.s32.totalorder %s597_s8, %s598_s17  ;;  %s602_s25 = scalar_lea.hbm %s879_s2, 32 }
  0x34   : > { %v243_v36 = vmax.f32 %v235_v28, %v242_v32  ;;  %p604_p5 = scmp.lt.s32.totalorder %s602_s25, %s598_s17 }
  0x35   : > { %v244_v37 = vmax.f32 %v237_v33, %v239_v34  ;;  %p600_p2 = pnand %p599_p1, %p754_p8 }
  0x36   : > { %v245_v38 = vmax.f32 %v241_v35, %v243_v36  ;;  %p605_p6 = por %p604_p5, %p603_p4 }
  0x37   : > { %323 = vperm.xlu1 %554, %v558_v12   ;;  %p601_p3 = pneg %p600_p2 }
  0x38   : > { %315 = vperm.xlu0 %553, %v559_v13   ;;  %331 = vperm.xlu2 %555, %v563_v14   ;;  %v246_v39 = vmax.f32 %v244_v37, %v245_v38 }
  0x39   : > { %p606_p7 = pnand %p605_p6, %p601_p3 }
  0x3a   : > { %v248_v40 = vsub.f32 %v224_v18, %v246_v39  ;;  %v247_v41 = vsub.f32 %v223_v17, %v246_v39  ;;  %v249_v42 = vsub.f32 %v225_v19, %v246_v39  ;;  %v250_v46 = vsub.f32 %v226_v20, %v246_v39 }
  0x3b   : > { %v251_v47 = vsub.f32 %v227_v21, %v246_v39  ;;  %v252_v55 = vsub.f32 %v228_v22, %v246_v39  ;;  %v253_v57 = vsub.f32 %v229_v23, %v246_v39  ;;  %v254_v62 = vsub.f32 %v230_v24, %v246_v39 }
  0x3c   : > { %v257_v43 = vmul.f32 1.442695, %v248_v40  ;;  %v255_v44 = vmul.f32 1.442695, %v247_v41  ;;  %v259_v45 = vmul.f32 1.442695, %v249_v42 }
  0x3d   : > { %v261_v48 = vmul.f32 1.442695, %v250_v46  ;;  %v263_v51 = vmul.f32 1.442695, %v251_v47  ;;  %v265_v60 = vmul.f32 1.442695, %v252_v55 }
  0x3e   : > { %564 = vpow2.f32 %v257_v43  ;;  %v267_v63 = vmul.f32 1.442695, %v253_v57  ;;  %v269_v3 = vmul.f32 1.442695, %v254_v62 }
  0x3f   : > { %339 = vperm.xlu1 %554, %v560_v15   ;;  %566 = vpow2.f32 %v255_v44 }
  0x40   : > { %335 = vperm.xlu0 %553, %v561_v16   ;;  %568 = vpow2.f32 %v259_v45 }
  0x41   : > { %570 = vpow2.f32 %v261_v48 }
  0x42   : > { %572 = vpow2.f32 %v263_v51 }
  0x43   : > { %574 = vpow2.f32 %v265_v60 }
  0x44   : > { %v565_v49 = vpop.eup %564  ;;  %576 = vpow2.f32 %v267_v63 }
  0x45   : > { %v567_v50 = vpop.eup %566  ;;  %v272_v53 = vsel %vm231_vm0, %v565_v49, 0.0  ;;  %578 = vpow2.f32 %v269_v3 }
  0x46   : > { %v271_v52 = vsel %vm231_vm0, %v567_v50, 0.0  ;;  %v569_v54 = vpop.eup %568 }
  0x47   : > { %v273_v56 = vadd.f32 %v272_v53, %v271_v52  ;;  %v274_v58 = vsel %vm231_vm0, %v569_v54, 0.0  ;;  %v571_v59 = vpop.eup %570 }
  0x48   : > { %v276_v0 = vsel %vm231_vm0, %v571_v59, 0.0  ;;  %v573_v1 = vpop.eup %572 }
  0x49   : > { %v275_v61 = vadd.f32 %v274_v58, %v273_v56  ;;  %v278_v4 = vsel %vm231_vm0, %v573_v1, 0.0  ;;  %v575_v7 = vpop.eup %574 }
  0x4a   : > { %v280_v10 = vsel %vm231_vm0, %v575_v7, 0.0  ;;  %v577_v11 = vpop.eup %576 }
  0x4b   : > { %v277_v2 = vadd.f32 %v276_v0, %v275_v61  ;;  %v282_v13 = vsel %vm231_vm0, %v577_v11, 0.0  ;;  %v579_v14 = vpop.eup %578 }
  0x4c   : > { %v284_v21 = vsel %vm231_vm0, %v579_v14, 0.0 }
  0x4d   : > { %v279_v8 = vadd.f32 %v278_v4, %v277_v2 }
  0x4f   : > { %v281_v12 = vadd.f32 %v280_v10, %v279_v8 }
  0x51   : > { %v283_v20 = vadd.f32 %v282_v13, %v281_v12 }
  0x53   : > { %v285_v29 = vadd.f32 %v284_v21, %v283_v20 }
  0x55   : > { %580 = vrcp.f32 %v285_v29 }
  0x5b   : > { %v581_v44 = vpop.eup %580 }
  0x8a   : > { %v328_v9 = vpop.permute.xlu2 %327 }
  0x8b   : > { %v346_v27 = vmul.f32 %v573_v1, %v328_v9 }
  0x8d   : > { %v357_v36 = vsel %vm231_vm0, %v346_v27, 0.0 }
  0x92   : > { %v332_v25 = vpop.permute.xlu2 %331 }
  0x93   : > { %v347_v31 = vmul.f32 %v575_v7, %v332_v25 }
  0x95   : > { %v359_v39 = vsel %vm231_vm0, %v347_v31, 0.0 }
  0xa1   : > { %v320_v5 = vpop.permute.xlu1 %319 }
  0xa2   : > { %v312_v6 = vpop.permute.xlu0 %311  ;;  %v344_v18 = vmul.f32 %v569_v54, %v320_v5 }
  0xa3   : > { %v342_v15 = vmul.f32 %v567_v50, %v312_v6 }
  0xa4   : > { %v353_v28 = vsel %vm231_vm0, %v344_v18, 0.0 }
  0xa5   : > { %v350_v22 = vsel %vm231_vm0, %v342_v15, 0.0 }
  0xa9   : > { %v324_v16 = vpop.permute.xlu1 %323 }
  0xaa   : > { %v316_v17 = vpop.permute.xlu0 %315  ;;  %v345_v23 = vmul.f32 %v571_v59, %v324_v16 }
  0xab   : > { %v343_v19 = vmul.f32 %v565_v49, %v316_v17 }
  0xac   : > { %v355_v32 = vsel %vm231_vm0, %v345_v23, 0.0 }
  0xad   : > { %v351_v24 = vsel %vm231_vm0, %v343_v19, 0.0 }
  0xae   : > { %v352_v26 = vadd.f32 %v351_v24, %v350_v22 }
  0xb0   : > { %v354_v30 = vadd.f32 %v353_v28, %v352_v26 }
  0xb1   : > { %v340_v34 = vpop.permute.xlu1 %339 }
  0xb2   : > { %v356_v33 = vadd.f32 %v355_v32, %v354_v30  ;;  %v336_v35 = vpop.permute.xlu0 %335  ;;  %v349_v40 = vmul.f32 %v579_v14, %v340_v34 }
  0xb3   : > { %v348_v37 = vmul.f32 %v577_v11, %v336_v35 }
  0xb4   : > { %v358_v38 = vadd.f32 %v357_v36, %v356_v33  ;;  %v363_v45 = vsel %vm231_vm0, %v349_v40, 0.0 }
  0xb5   : > { %v361_v42 = vsel %vm231_vm0, %v348_v37, 0.0 }
  0xb6   : > { %v360_v41 = vadd.f32 %v359_v39, %v358_v38 }
  0xb8   : > { %v362_v43 = vadd.f32 %v361_v42, %v360_v41 }
  0xba   : > { %v364_v46 = vadd.f32 %v363_v45, %v362_v43 }
  0xbc   : > { %v366_v47 = vmul.f32 %v581_v44, %v364_v46 }
  0xbe   : > { %367 = vst.msk [vmem:[%s222_s4] sm:$0xff] %vm231_vm0, %v366_v47 }
  0xbf   : > { %609 = shalt.err (!%p606_p7)
}
  0xc0   : > { %481 = dma.vmem_to_hbm [thread:$0]  (%p754_p8), %s384_s5, 128, %s386_s6, %s369_s7  }
  0xc1 PF: > { %p487_p10 = scmp.ge.s32.totalorder %s676_s16, 2  ;;  %s397_s21 = sand.u32 1, %s648_s9  }
  0xc2   : > { %s398_s13 = scalar_lea.sflag [#allocation4], %s397_s21 }
  0xc3   : > { %p484_p11 = pnand %p487_p10, %p758_p9 }
  0xc5   : > { %p485_p12 = pneg %p484_p11 }
  0xc7   : > { %643 = dma.done.wait (%p485_p12), %s398_s13, 128  }
  0xc8   : > { %645 = vsyncadd (%p485_p12), %s398_s13, 4294967168  ;;  %s15_s16 = sadd.s32 1, %s676_s16   ;;  %s883_s9 = smov %s652_s10 }
  0xc9   : > { %p12_p13 = scmp.ge.s32.totalorder %s15_s16, 6   ;;  %s884_s10 = smov %s656_s11 }
  0xca   : > { %s885_s11 = smov %s766_s28  ;;  %s886_s12 = smov %s668_s14 }
  0xcb   : > { %s887_s13 = smov %s672_s15  ;;  %s888_s14 = smov %s891_s19 }
  0xcc   : > { %s889_s15 = smov %s895_s20  ;;  %14 = sbr.rel (!%p12_p13) target bundleno = 5 (0x5), region = 106 }
  0xd1   :  { %404 = vsyncpa [#allocation4], 1 }
  0xd2   :  { %406 = vsyncpa [#allocation4 + $0x1], 1 }

</bundles_post_ra>
